<compile_context>
chip_gen: v7x
topology: tpu7x:2x2x1
jax: 0.10.0
libtpu: 0.0.40
codegen_flags: <defaults>
</compile_context>

<pallas_src>
import functools
import math

import jax
import jax.numpy as jnp
from jax.experimental import pallas as pl
from jax.experimental.pallas import tpu as pltpu

# ----------------------------- model config -----------------------------------
CLASS_NUM = 234
CLASS_NUM_PAD = 256            # lane-dense classifier width (zero-padded, sliced back)
HIDDEN = 128
INTERMEDIATE = 256
N_HEADS = 4
HEAD_DIM = HIDDEN // N_HEADS
N_LAYERS = 2
VOCAB = 1000
VOCAB_PAD = 1024               # embedding table padded to a lane-friendly row count
TYPE_VOCAB = 2
MAX_POS = 16
LN_EPS = 1e-12

BATCH = 2
SEQ = 8


# ----------------------------- in-kernel helpers --------------------------------
def _layernorm(x, gamma, beta):
    """LayerNorm over the last axis, all statistics in f32."""
    mu = jnp.mean(x, axis=-1, keepdims=True)
    var = jnp.mean(jnp.square(x - mu), axis=-1, keepdims=True)
    return (x - mu) * jax.lax.rsqrt(var + LN_EPS) * gamma + beta


# ----------------------------- fully fused forward kernel -----------------------
def _fused_kernel(ids_ref, tt_ref, mask_ref,
                  wemb_ref, pemb_ref, temb_ref, embg_ref, embb_ref,
                  wqkv_ref, bqkv_ref, wo_ref, bo_ref, ln1g_ref, ln1b_ref,
                  wi_ref, bi_ref, wo2_ref, bo2_ref, ln2g_ref, ln2b_ref,
                  pw_ref, pb_ref, cw_ref, cb_ref,
                  logits_ref, x_res_ref, *, batch, seq):
    """One grid step == one transformer layer.  The [B*S, H] activation lives in
    x_res_ref (VMEM scratch) across the whole grid.  Layer 0 additionally builds
    the embeddings; the last layer additionally runs pooler + classifier."""
    layer = pl.program_id(0)
    m = batch * seq

    # ---- layer 0: embeddings (one-hot gather) + embedding LayerNorm ----
    @pl.when(layer == 0)
    def _():
        ids = ids_ref[...]                                          # [M, 1] i32
        vocab_iota = jax.lax.broadcasted_iota(jnp.int32, (m, VOCAB_PAD), 1)
        onehot = (ids == vocab_iota).astype(jnp.bfloat16)           # [M, VOCAB_PAD]
        word_e = jnp.dot(onehot, wemb_ref[...],
                         preferred_element_type=jnp.float32)        # [M, H]
        pos_e = jnp.concatenate([pemb_ref[0:seq, :]] * batch, axis=0)   # [M, H]
        tt = tt_ref[...]                                            # [M, 1] i32
        type_e = jnp.where(tt == 0, temb_ref[0:1, :], temb_ref[1:2, :])  # [M, H]
        x_res_ref[...] = _layernorm(word_e + pos_e + type_e,
                                    embg_ref[...], embb_ref[...])

    x = x_res_ref[...]                                              # [M, H] f32

    # additive attention mask, built in-kernel from the int mask: 0 keep / -1e9 drop
    mask_add = (1.0 - mask_ref[...].astype(jnp.float32)) * -1e9     # [B, S]
    mask_add = mask_add[:, None, :]                                 # [B, 1, S]

    # --- fused QKV projection (one [H, 3H] matmul, bf16 in / f32 acc) ---
    qkv = (jnp.dot(x.astype(jnp.bfloat16), wqkv_ref[0],
                   preferred_element_type=jnp.float32) + bqkv_ref[0])   # [M, 3H]
    q = qkv[:, 0 * HIDDEN:1 * HIDDEN]
    k = qkv[:, 1 * HIDDEN:2 * HIDDEN]
    v = qkv[:, 2 * HIDDEN:3 * HIDDEN]

    # --- multi-head self-attention; per-head contexts stay in registers ---
    scale = 1.0 / math.sqrt(HEAD_DIM)
    ctx_parts = []
    for h in range(N_HEADS):                                        # static unroll, NH=4
        lo = h * HEAD_DIM
        qh = q[:, lo:lo + HEAD_DIM].reshape(batch, seq, HEAD_DIM)
        kh = k[:, lo:lo + HEAD_DIM].reshape(batch, seq, HEAD_DIM)
        vh = v[:, lo:lo + HEAD_DIM].reshape(batch, seq, HEAD_DIM)
        s = jnp.einsum("bqd,bkd->bqk", qh, kh,
                       preferred_element_type=jnp.float32) * scale      # [B, S, S]
        s = s + mask_add
        s = s - jnp.max(s, axis=-1, keepdims=True)
        p = jnp.exp(s)
        p = p * pl.reciprocal(jnp.sum(p, axis=-1, keepdims=True), approx=True)
        ch = jnp.einsum("bqk,bkd->bqd", p, vh,
                        preferred_element_type=jnp.float32)             # [B, S, Dh]
        ctx_parts.append(ch.reshape(m, HEAD_DIM))
    ctx = jnp.concatenate(ctx_parts, axis=-1)                       # [M, H], lane-dense

    # --- attention output projection + residual + LayerNorm ---
    attn_out = (jnp.dot(ctx.astype(jnp.bfloat16), wo_ref[0],
                        preferred_element_type=jnp.float32) + bo_ref[0])
    x = _layernorm(attn_out + x, ln1g_ref[0], ln1b_ref[0])

    # --- feed-forward + residual + LayerNorm ---
    # TODO(synk): HuggingFace BERT uses exact (erf) GELU; tanh approximation used here.
    h_ff = jax.nn.gelu(jnp.dot(x.astype(jnp.bfloat16), wi_ref[0],
                               preferred_element_type=jnp.float32) + bi_ref[0])
    ffn_out = (jnp.dot(h_ff.astype(jnp.bfloat16), wo2_ref[0],
                       preferred_element_type=jnp.float32) + bo2_ref[0])
    x = _layernorm(ffn_out + x, ln2g_ref[0], ln2b_ref[0])

    x_res_ref[...] = x                        # carry to next layer (VMEM resident)

    # ---- last layer: pooler (tanh dense on [CLS]) + classifier tail phase ----
    @pl.when(layer == pl.num_programs(0) - 1)
    def _():
        # CLS token of every batch element: rows 0, S, 2S, ... (strided sublane load)
        cls_tok = x_res_ref[pl.ds(0, batch, stride=seq), :]             # [B, H]
        pooled = jnp.tanh(
            jnp.dot(cls_tok.astype(jnp.bfloat16), pw_ref[...],
                    preferred_element_type=jnp.float32) + pb_ref[...])  # [B, H]
        logits_ref[...] = (jnp.dot(pooled.astype(jnp.bfloat16), cw_ref[...],
                                   preferred_element_type=jnp.float32)
                           + cb_ref[...])                               # [B, 256]


# ----------------------------- wrapper (single pallas_call) ---------------------
def case_classification_forward(params, input_ids, attention_mask, token_type_ids):
    B, S = input_ids.shape
    M, H, I = B * S, HIDDEN, INTERMEDIATE

    ids2d = input_ids.reshape(M, 1).astype(jnp.int32)
    tt2d = token_type_ids.reshape(M, 1).astype(jnp.int32)
    mask = attention_mask.astype(jnp.int32)

    c2 = lambda l: (0, 0)               # constant block (fetched once)
    p3 = lambda l: (l, 0, 0)            # per-layer stacked weights

    in_specs = [
        pl.BlockSpec((M, 1), c2),                       # input_ids
        pl.BlockSpec((M, 1), c2),                       # token_type_ids
        pl.BlockSpec((B, S), c2),                       # attention_mask (int)
        pl.BlockSpec((VOCAB_PAD, H), c2),               # word_emb (bf16)
        pl.BlockSpec((MAX_POS, H), c2),                 # pos_emb
        pl.BlockSpec((TYPE_VOCAB, H), c2),              # type_emb
        pl.BlockSpec((1, H), c2),                       # emb_ln_g
        pl.BlockSpec((1, H), c2),                       # emb_ln_b
        pl.BlockSpec((1, H, 3 * H), p3),                # wqkv
        pl.BlockSpec((1, 1, 3 * H), p3),                # bqkv
        pl.BlockSpec((1, H, H), p3),                    # wo
        pl.BlockSpec((1, 1, H), p3),                    # bo
        pl.BlockSpec((1, 1, H), p3),                    # ln1_g
        pl.BlockSpec((1, 1, H), p3),                    # ln1_b
        pl.BlockSpec((1, H, I), p3),                    # wi
        pl.BlockSpec((1, 1, I), p3),                    # bi
        pl.BlockSpec((1, I, H), p3),                    # wo2
        pl.BlockSpec((1, 1, H), p3),                    # bo2
        pl.BlockSpec((1, 1, H), p3),                    # ln2_g
        pl.BlockSpec((1, 1, H), p3),                    # ln2_b
        pl.BlockSpec((H, H), c2),                       # pool_w
        pl.BlockSpec((1, H), c2),                       # pool_b
        pl.BlockSpec((H, CLASS_NUM_PAD), c2),           # cls_w (padded, lane-dense)
        pl.BlockSpec((1, CLASS_NUM_PAD), c2),           # cls_b
    ]

    logits_pad = pl.pallas_call(
        functools.partial(_fused_kernel, batch=B, seq=S),
        grid=(N_LAYERS,),
        in_specs=in_specs,
        out_specs=pl.BlockSpec((B, CLASS_NUM_PAD), c2),
        out_shape=jax.ShapeDtypeStruct((B, CLASS_NUM_PAD), jnp.float32),
        scratch_shapes=[pltpu.VMEM((M, H), jnp.float32)],   # resident activation
        compiler_params=pltpu.CompilerParams(
            dimension_semantics=("arbitrary",)),            # layers are sequential
    )(ids2d, tt2d, mask,
      params["word_emb"], params["pos_emb"], params["type_emb"],
      params["emb_ln_g"], params["emb_ln_b"],
      params["wqkv"], params["bqkv"], params["wo"], params["bo"],
      params["ln1_g"], params["ln1_b"], params["wi"], params["bi"],
      params["wo2"], params["bo2"], params["ln2_g"], params["ln2_b"],
      params["pool_w"], params["pool_b"], params["cls_w"], params["cls_b"])

    return logits_pad[:, :CLASS_NUM]                        # [B, 234]


# ----------------------------- parameter init -----------------------------------
def _init_params(key):
    def nrm(k, shape):
        return 0.02 * jax.random.normal(k, shape, dtype=jnp.float32)

    ks = list(jax.random.split(key, 12))
    H, I, L = HIDDEN, INTERMEDIATE, N_LAYERS
    word_emb = jnp.zeros((VOCAB_PAD, H), jnp.float32).at[:VOCAB].set(
        nrm(ks[0], (VOCAB, H)))                              # row-padded to 1024
    cls_w = jnp.zeros((H, CLASS_NUM_PAD), jnp.float32).at[:, :CLASS_NUM].set(
        nrm(ks[7], (H, CLASS_NUM)))                          # zero-padded to 256 cols
    return {
        "word_emb": word_emb.astype(jnp.bfloat16),           # one-hot matmul operand
        "pos_emb": nrm(ks[1], (MAX_POS, H)),
        "type_emb": nrm(ks[2], (TYPE_VOCAB, H)),
        "emb_ln_g": jnp.ones((1, H), jnp.float32),
        "emb_ln_b": jnp.zeros((1, H), jnp.float32),
        # per-layer weights stacked on a leading layer axis; bf16 MXU inputs
        "wqkv": nrm(ks[3], (L, H, 3 * H)).astype(jnp.bfloat16),   # fused Q|K|V
        "bqkv": jnp.zeros((L, 1, 3 * H), jnp.float32),
        "wo": nrm(ks[4], (L, H, H)).astype(jnp.bfloat16),
        "bo": jnp.zeros((L, 1, H), jnp.float32),
        "ln1_g": jnp.ones((L, 1, H), jnp.float32),
        "ln1_b": jnp.zeros((L, 1, H), jnp.float32),
        "wi": nrm(ks[5], (L, H, I)).astype(jnp.bfloat16),
        "bi": jnp.zeros((L, 1, I), jnp.float32),
        "wo2": nrm(ks[6], (L, I, H)).astype(jnp.bfloat16),
        "bo2": jnp.zeros((L, 1, H), jnp.float32),
        "ln2_g": jnp.ones((L, 1, H), jnp.float32),
        "ln2_b": jnp.zeros((L, 1, H), jnp.float32),
        "pool_w": nrm(ks[8], (H, H)).astype(jnp.bfloat16),
        "pool_b": jnp.zeros((1, H), jnp.float32),
        "cls_w": cls_w.astype(jnp.bfloat16),
        "cls_b": jnp.zeros((1, CLASS_NUM_PAD), jnp.float32),
    }


# ----------------------------- driver -------------------------------------------
if __name__ == "__main__":
    key = jax.random.PRNGKey(0)
    pkey, dkey = jax.random.split(key)
    params = _init_params(pkey)

    input_ids = jax.random.randint(dkey, (BATCH, SEQ), 0, VOCAB, dtype=jnp.int32)
    attention_mask = jnp.ones((BATCH, SEQ), dtype=jnp.int32).at[1, SEQ - 2:].set(0)
    token_type_ids = jnp.zeros((BATCH, SEQ), dtype=jnp.int32)

    fwd = jax.jit(case_classification_forward)
    logits = fwd(params, input_ids, attention_mask, token_type_ids)
    logits = jax.block_until_ready(logits)

    assert logits.shape == (BATCH, CLASS_NUM), logits.shape
    assert logits.dtype == jnp.float32
    assert bool(jnp.all(jnp.isfinite(logits)))
    print("KERNEL_OK")
</pallas_src>

<mosaic_0001>
module attributes {stable_mosaic.version = 11 : i64} {
  func.func @_fused_kernel(%arg0: i32, %arg1: memref<16x1xi32, #tpu.memory_space<vmem>>, %arg2: memref<16x1xi32, #tpu.memory_space<vmem>>, %arg3: memref<2x8xi32, #tpu.memory_space<vmem>>, %arg4: memref<1024x128xbf16, #tpu.memory_space<vmem>>, %arg5: memref<16x128xf32, #tpu.memory_space<vmem>>, %arg6: memref<2x128xf32, #tpu.memory_space<vmem>>, %arg7: memref<1x128xf32, #tpu.memory_space<vmem>>, %arg8: memref<1x128xf32, #tpu.memory_space<vmem>>, %arg9: memref<1x128x384xbf16, #tpu.memory_space<vmem>>, %arg10: memref<1x1x384xf32, #tpu.memory_space<vmem>>, %arg11: memref<1x128x128xbf16, #tpu.memory_space<vmem>>, %arg12: memref<1x1x128xf32, #tpu.memory_space<vmem>>, %arg13: memref<1x1x128xf32, #tpu.memory_space<vmem>>, %arg14: memref<1x1x128xf32, #tpu.memory_space<vmem>>, %arg15: memref<1x128x256xbf16, #tpu.memory_space<vmem>>, %arg16: memref<1x1x256xf32, #tpu.memory_space<vmem>>, %arg17: memref<1x256x128xbf16, #tpu.memory_space<vmem>>, %arg18: memref<1x1x128xf32, #tpu.memory_space<vmem>>, %arg19: memref<1x1x128xf32, #tpu.memory_space<vmem>>, %arg20: memref<1x1x128xf32, #tpu.memory_space<vmem>>, %arg21: memref<128x128xbf16, #tpu.memory_space<vmem>>, %arg22: memref<1x128xf32, #tpu.memory_space<vmem>>, %arg23: memref<128x256xbf16, #tpu.memory_space<vmem>>, %arg24: memref<1x256xf32, #tpu.memory_space<vmem>>, %arg25: memref<2x256xf32, #tpu.memory_space<vmem>>, %arg26: memref<16x128xf32, #tpu.memory_space<vmem>>) attributes {dimension_semantics = [#tpu.dimension_semantics<arbitrary>], iteration_bounds = array<i64: 2>, scalar_prefetch = 0 : i64, scratch_operands = 1 : i64, tpu.core_type = #tpu.core_type<tc>, window_params = [{pipeline_mode = #tpu.pipeline_mode<synchronous>, transform_indices = @transform_0, window_bounds = array<i64: 16, 1>}, {pipeline_mode = #tpu.pipeline_mode<synchronous>, transform_indices = @transform_1, window_bounds = array<i64: 16, 1>}, {pipeline_mode = #tpu.pipeline_mode<synchronous>, transform_indices = @transform_2, window_bounds = array<i64: 2, 8>}, {pipeline_mode = #tpu.pipeline_mode<synchronous>, transform_indices = @transform_3, window_bounds = array<i64: 1024, 128>}, {pipeline_mode = #tpu.pipeline_mode<synchronous>, transform_indices = @transform_4, window_bounds = array<i64: 16, 128>}, {pipeline_mode = #tpu.pipeline_mode<synchronous>, transform_indices = @transform_5, window_bounds = array<i64: 2, 128>}, {pipeline_mode = #tpu.pipeline_mode<synchronous>, transform_indices = @transform_6, window_bounds = array<i64: 1, 128>}, {pipeline_mode = #tpu.pipeline_mode<synchronous>, transform_indices = @transform_7, window_bounds = array<i64: 1, 128>}, {transform_indices = @transform_8, window_bounds = array<i64: 1, 128, 384>}, {transform_indices = @transform_9, window_bounds = array<i64: 1, 1, 384>}, {transform_indices = @transform_10, window_bounds = array<i64: 1, 128, 128>}, {transform_indices = @transform_11, window_bounds = array<i64: 1, 1, 128>}, {transform_indices = @transform_12, window_bounds = array<i64: 1, 1, 128>}, {transform_indices = @transform_13, window_bounds = array<i64: 1, 1, 128>}, {transform_indices = @transform_14, window_bounds = array<i64: 1, 128, 256>}, {transform_indices = @transform_15, window_bounds = array<i64: 1, 1, 256>}, {transform_indices = @transform_16, window_bounds = array<i64: 1, 256, 128>}, {transform_indices = @transform_17, window_bounds = array<i64: 1, 1, 128>}, {transform_indices = @transform_18, window_bounds = array<i64: 1, 1, 128>}, {transform_indices = @transform_19, window_bounds = array<i64: 1, 1, 128>}, {pipeline_mode = #tpu.pipeline_mode<synchronous>, transform_indices = @transform_20, window_bounds = array<i64: 128, 128>}, {pipeline_mode = #tpu.pipeline_mode<synchronous>, transform_indices = @transform_21, window_bounds = array<i64: 1, 128>}, {pipeline_mode = #tpu.pipeline_mode<synchronous>, transform_indices = @transform_22, window_bounds = array<i64: 128, 256>}, {pipeline_mode = #tpu.pipeline_mode<synchronous>, transform_indices = @transform_23, window_bounds = array<i64: 1, 256>}, {pipeline_mode = #tpu.pipeline_mode<synchronous>, transform_indices = @transform_24, window_bounds = array<i64: 2, 256>}]} {
    %c0_i32 = arith.constant 0 : i32
    %0 = arith.cmpi eq, %arg0, %c0_i32 : i32
    %1 = arith.extui %0 : i1 to i32
    %c0_i32_0 = arith.constant 0 : i32
    %2 = arith.cmpi ne, %1, %c0_i32_0 : i32
    scf.if %2 {
      %c0_82 = arith.constant 0 : index
      %c0_83 = arith.constant 0 : index
      %210 = vector.load %arg1[%c0_82, %c0_83] : memref<16x1xi32, #tpu.memory_space<vmem>>, vector<16x1xi32>
      %211 = tpu.iota {dimensions = array<i32: 1>} : vector<16x1024xi32>
      %212 = vector.broadcast %210 : vector<16x1xi32> to vector<16x1024xi32>
      %213 = arith.cmpi eq, %212, %211 : vector<16x1024xi32>
      %214 = arith.extui %213 : vector<16x1024xi1> to vector<16x1024xi32>
      %215 = arith.sitofp %214 : vector<16x1024xi32> to vector<16x1024xf32>
      %216 = arith.truncf %215 : vector<16x1024xf32> to vector<16x1024xbf16>
      %c0_84 = arith.constant 0 : index
      %c0_85 = arith.constant 0 : index
      %217 = vector.load %arg4[%c0_84, %c0_85] : memref<1024x128xbf16, #tpu.memory_space<vmem>>, vector<1024x128xbf16>
      %cst_86 = arith.constant dense<0.000000e+00> : vector<16x128xf32>
      %218 = tpu.matmul %216, %217, %cst_86 {dimension_numbers = #tpu.dot_dimension_numbers<[1], [0], [0], [1], [0, 0, 1, 1], [], []>} : vector<16x1024xbf16>, vector<1024x128xbf16>, vector<16x128xf32> -> vector<16x128xf32>
      %c0_87 = arith.constant 0 : index
      %c0_88 = arith.constant 0 : index
      %219 = vector.load %arg5[%c0_87, %c0_88] : memref<16x128xf32, #tpu.memory_space<vmem>>, vector<8x128xf32>
      %220 = tpu.concatenate %219, %219 in 0 : vector<8x128xf32>, vector<8x128xf32> -> vector<16x128xf32>
      %c0_89 = arith.constant 0 : index
      %c0_90 = arith.constant 0 : index
      %221 = vector.load %arg2[%c0_89, %c0_90] : memref<16x1xi32, #tpu.memory_space<vmem>>, vector<16x1xi32>
      %c0_i32_91 = arith.constant 0 : i32
      %222 = vector.broadcast %c0_i32_91 : i32 to vector<16x1xi32>
      %223 = arith.cmpi eq, %221, %222 : vector<16x1xi32>
      %c0_92 = arith.constant 0 : index
      %c0_93 = arith.constant 0 : index
      %224 = vector.load %arg6[%c0_92, %c0_93] : memref<2x128xf32, #tpu.memory_space<vmem>>, vector<1x128xf32>
      %c1 = arith.constant 1 : index
      %c0_94 = arith.constant 0 : index
      %225 = vector.load %arg6[%c1, %c0_94] : memref<2x128xf32, #tpu.memory_space<vmem>>, vector<1x128xf32>
      %226 = vector.shape_cast %223 : vector<16x1xi1> to vector<16x1xi1>
      %227 = vector.broadcast %226 : vector<16x1xi1> to vector<16x128xi1>
      %228 = vector.shape_cast %224 : vector<1x128xf32> to vector<1x128xf32>
      %229 = vector.broadcast %228 : vector<1x128xf32> to vector<16x128xf32>
      %230 = vector.shape_cast %225 : vector<1x128xf32> to vector<1x128xf32>
      %231 = vector.broadcast %230 : vector<1x128xf32> to vector<16x128xf32>
      %232 = arith.select %227, %229, %231 : vector<16x128xi1>, vector<16x128xf32>
      %233 = arith.addf %218, %220 : vector<16x128xf32>
      %234 = arith.addf %233, %232 : vector<16x128xf32>
      %c0_95 = arith.constant 0 : index
      %c0_96 = arith.constant 0 : index
      %235 = vector.load %arg7[%c0_95, %c0_96] : memref<1x128xf32, #tpu.memory_space<vmem>>, vector<1x128xf32>
      %c0_97 = arith.constant 0 : index
      %c0_98 = arith.constant 0 : index
      %236 = vector.load %arg8[%c0_97, %c0_98] : memref<1x128xf32, #tpu.memory_space<vmem>>, vector<1x128xf32>
      %cst_99 = arith.constant dense<0.000000e+00> : vector<16xf32>
      %237 = vector.multi_reduction <add>, %234, %cst_99 [1] : vector<16x128xf32> to vector<16xf32>
      %238 = vector.shape_cast %237 : vector<16xf32> to vector<16x1xf32>
      %cst_100 = arith.constant 1.280000e+02 : f32
      %239 = vector.broadcast %cst_100 : f32 to vector<16x1xf32>
      %240 = arith.divf %238, %239 : vector<16x1xf32>
      %241 = vector.broadcast %240 : vector<16x1xf32> to vector<16x128xf32>
      %242 = arith.subf %234, %241 : vector<16x128xf32>
      %243 = arith.mulf %242, %242 : vector<16x128xf32>
      %cst_101 = arith.constant dense<0.000000e+00> : vector<16xf32>
      %244 = vector.multi_reduction <add>, %243, %cst_101 [1] : vector<16x128xf32> to vector<16xf32>
      %245 = vector.shape_cast %244 : vector<16xf32> to vector<16x1xf32>
      %cst_102 = arith.constant 1.280000e+02 : f32
      %246 = vector.broadcast %cst_102 : f32 to vector<16x1xf32>
      %247 = arith.divf %245, %246 : vector<16x1xf32>
      %248 = vector.broadcast %240 : vector<16x1xf32> to vector<16x128xf32>
      %249 = arith.subf %234, %248 : vector<16x128xf32>
      %cst_103 = arith.constant 9.99999996E-13 : f32
      %250 = vector.broadcast %cst_103 : f32 to vector<16x1xf32>
      %251 = arith.addf %247, %250 : vector<16x1xf32>
      %252 = math.rsqrt %251 : vector<16x1xf32>
      %253 = vector.broadcast %252 : vector<16x1xf32> to vector<16x128xf32>
      %254 = arith.mulf %249, %253 : vector<16x128xf32>
      %255 = vector.broadcast %235 : vector<1x128xf32> to vector<16x128xf32>
      %256 = arith.mulf %254, %255 : vector<16x128xf32>
      %257 = vector.broadcast %236 : vector<1x128xf32> to vector<16x128xf32>
      %258 = arith.addf %256, %257 : vector<16x128xf32>
      %c0_104 = arith.constant 0 : index
      %c0_105 = arith.constant 0 : index
      %259 = vector.load %arg26[%c0_104, %c0_105] : memref<16x128xf32, #tpu.memory_space<vmem>>, vector<16x128xf32>
      tpu.vector_store %arg26[%c0_104, %c0_105], %258 {strides = array<i32>} : memref<16x128xf32, #tpu.memory_space<vmem>>, vector<16x128xf32>,
    } else {
    }
    %c0 = arith.constant 0 : index
    %c0_1 = arith.constant 0 : index
    %3 = vector.load %arg26[%c0, %c0_1] : memref<16x128xf32, #tpu.memory_space<vmem>>, vector<16x128xf32>
    %c0_2 = arith.constant 0 : index
    %c0_3 = arith.constant 0 : index
    %4 = vector.load %arg3[%c0_2, %c0_3] : memref<2x8xi32, #tpu.memory_space<vmem>>, vector<2x8xi32>
    %5 = arith.sitofp %4 : vector<2x8xi32> to vector<2x8xf32>
    %cst = arith.constant 1.000000e+00 : f32
    %6 = vector.broadcast %cst : f32 to vector<2x8xf32>
    %7 = arith.subf %6, %5 : vector<2x8xf32>
    %cst_4 = arith.constant -1.000000e+09 : f32
    %8 = vector.broadcast %cst_4 : f32 to vector<2x8xf32>
    %9 = arith.mulf %7, %8 : vector<2x8xf32>
    %10 = vector.shape_cast %9 : vector<2x8xf32> to vector<2x1x8xf32>
    %11 = arith.truncf %3 : vector<16x128xf32> to vector<16x128xbf16>
    %c0_5 = arith.constant 0 : index
    %c0_6 = arith.constant 0 : index
    %c0_7 = arith.constant 0 : index
    %12 = vector.load %arg9[%c0_5, %c0_6, %c0_7] : memref<1x128x384xbf16, #tpu.memory_space<vmem>>, vector<1x128x384xbf16>
    %13 = vector.shape_cast %12 : vector<1x128x384xbf16> to vector<128x384xbf16>
    %cst_8 = arith.constant dense<0.000000e+00> : vector<16x384xf32>
    %14 = tpu.matmul %11, %13, %cst_8 {dimension_numbers = #tpu.dot_dimension_numbers<[1], [0], [0], [1], [0, 0, 1, 1], [], []>} : vector<16x128xbf16>, vector<128x384xbf16>, vector<16x384xf32> -> vector<16x384xf32>
    %c0_9 = arith.constant 0 : index
    %c0_10 = arith.constant 0 : index
    %c0_11 = arith.constant 0 : index
    %15 = vector.load %arg10[%c0_9, %c0_10, %c0_11] : memref<1x1x384xf32, #tpu.memory_space<vmem>>, vector<1x1x384xf32>
    %16 = vector.shape_cast %15 : vector<1x1x384xf32> to vector<1x384xf32>
    %17 = vector.broadcast %16 : vector<1x384xf32> to vector<16x384xf32>
    %18 = arith.addf %14, %17 : vector<16x384xf32>
    %19 = vector.extract_strided_slice %18 {offsets = [0, 0], sizes = [16, 128], strides = [1, 1]} : vector<16x384xf32> to vector<16x128xf32>
    %20 = vector.extract_strided_slice %18 {offsets = [0, 128], sizes = [16, 128], strides = [1, 1]} : vector<16x384xf32> to vector<16x128xf32>
    %21 = vector.extract_strided_slice %18 {offsets = [0, 256], sizes = [16, 128], strides = [1, 1]} : vector<16x384xf32> to vector<16x128xf32>
    %22 = vector.extract_strided_slice %19 {offsets = [0, 0], sizes = [16, 32], strides = [1, 1]} : vector<16x128xf32> to vector<16x32xf32>
    %23 = vector.shape_cast %22 : vector<16x32xf32> to vector<2x8x32xf32>
    %24 = vector.extract_strided_slice %20 {offsets = [0, 0], sizes = [16, 32], strides = [1, 1]} : vector<16x128xf32> to vector<16x32xf32>
    %25 = vector.shape_cast %24 : vector<16x32xf32> to vector<2x8x32xf32>
    %26 = vector.extract_strided_slice %21 {offsets = [0, 0], sizes = [16, 32], strides = [1, 1]} : vector<16x128xf32> to vector<16x32xf32>
    %27 = vector.shape_cast %26 : vector<16x32xf32> to vector<2x8x32xf32>
    "tpu.trace_start"() <{level = 10 : i32, message = "bqd,bkd->bqk"}> : () -> ()
    %cst_12 = arith.constant dense<0.000000e+00> : vector<2x8x8xf32>
    %28 = tpu.matmul %23, %25, %cst_12 {dimension_numbers = #tpu.dot_dimension_numbers<[2], [2], [1], [1], [0, 0, 0, 1, 1, 1], [0], [0]>} : vector<2x8x32xf32>, vector<2x8x32xf32>, vector<2x8x8xf32> -> vector<2x8x8xf32>
    "tpu.trace_stop"() : () -> ()
    %cst_13 = arith.constant 0.176776692 : f32
    %29 = vector.broadcast %cst_13 : f32 to vector<2x8x8xf32>
    %30 = arith.mulf %28, %29 : vector<2x8x8xf32>
    %31 = vector.broadcast %10 : vector<2x1x8xf32> to vector<2x8x8xf32>
    %32 = arith.addf %30, %31 : vector<2x8x8xf32>
    %cst_14 = arith.constant dense<0xFF800000> : vector<2x8xf32>
    %33 = vector.multi_reduction <maximumf>, %32, %cst_14 [2] : vector<2x8x8xf32> to vector<2x8xf32>
    %34 = vector.shape_cast %33 : vector<2x8xf32> to vector<2x8x1xf32>
    %35 = vector.broadcast %34 : vector<2x8x1xf32> to vector<2x8x8xf32>
    %36 = arith.subf %32, %35 : vector<2x8x8xf32>
    %37 = math.exp %36 : vector<2x8x8xf32>
    %cst_15 = arith.constant dense<0.000000e+00> : vector<2x8xf32>
    %38 = vector.multi_reduction <add>, %37, %cst_15 [2] : vector<2x8x8xf32> to vector<2x8xf32>
    %39 = vector.shape_cast %38 : vector<2x8xf32> to vector<2x8x1xf32>
    %40 = tpu.reciprocal %39 {approx = true} : vector<2x8x1xf32> -> vector<2x8x1xf32>
    %41 = vector.broadcast %40 : vector<2x8x1xf32> to vector<2x8x8xf32>
    %42 = arith.mulf %37, %41 : vector<2x8x8xf32>
    "tpu.trace_start"() <{level = 10 : i32, message = "bqk,bkd->bqd"}> : () -> ()
    %cst_16 = arith.constant dense<0.000000e+00> : vector<2x8x32xf32>
    %43 = tpu.matmul %42, %27, %cst_16 {dimension_numbers = #tpu.dot_dimension_numbers<[2], [1], [1], [2], [0, 0, 0, 1, 1, 2], [0], [0]>} : vector<2x8x8xf32>, vector<2x8x32xf32>, vector<2x8x32xf32> -> vector<2x8x32xf32>
    "tpu.trace_stop"() : () -> ()
    %44 = vector.shape_cast %43 : vector<2x8x32xf32> to vector<16x32xf32>
    %45 = vector.extract_strided_slice %19 {offsets = [0, 32], sizes = [16, 32], strides = [1, 1]} : vector<16x128xf32> to vector<16x32xf32>
    %46 = vector.shape_cast %45 : vector<16x32xf32> to vector<2x8x32xf32>
    %47 = vector.extract_strided_slice %20 {offsets = [0, 32], sizes = [16, 32], strides = [1, 1]} : vector<16x128xf32> to vector<16x32xf32>
    %48 = vector.shape_cast %47 : vector<16x32xf32> to vector<2x8x32xf32>
    %49 = vector.extract_strided_slice %21 {offsets = [0, 32], sizes = [16, 32], strides = [1, 1]} : vector<16x128xf32> to vector<16x32xf32>
    %50 = vector.shape_cast %49 : vector<16x32xf32> to vector<2x8x32xf32>
    "tpu.trace_start"() <{level = 10 : i32, message = "bqd,bkd->bqk"}> : () -> ()
    %cst_17 = arith.constant dense<0.000000e+00> : vector<2x8x8xf32>
    %51 = tpu.matmul %46, %48, %cst_17 {dimension_numbers = #tpu.dot_dimension_numbers<[2], [2], [1], [1], [0, 0, 0, 1, 1, 1], [0], [0]>} : vector<2x8x32xf32>, vector<2x8x32xf32>, vector<2x8x8xf32> -> vector<2x8x8xf32>
    "tpu.trace_stop"() : () -> ()
    %cst_18 = arith.constant 0.176776692 : f32
    %52 = vector.broadcast %cst_18 : f32 to vector<2x8x8xf32>
    %53 = arith.mulf %51, %52 : vector<2x8x8xf32>
    %54 = vector.broadcast %10 : vector<2x1x8xf32> to vector<2x8x8xf32>
    %55 = arith.addf %53, %54 : vector<2x8x8xf32>
    %cst_19 = arith.constant dense<0xFF800000> : vector<2x8xf32>
    %56 = vector.multi_reduction <maximumf>, %55, %cst_19 [2] : vector<2x8x8xf32> to vector<2x8xf32>
    %57 = vector.shape_cast %56 : vector<2x8xf32> to vector<2x8x1xf32>
    %58 = vector.broadcast %57 : vector<2x8x1xf32> to vector<2x8x8xf32>
    %59 = arith.subf %55, %58 : vector<2x8x8xf32>
    %60 = math.exp %59 : vector<2x8x8xf32>
    %cst_20 = arith.constant dense<0.000000e+00> : vector<2x8xf32>
    %61 = vector.multi_reduction <add>, %60, %cst_20 [2] : vector<2x8x8xf32> to vector<2x8xf32>
    %62 = vector.shape_cast %61 : vector<2x8xf32> to vector<2x8x1xf32>
    %63 = tpu.reciprocal %62 {approx = true} : vector<2x8x1xf32> -> vector<2x8x1xf32>
    %64 = vector.broadcast %63 : vector<2x8x1xf32> to vector<2x8x8xf32>
    %65 = arith.mulf %60, %64 : vector<2x8x8xf32>
    "tpu.trace_start"() <{level = 10 : i32, message = "bqk,bkd->bqd"}> : () -> ()
    %cst_21 = arith.constant dense<0.000000e+00> : vector<2x8x32xf32>
    %66 = tpu.matmul %65, %50, %cst_21 {dimension_numbers = #tpu.dot_dimension_numbers<[2], [1], [1], [2], [0, 0, 0, 1, 1, 2], [0], [0]>} : vector<2x8x8xf32>, vector<2x8x32xf32>, vector<2x8x32xf32> -> vector<2x8x32xf32>
    "tpu.trace_stop"() : () -> ()
    %67 = vector.shape_cast %66 : vector<2x8x32xf32> to vector<16x32xf32>
    %68 = vector.extract_strided_slice %19 {offsets = [0, 64], sizes = [16, 32], strides = [1, 1]} : vector<16x128xf32> to vector<16x32xf32>
    %69 = vector.shape_cast %68 : vector<16x32xf32> to vector<2x8x32xf32>
    %70 = vector.extract_strided_slice %20 {offsets = [0, 64], sizes = [16, 32], strides = [1, 1]} : vector<16x128xf32> to vector<16x32xf32>
    %71 = vector.shape_cast %70 : vector<16x32xf32> to vector<2x8x32xf32>
    %72 = vector.extract_strided_slice %21 {offsets = [0, 64], sizes = [16, 32], strides = [1, 1]} : vector<16x128xf32> to vector<16x32xf32>
    %73 = vector.shape_cast %72 : vector<16x32xf32> to vector<2x8x32xf32>
    "tpu.trace_start"() <{level = 10 : i32, message = "bqd,bkd->bqk"}> : () -> ()
    %cst_22 = arith.constant dense<0.000000e+00> : vector<2x8x8xf32>
    %74 = tpu.matmul %69, %71, %cst_22 {dimension_numbers = #tpu.dot_dimension_numbers<[2], [2], [1], [1], [0, 0, 0, 1, 1, 1], [0], [0]>} : vector<2x8x32xf32>, vector<2x8x32xf32>, vector<2x8x8xf32> -> vector<2x8x8xf32>
    "tpu.trace_stop"() : () -> ()
    %cst_23 = arith.constant 0.176776692 : f32
    %75 = vector.broadcast %cst_23 : f32 to vector<2x8x8xf32>
    %76 = arith.mulf %74, %75 : vector<2x8x8xf32>
    %77 = vector.broadcast %10 : vector<2x1x8xf32> to vector<2x8x8xf32>
    %78 = arith.addf %76, %77 : vector<2x8x8xf32>
    %cst_24 = arith.constant dense<0xFF800000> : vector<2x8xf32>
    %79 = vector.multi_reduction <maximumf>, %78, %cst_24 [2] : vector<2x8x8xf32> to vector<2x8xf32>
    %80 = vector.shape_cast %79 : vector<2x8xf32> to vector<2x8x1xf32>
    %81 = vector.broadcast %80 : vector<2x8x1xf32> to vector<2x8x8xf32>
    %82 = arith.subf %78, %81 : vector<2x8x8xf32>
    %83 = math.exp %82 : vector<2x8x8xf32>
    %cst_25 = arith.constant dense<0.000000e+00> : vector<2x8xf32>
    %84 = vector.multi_reduction <add>, %83, %cst_25 [2] : vector<2x8x8xf32> to vector<2x8xf32>
    %85 = vector.shape_cast %84 : vector<2x8xf32> to vector<2x8x1xf32>
    %86 = tpu.reciprocal %85 {approx = true} : vector<2x8x1xf32> -> vector<2x8x1xf32>
    %87 = vector.broadcast %86 : vector<2x8x1xf32> to vector<2x8x8xf32>
    %88 = arith.mulf %83, %87 : vector<2x8x8xf32>
    "tpu.trace_start"() <{level = 10 : i32, message = "bqk,bkd->bqd"}> : () -> ()
    %cst_26 = arith.constant dense<0.000000e+00> : vector<2x8x32xf32>
    %89 = tpu.matmul %88, %73, %cst_26 {dimension_numbers = #tpu.dot_dimension_numbers<[2], [1], [1], [2], [0, 0, 0, 1, 1, 2], [0], [0]>} : vector<2x8x8xf32>, vector<2x8x32xf32>, vector<2x8x32xf32> -> vector<2x8x32xf32>
    "tpu.trace_stop"() : () -> ()
    %90 = vector.shape_cast %89 : vector<2x8x32xf32> to vector<16x32xf32>
    %91 = vector.extract_strided_slice %19 {offsets = [0, 96], sizes = [16, 32], strides = [1, 1]} : vector<16x128xf32> to vector<16x32xf32>
    %92 = vector.shape_cast %91 : vector<16x32xf32> to vector<2x8x32xf32>
    %93 = vector.extract_strided_slice %20 {offsets = [0, 96], sizes = [16, 32], strides = [1, 1]} : vector<16x128xf32> to vector<16x32xf32>
    %94 = vector.shape_cast %93 : vector<16x32xf32> to vector<2x8x32xf32>
    %95 = vector.extract_strided_slice %21 {offsets = [0, 96], sizes = [16, 32], strides = [1, 1]} : vector<16x128xf32> to vector<16x32xf32>
    %96 = vector.shape_cast %95 : vector<16x32xf32> to vector<2x8x32xf32>
    "tpu.trace_start"() <{level = 10 : i32, message = "bqd,bkd->bqk"}> : () -> ()
    %cst_27 = arith.constant dense<0.000000e+00> : vector<2x8x8xf32>
    %97 = tpu.matmul %92, %94, %cst_27 {dimension_numbers = #tpu.dot_dimension_numbers<[2], [2], [1], [1], [0, 0, 0, 1, 1, 1], [0], [0]>} : vector<2x8x32xf32>, vector<2x8x32xf32>, vector<2x8x8xf32> -> vector<2x8x8xf32>
    "tpu.trace_stop"() : () -> ()
    %cst_28 = arith.constant 0.176776692 : f32
    %98 = vector.broadcast %cst_28 : f32 to vector<2x8x8xf32>
    %99 = arith.mulf %97, %98 : vector<2x8x8xf32>
    %100 = vector.broadcast %10 : vector<2x1x8xf32> to vector<2x8x8xf32>
    %101 = arith.addf %99, %100 : vector<2x8x8xf32>
    %cst_29 = arith.constant dense<0xFF800000> : vector<2x8xf32>
    %102 = vector.multi_reduction <maximumf>, %101, %cst_29 [2] : vector<2x8x8xf32> to vector<2x8xf32>
    %103 = vector.shape_cast %102 : vector<2x8xf32> to vector<2x8x1xf32>
    %104 = vector.broadcast %103 : vector<2x8x1xf32> to vector<2x8x8xf32>
    %105 = arith.subf %101, %104 : vector<2x8x8xf32>
    %106 = math.exp %105 : vector<2x8x8xf32>
    %cst_30 = arith.constant dense<0.000000e+00> : vector<2x8xf32>
    %107 = vector.multi_reduction <add>, %106, %cst_30 [2] : vector<2x8x8xf32> to vector<2x8xf32>
    %108 = vector.shape_cast %107 : vector<2x8xf32> to vector<2x8x1xf32>
    %109 = tpu.reciprocal %108 {approx = true} : vector<2x8x1xf32> -> vector<2x8x1xf32>
    %110 = vector.broadcast %109 : vector<2x8x1xf32> to vector<2x8x8xf32>
    %111 = arith.mulf %106, %110 : vector<2x8x8xf32>
    "tpu.trace_start"() <{level = 10 : i32, message = "bqk,bkd->bqd"}> : () -> ()
    %cst_31 = arith.constant dense<0.000000e+00> : vector<2x8x32xf32>
    %112 = tpu.matmul %111, %96, %cst_31 {dimension_numbers = #tpu.dot_dimension_numbers<[2], [1], [1], [2], [0, 0, 0, 1, 1, 2], [0], [0]>} : vector<2x8x8xf32>, vector<2x8x32xf32>, vector<2x8x32xf32> -> vector<2x8x32xf32>
    "tpu.trace_stop"() : () -> ()
    %113 = vector.shape_cast %112 : vector<2x8x32xf32> to vector<16x32xf32>
    %114 = tpu.concatenate %44, %67, %90, %113 in 1 : vector<16x32xf32>, vector<16x32xf32>, vector<16x32xf32>, vector<16x32xf32> -> vector<16x128xf32>
    %115 = arith.truncf %114 : vector<16x128xf32> to vector<16x128xbf16>
    %c0_32 = arith.constant 0 : index
    %c0_33 = arith.constant 0 : index
    %c0_34 = arith.constant 0 : index
    %116 = vector.load %arg11[%c0_32, %c0_33, %c0_34] : memref<1x128x128xbf16, #tpu.memory_space<vmem>>, vector<1x128x128xbf16>
    %117 = vector.shape_cast %116 : vector<1x128x128xbf16> to vector<128x128xbf16>
    %cst_35 = arith.constant dense<0.000000e+00> : vector<16x128xf32>
    %118 = tpu.matmul %115, %117, %cst_35 {dimension_numbers = #tpu.dot_dimension_numbers<[1], [0], [0], [1], [0, 0, 1, 1], [], []>} : vector<16x128xbf16>, vector<128x128xbf16>, vector<16x128xf32> -> vector<16x128xf32>
    %c0_36 = arith.constant 0 : index
    %c0_37 = arith.constant 0 : index
    %c0_38 = arith.constant 0 : index
    %119 = vector.load %arg12[%c0_36, %c0_37, %c0_38] : memref<1x1x128xf32, #tpu.memory_space<vmem>>, vector<1x1x128xf32>
    %120 = vector.shape_cast %119 : vector<1x1x128xf32> to vector<1x128xf32>
    %121 = vector.broadcast %120 : vector<1x128xf32> to vector<16x128xf32>
    %122 = arith.addf %118, %121 : vector<16x128xf32>
    %123 = arith.addf %122, %3 : vector<16x128xf32>
    %c0_39 = arith.constant 0 : index
    %c0_40 = arith.constant 0 : index
    %c0_41 = arith.constant 0 : index
    %124 = vector.load %arg13[%c0_39, %c0_40, %c0_41] : memref<1x1x128xf32, #tpu.memory_space<vmem>>, vector<1x1x128xf32>
    %125 = vector.shape_cast %124 : vector<1x1x128xf32> to vector<1x128xf32>
    %c0_42 = arith.constant 0 : index
    %c0_43 = arith.constant 0 : index
    %c0_44 = arith.constant 0 : index
    %126 = vector.load %arg14[%c0_42, %c0_43, %c0_44] : memref<1x1x128xf32, #tpu.memory_space<vmem>>, vector<1x1x128xf32>
    %127 = vector.shape_cast %126 : vector<1x1x128xf32> to vector<1x128xf32>
    %cst_45 = arith.constant dense<0.000000e+00> : vector<16xf32>
    %128 = vector.multi_reduction <add>, %123, %cst_45 [1] : vector<16x128xf32> to vector<16xf32>
    %129 = vector.shape_cast %128 : vector<16xf32> to vector<16x1xf32>
    %cst_46 = arith.constant 1.280000e+02 : f32
    %130 = vector.broadcast %cst_46 : f32 to vector<16x1xf32>
    %131 = arith.divf %129, %130 : vector<16x1xf32>
    %132 = vector.broadcast %131 : vector<16x1xf32> to vector<16x128xf32>
    %133 = arith.subf %123, %132 : vector<16x128xf32>
    %134 = arith.mulf %133, %133 : vector<16x128xf32>
    %cst_47 = arith.constant dense<0.000000e+00> : vector<16xf32>
    %135 = vector.multi_reduction <add>, %134, %cst_47 [1] : vector<16x128xf32> to vector<16xf32>
    %136 = vector.shape_cast %135 : vector<16xf32> to vector<16x1xf32>
    %cst_48 = arith.constant 1.280000e+02 : f32
    %137 = vector.broadcast %cst_48 : f32 to vector<16x1xf32>
    %138 = arith.divf %136, %137 : vector<16x1xf32>
    %139 = vector.broadcast %131 : vector<16x1xf32> to vector<16x128xf32>
    %140 = arith.subf %123, %139 : vector<16x128xf32>
    %cst_49 = arith.constant 9.99999996E-13 : f32
    %141 = vector.broadcast %cst_49 : f32 to vector<16x1xf32>
    %142 = arith.addf %138, %141 : vector<16x1xf32>
    %143 = math.rsqrt %142 : vector<16x1xf32>
    %144 = vector.broadcast %143 : vector<16x1xf32> to vector<16x128xf32>
    %145 = arith.mulf %140, %144 : vector<16x128xf32>
    %146 = vector.broadcast %125 : vector<1x128xf32> to vector<16x128xf32>
    %147 = arith.mulf %145, %146 : vector<16x128xf32>
    %148 = vector.broadcast %127 : vector<1x128xf32> to vector<16x128xf32>
    %149 = arith.addf %147, %148 : vector<16x128xf32>
    %150 = arith.truncf %149 : vector<16x128xf32> to vector<16x128xbf16>
    %c0_50 = arith.constant 0 : index
    %c0_51 = arith.constant 0 : index
    %c0_52 = arith.constant 0 : index
    %151 = vector.load %arg15[%c0_50, %c0_51, %c0_52] : memref<1x128x256xbf16, #tpu.memory_space<vmem>>, vector<1x128x256xbf16>
    %152 = vector.shape_cast %151 : vector<1x128x256xbf16> to vector<128x256xbf16>
    %cst_53 = arith.constant dense<0.000000e+00> : vector<16x256xf32>
    %153 = tpu.matmul %150, %152, %cst_53 {dimension_numbers = #tpu.dot_dimension_numbers<[1], [0], [0], [1], [0, 0, 1, 1], [], []>} : vector<16x128xbf16>, vector<128x256xbf16>, vector<16x256xf32> -> vector<16x256xf32>
    %c0_54 = arith.constant 0 : index
    %c0_55 = arith.constant 0 : index
    %c0_56 = arith.constant 0 : index
    %154 = vector.load %arg16[%c0_54, %c0_55, %c0_56] : memref<1x1x256xf32, #tpu.memory_space<vmem>>, vector<1x1x256xf32>
    %155 = vector.shape_cast %154 : vector<1x1x256xf32> to vector<1x256xf32>
    %156 = vector.broadcast %155 : vector<1x256xf32> to vector<16x256xf32>
    %157 = arith.addf %153, %156 : vector<16x256xf32>
    %158 = arith.mulf %157, %157 : vector<16x256xf32>
    %159 = arith.mulf %157, %158 : vector<16x256xf32>
    %cst_57 = arith.constant 4.471500e-02 : f32
    %160 = vector.broadcast %cst_57 : f32 to vector<16x256xf32>
    %161 = arith.mulf %160, %159 : vector<16x256xf32>
    %162 = arith.addf %157, %161 : vector<16x256xf32>
    %cst_58 = arith.constant 0.797884583 : f32
    %163 = vector.broadcast %cst_58 : f32 to vector<16x256xf32>
    %164 = arith.mulf %163, %162 : vector<16x256xf32>
    %165 = math.tanh %164 : vector<16x256xf32>
    %cst_59 = arith.constant 1.000000e+00 : f32
    %166 = vector.broadcast %cst_59 : f32 to vector<16x256xf32>
    %167 = arith.addf %166, %165 : vector<16x256xf32>
    %cst_60 = arith.constant 5.000000e-01 : f32
    %168 = vector.broadcast %cst_60 : f32 to vector<16x256xf32>
    %169 = arith.mulf %168, %167 : vector<16x256xf32>
    %170 = arith.mulf %157, %169 : vector<16x256xf32>
    %171 = arith.truncf %170 : vector<16x256xf32> to vector<16x256xbf16>
    %c0_61 = arith.constant 0 : index
    %c0_62 = arith.constant 0 : index
    %c0_63 = arith.constant 0 : index
    %172 = vector.load %arg17[%c0_61, %c0_62, %c0_63] : memref<1x256x128xbf16, #tpu.memory_space<vmem>>, vector<1x256x128xbf16>
    %173 = vector.shape_cast %172 : vector<1x256x128xbf16> to vector<256x128xbf16>
    %cst_64 = arith.constant dense<0.000000e+00> : vector<16x128xf32>
    %174 = tpu.matmul %171, %173, %cst_64 {dimension_numbers = #tpu.dot_dimension_numbers<[1], [0], [0], [1], [0, 0, 1, 1], [], []>} : vector<16x256xbf16>, vector<256x128xbf16>, vector<16x128xf32> -> vector<16x128xf32>
    %c0_65 = arith.constant 0 : index
    %c0_66 = arith.constant 0 : index
    %c0_67 = arith.constant 0 : index
    %175 = vector.load %arg18[%c0_65, %c0_66, %c0_67] : memref<1x1x128xf32, #tpu.memory_space<vmem>>, vector<1x1x128xf32>
    %176 = vector.shape_cast %175 : vector<1x1x128xf32> to vector<1x128xf32>
    %177 = vector.broadcast %176 : vector<1x128xf32> to vector<16x128xf32>
    %178 = arith.addf %174, %177 : vector<16x128xf32>
    %179 = arith.addf %178, %149 : vector<16x128xf32>
    %c0_68 = arith.constant 0 : index
    %c0_69 = arith.constant 0 : index
    %c0_70 = arith.constant 0 : index
    %180 = vector.load %arg19[%c0_68, %c0_69, %c0_70] : memref<1x1x128xf32, #tpu.memory_space<vmem>>, vector<1x1x128xf32>
    %181 = vector.shape_cast %180 : vector<1x1x128xf32> to vector<1x128xf32>
    %c0_71 = arith.constant 0 : index
    %c0_72 = arith.constant 0 : index
    %c0_73 = arith.constant 0 : index
    %182 = vector.load %arg20[%c0_71, %c0_72, %c0_73] : memref<1x1x128xf32, #tpu.memory_space<vmem>>, vector<1x1x128xf32>
    %183 = vector.shape_cast %182 : vector<1x1x128xf32> to vector<1x128xf32>
    %cst_74 = arith.constant dense<0.000000e+00> : vector<16xf32>
    %184 = vector.multi_reduction <add>, %179, %cst_74 [1] : vector<16x128xf32> to vector<16xf32>
    %185 = vector.shape_cast %184 : vector<16xf32> to vector<16x1xf32>
    %cst_75 = arith.constant 1.280000e+02 : f32
    %186 = vector.broadcast %cst_75 : f32 to vector<16x1xf32>
    %187 = arith.divf %185, %186 : vector<16x1xf32>
    %188 = vector.broadcast %187 : vector<16x1xf32> to vector<16x128xf32>
    %189 = arith.subf %179, %188 : vector<16x128xf32>
    %190 = arith.mulf %189, %189 : vector<16x128xf32>
    %cst_76 = arith.constant dense<0.000000e+00> : vector<16xf32>
    %191 = vector.multi_reduction <add>, %190, %cst_76 [1] : vector<16x128xf32> to vector<16xf32>
    %192 = vector.shape_cast %191 : vector<16xf32> to vector<16x1xf32>
    %cst_77 = arith.constant 1.280000e+02 : f32
    %193 = vector.broadcast %cst_77 : f32 to vector<16x1xf32>
    %194 = arith.divf %192, %193 : vector<16x1xf32>
    %195 = vector.broadcast %187 : vector<16x1xf32> to vector<16x128xf32>
    %196 = arith.subf %179, %195 : vector<16x128xf32>
    %cst_78 = arith.constant 9.99999996E-13 : f32
    %197 = vector.broadcast %cst_78 : f32 to vector<16x1xf32>
    %198 = arith.addf %194, %197 : vector<16x1xf32>
    %199 = math.rsqrt %198 : vector<16x1xf32>
    %200 = vector.broadcast %199 : vector<16x1xf32> to vector<16x128xf32>
    %201 = arith.mulf %196, %200 : vector<16x128xf32>
    %202 = vector.broadcast %181 : vector<1x128xf32> to vector<16x128xf32>
    %203 = arith.mulf %201, %202 : vector<16x128xf32>
    %204 = vector.broadcast %183 : vector<1x128xf32> to vector<16x128xf32>
    %205 = arith.addf %203, %204 : vector<16x128xf32>
    %c0_79 = arith.constant 0 : index
    %c0_80 = arith.constant 0 : index
    %206 = vector.load %arg26[%c0_79, %c0_80] : memref<16x128xf32, #tpu.memory_space<vmem>>, vector<16x128xf32>
    tpu.vector_store %arg26[%c0_79, %c0_80], %205 {strides = array<i32>} : memref<16x128xf32, #tpu.memory_space<vmem>>, vector<16x128xf32>,
    %c1_i32 = arith.constant 1 : i32
    %207 = arith.cmpi eq, %arg0, %c1_i32 : i32
    %208 = arith.extui %207 : i1 to i32
    %c0_i32_81 = arith.constant 0 : i32
    %209 = arith.cmpi ne, %208, %c0_i32_81 : i32
    scf.if %209 {
      %c0_82 = arith.constant 0 : index
      %c0_83 = arith.constant 0 : index
      %210 = tpu.strided_load %arg26[%c0_82, %c0_83] {strides = array<i32: 8, 1>} : memref<16x128xf32, #tpu.memory_space<vmem>>, vector<2x128xf32>
      %211 = arith.truncf %210 : vector<2x128xf32> to vector<2x128xbf16>
      %c0_84 = arith.constant 0 : index
      %c0_85 = arith.constant 0 : index
      %212 = vector.load %arg21[%c0_84, %c0_85] : memref<128x128xbf16, #tpu.memory_space<vmem>>, vector<128x128xbf16>
      %cst_86 = arith.constant dense<0.000000e+00> : vector<2x128xf32>
      %213 = tpu.matmul %211, %212, %cst_86 {dimension_numbers = #tpu.dot_dimension_numbers<[1], [0], [0], [1], [0, 0, 1, 1], [], []>} : vector<2x128xbf16>, vector<128x128xbf16>, vector<2x128xf32> -> vector<2x128xf32>
      %c0_87 = arith.constant 0 : index
      %c0_88 = arith.constant 0 : index
      %214 = vector.load %arg22[%c0_87, %c0_88] : memref<1x128xf32, #tpu.memory_space<vmem>>, vector<1x128xf32>
      %215 = vector.broadcast %214 : vector<1x128xf32> to vector<2x128xf32>
      %216 = arith.addf %213, %215 : vector<2x128xf32>
      %217 = math.tanh %216 : vector<2x128xf32>
      %218 = arith.truncf %217 : vector<2x128xf32> to vector<2x128xbf16>
      %c0_89 = arith.constant 0 : index
      %c0_90 = arith.constant 0 : index
      %219 = vector.load %arg23[%c0_89, %c0_90] : memref<128x256xbf16, #tpu.memory_space<vmem>>, vector<128x256xbf16>
      %cst_91 = arith.constant dense<0.000000e+00> : vector<2x256xf32>
      %220 = tpu.matmul %218, %219, %cst_91 {dimension_numbers = #tpu.dot_dimension_numbers<[1], [0], [0], [1], [0, 0, 1, 1], [], []>} : vector<2x128xbf16>, vector<128x256xbf16>, vector<2x256xf32> -> vector<2x256xf32>
      %c0_92 = arith.constant 0 : index
      %c0_93 = arith.constant 0 : index
      %221 = vector.load %arg24[%c0_92, %c0_93] : memref<1x256xf32, #tpu.memory_space<vmem>>, vector<1x256xf32>
      %222 = vector.broadcast %221 : vector<1x256xf32> to vector<2x256xf32>
      %223 = arith.addf %220, %222 : vector<2x256xf32>
      %c0_94 = arith.constant 0 : index
      %c0_95 = arith.constant 0 : index
      %224 = vector.load %arg25[%c0_94, %c0_95] : memref<2x256xf32, #tpu.memory_space<vmem>>, vector<2x256xf32>
      tpu.vector_store %arg25[%c0_94, %c0_95], %223 {strides = array<i32>} : memref<2x256xf32, #tpu.memory_space<vmem>>, vector<2x256xf32>,
    } else {
    }
    return
  }
  func.func @transform_0(%arg0: i32) -> (i32, i32) {
    %c0_i32 = arith.constant 0 : i32
    %c0_i32_0 = arith.constant 0 : i32
    %c0_i32_1 = arith.constant 0 : i32
    return %c0_i32, %c0_i32_0 : i32, i32
  }
  func.func @transform_1(%arg0: i32) -> (i32, i32) {
    %c0_i32 = arith.constant 0 : i32
    %c0_i32_0 = arith.constant 0 : i32
    %c0_i32_1 = arith.constant 0 : i32
    return %c0_i32, %c0_i32_0 : i32, i32
  }
  func.func @transform_2(%arg0: i32) -> (i32, i32) {
    %c0_i32 = arith.constant 0 : i32
    %c0_i32_0 = arith.constant 0 : i32
    %c0_i32_1 = arith.constant 0 : i32
    return %c0_i32, %c0_i32_0 : i32, i32
  }
  func.func @transform_3(%arg0: i32) -> (i32, i32) {
    %c0_i32 = arith.constant 0 : i32
    %c0_i32_0 = arith.constant 0 : i32
    %c0_i32_1 = arith.constant 0 : i32
    return %c0_i32, %c0_i32_0 : i32, i32
  }
  func.func @transform_4(%arg0: i32) -> (i32, i32) {
    %c0_i32 = arith.constant 0 : i32
    %c0_i32_0 = arith.constant 0 : i32
    %c0_i32_1 = arith.constant 0 : i32
    return %c0_i32, %c0_i32_0 : i32, i32
  }
  func.func @transform_5(%arg0: i32) -> (i32, i32) {
    %c0_i32 = arith.constant 0 : i32
    %c0_i32_0 = arith.constant 0 : i32
    %c0_i32_1 = arith.constant 0 : i32
    return %c0_i32, %c0_i32_0 : i32, i32
  }
  func.func @transform_6(%arg0: i32) -> (i32, i32) {
    %c0_i32 = arith.constant 0 : i32
    %c0_i32_0 = arith.constant 0 : i32
    %c0_i32_1 = arith.constant 0 : i32
    return %c0_i32, %c0_i32_0 : i32, i32
  }
  func.func @transform_7(%arg0: i32) -> (i32, i32) {
    %c0_i32 = arith.constant 0 : i32
    %c0_i32_0 = arith.constant 0 : i32
    %c0_i32_1 = arith.constant 0 : i32
    return %c0_i32, %c0_i32_0 : i32, i32
  }
  func.func @transform_8(%arg0: i32) -> (i32, i32, i32) {
    %c0_i32 = arith.constant 0 : i32
    %c0_i32_0 = arith.constant 0 : i32
    %c0_i32_1 = arith.constant 0 : i32
    return %arg0, %c0_i32, %c0_i32_0 : i32, i32, i32
  }
  func.func @transform_9(%arg0: i32) -> (i32, i32, i32) {
    %c0_i32 = arith.constant 0 : i32
    %c0_i32_0 = arith.constant 0 : i32
    %c0_i32_1 = arith.constant 0 : i32
    return %arg0, %c0_i32, %c0_i32_0 : i32, i32, i32
  }
  func.func @transform_10(%arg0: i32) -> (i32, i32, i32) {
    %c0_i32 = arith.constant 0 : i32
    %c0_i32_0 = arith.constant 0 : i32
    %c0_i32_1 = arith.constant 0 : i32
    return %arg0, %c0_i32, %c0_i32_0 : i32, i32, i32
  }
  func.func @transform_11(%arg0: i32) -> (i32, i32, i32) {
    %c0_i32 = arith.constant 0 : i32
    %c0_i32_0 = arith.constant 0 : i32
    %c0_i32_1 = arith.constant 0 : i32
    return %arg0, %c0_i32, %c0_i32_0 : i32, i32, i32
  }
  func.func @transform_12(%arg0: i32) -> (i32, i32, i32) {
    %c0_i32 = arith.constant 0 : i32
    %c0_i32_0 = arith.constant 0 : i32
    %c0_i32_1 = arith.constant 0 : i32
    return %arg0, %c0_i32, %c0_i32_0 : i32, i32, i32
  }
  func.func @transform_13(%arg0: i32) -> (i32, i32, i32) {
    %c0_i32 = arith.constant 0 : i32
    %c0_i32_0 = arith.constant 0 : i32
    %c0_i32_1 = arith.constant 0 : i32
    return %arg0, %c0_i32, %c0_i32_0 : i32, i32, i32
  }
  func.func @transform_14(%arg0: i32) -> (i32, i32, i32) {
    %c0_i32 = arith.constant 0 : i32
    %c0_i32_0 = arith.constant 0 : i32
    %c0_i32_1 = arith.constant 0 : i32
    return %arg0, %c0_i32, %c0_i32_0 : i32, i32, i32
  }
  func.func @transform_15(%arg0: i32) -> (i32, i32, i32) {
    %c0_i32 = arith.constant 0 : i32
    %c0_i32_0 = arith.constant 0 : i32
    %c0_i32_1 = arith.constant 0 : i32
    return %arg0, %c0_i32, %c0_i32_0 : i32, i32, i32
  }
  func.func @transform_16(%arg0: i32) -> (i32, i32, i32) {
    %c0_i32 = arith.constant 0 : i32
    %c0_i32_0 = arith.constant 0 : i32
    %c0_i32_1 = arith.constant 0 : i32
    return %arg0, %c0_i32, %c0_i32_0 : i32, i32, i32
  }
  func.func @transform_17(%arg0: i32) -> (i32, i32, i32) {
    %c0_i32 = arith.constant 0 : i32
    %c0_i32_0 = arith.constant 0 : i32
    %c0_i32_1 = arith.constant 0 : i32
    return %arg0, %c0_i32, %c0_i32_0 : i32, i32, i32
  }
  func.func @transform_18(%arg0: i32) -> (i32, i32, i32) {
    %c0_i32 = arith.constant 0 : i32
    %c0_i32_0 = arith.constant 0 : i32
    %c0_i32_1 = arith.constant 0 : i32
    return %arg0, %c0_i32, %c0_i32_0 : i32, i32, i32
  }
  func.func @transform_19(%arg0: i32) -> (i32, i32, i32) {
    %c0_i32 = arith.constant 0 : i32
    %c0_i32_0 = arith.constant 0 : i32
    %c0_i32_1 = arith.constant 0 : i32
    return %arg0, %c0_i32, %c0_i32_0 : i32, i32, i32
  }
  func.func @transform_20(%arg0: i32) -> (i32, i32) {
    %c0_i32 = arith.constant 0 : i32
    %c0_i32_0 = arith.constant 0 : i32
    %c0_i32_1 = arith.constant 0 : i32
    return %c0_i32, %c0_i32_0 : i32, i32
  }
  func.func @transform_21(%arg0: i32) -> (i32, i32) {
    %c0_i32 = arith.constant 0 : i32
    %c0_i32_0 = arith.constant 0 : i32
    %c0_i32_1 = arith.constant 0 : i32
    return %c0_i32, %c0_i32_0 : i32, i32
  }
  func.func @transform_22(%arg0: i32) -> (i32, i32) {
    %c0_i32 = arith.constant 0 : i32
    %c0_i32_0 = arith.constant 0 : i32
    %c0_i32_1 = arith.constant 0 : i32
    return %c0_i32, %c0_i32_0 : i32, i32
  }
  func.func @transform_23(%arg0: i32) -> (i32, i32) {
    %c0_i32 = arith.constant 0 : i32
    %c0_i32_0 = arith.constant 0 : i32
    %c0_i32_1 = arith.constant 0 : i32
    return %c0_i32, %c0_i32_0 : i32, i32
  }
  func.func @transform_24(%arg0: i32) -> (i32, i32) {
    %c0_i32 = arith.constant 0 : i32
    %c0_i32_0 = arith.constant 0 : i32
    %c0_i32_1 = arith.constant 0 : i32
    return %c0_i32, %c0_i32_0 : i32, i32
  }
}

</mosaic_0001>

<bundles_post_ra>
// kernel: case_classification_forward.1
= control target key start
LH: loop header
LB: loop body
LE: loop exit
PB: predicated region body
PF: predicated region fallthrough
CT: control target
= control target key end

     0   :  { %s7661_s0 = inlined_call_operand.vmem [shape: s32[16,1], index: 0, kind: input, shape index: {}]   ;;  %s7662_s1 = inlined_call_operand.vmem [shape: s32[16,1], index: 1, kind: input, shape index: {}]   ;;  %s7663_s2 = inlined_call_operand.vmem [shape: s32[2,8], index: 2, kind: input, shape index: {}]   ;;  %s7664_s3 = inlined_call_operand.hbm [shape: bf16[1024,128], index: 3, kind: input, shape index: {}]   ;;  %s7665_s4 = inlined_call_operand.vmem [shape: f32[16,128], index: 4, kind: input, shape index: {}]   ;;  %s7666_s5 = inlined_call_operand.vmem [shape: f32[2,128], index: 5, kind: input, shape index: {}]   ;;  %s7667_s6 = inlined_call_operand.hbm [shape: f32[1,128], index: 6, kind: input, shape index: {}]   ;;  %s7668_s7 = inlined_call_operand.hbm [shape: f32[1,128], index: 7, kind: input, shape index: {}]   ;;  %s7669_s8 = inlined_call_operand.hbm [shape: bf16[2,128,384], index: 8, kind: input, shape index: {}]   ;;  %s7670_s9 = inlined_call_operand.hbm [shape: f32[2,1,384], index: 9, kind: input, shape index: {}]   ;;  %s7671_s10 = inlined_call_operand.hbm [shape: bf16[2,128,128], index: 10, kind: input, shape index: {}]   ;;  %s7672_s11 = inlined_call_operand.hbm [shape: f32[2,1,128], index: 11, kind: input, shape index: {}]   ;;  %s7673_s12 = inlined_call_operand.hbm [shape: f32[2,1,128], index: 12, kind: input, shape index: {}]   ;;  %s7674_s13 = inlined_call_operand.hbm [shape: f32[2,1,128], index: 13, kind: input, shape index: {}]   ;;  %s7675_s14 = inlined_call_operand.hbm [shape: bf16[2,128,256], index: 14, kind: input, shape index: {}]   ;;  %s7676_s15 = inlined_call_operand.vmem [shape: f32[2,1,256], index: 15, kind: input, shape index: {}]   ;;  %s7677_s16 = inlined_call_operand.hbm [shape: bf16[2,256,128], index: 16, kind: input, shape index: {}]   ;;  %s7678_s17 = inlined_call_operand.hbm [shape: f32[2,1,128], index: 17, kind: input, shape index: {}]   ;;  %s7679_s18 = inlined_call_operand.hbm [shape: f32[2,1,128], index: 18, kind: input, shape index: {}]   ;;  %s7680_s19 = inlined_call_operand.hbm [shape: f32[2,1,128], index: 19, kind: input, shape index: {}]   ;;  %s7681_s20 = inlined_call_operand.vmem [shape: bf16[128,128], index: 20, kind: input, shape index: {}]   ;;  %s7682_s21 = inlined_call_operand.hbm [shape: f32[1,128], index: 21, kind: input, shape index: {}]   ;;  %s7683_s22 = inlined_call_operand.hbm [shape: bf16[128,256], index: 22, kind: input, shape index: {}]   ;;  %s7684_s23 = inlined_call_operand.hbm [shape: f32[1,256], index: 23, kind: input, shape index: {}]   ;;  %s7685_s24 = inlined_call_operand.hbm [shape: f32[2,256], index: 24, kind: output, shape index: {}]  }
   0x1   :  { %7734 = sst [smem:[#allocation49_spill]] %s7661_s0 }
   0x2   :  { %7735 = sst [smem:[#allocation50_spill]] %s7662_s1 }
   0x3   :  { %7736 = sst [smem:[#allocation51_spill]] %s7663_s2 }
   0x4   :  { %7737 = sst [smem:[#allocation52_spill]] %s7664_s3 }
   0x5   :  { %7738 = sst [smem:[#allocation53_spill]] %s7665_s4 }
   0x6   :  { %7739 = sst [smem:[#allocation54_spill]] %s7666_s5 }
   0x7   :  { %7740 = sst [smem:[#allocation55_spill]] %s7667_s6 }
   0x8   :  { %7741 = sst [smem:[#allocation56_spill]] %s7668_s7 }
   0x9   :  { %7742 = sst [smem:[#allocation57_spill]] %s7669_s8 }
   0xa   :  { %7743 = sst [smem:[#allocation58_spill]] %s7670_s9 }
   0xb   :  { %7744 = sst [smem:[#allocation59_spill]] %s7671_s10 }
   0xc   :  { %7745 = sst [smem:[#allocation60_spill]] %s7673_s12 }
   0xd   :  { %7746 = sst [smem:[#allocation61_spill]] %s7675_s14 }
   0xe   :  { %7747 = sst [smem:[#allocation62_spill]] %s7676_s15 }
   0xf   :  { %7748 = sst [smem:[#allocation63_spill]] %s7678_s17 }
  0x10   :  { %7749 = sst [smem:[#allocation64_spill]] %s7679_s18 }
  0x11   :  { %7750 = sst [smem:[#allocation65_spill]] %s7680_s19 }
  0x12   :  { %7751 = sst [smem:[#allocation66_spill]] %s7681_s20 }
  0x13   :  { %7752 = sst [smem:[#allocation67_spill]] %s7682_s21 }
  0x14   :  { %7753 = sst [smem:[#allocation68_spill]] %s7683_s22 }
  0x15   :  { %7754 = sst [smem:[#allocation69_spill]] %s7685_s24 }
  0x16   :  { %29 = vsyncpa [#allocation4], 0 }
  0x17   :  { %30 = vsyncpa [#allocation7], 0 }
  0x18   :  { %31 = vsyncpa [#allocation10], 0 }
  0x19   :  { %33 = vsyncpa [#allocation10 + $0x1], 0 }
  0x1a   :  { %34 = vsyncpa [#allocation13], 0 }
  0x1b   :  { %36 = vsyncpa [#allocation13 + $0x1], 0 }
  0x1c   :  { %37 = vsyncpa [#allocation16], 0 }
  0x1d   :  { %39 = vsyncpa [#allocation16 + $0x1], 0 }
  0x1e   :  { %40 = vsyncpa [#allocation19], 0 }
  0x1f   :  { %42 = vsyncpa [#allocation19 + $0x1], 0 }
  0x20   :  { %43 = vsyncpa [#allocation22], 0 }
  0x21   :  { %45 = vsyncpa [#allocation22 + $0x1], 0 }
  0x22   :  { %46 = vsyncpa [#allocation25], 0 }
  0x23   :  { %48 = vsyncpa [#allocation25 + $0x1], 0 }
  0x24   :  { %49 = vsyncpa [#allocation28], 0 }
  0x25   :  { %50 = vsyncpa [#allocation5], 0  ;;  %s6611_s5 = smov 0   ;;  %s6613_s26 = smov 0  }
  0x26   :  { %s6615_s27 = smov 0   ;;  %s6617_s28 = smov 0  }
  0x27 LB: > { %7755 = sst [smem:[#allocation42_spill]] %s6440_s26  ;;  %s6630_s6 = sadd.s32 4294967295, %s6448_s28   ;;  %s6448_s28 = sphi %s6617_s28, %s7831_s28   ;;  %s6444_s27 = sphi %s6615_s27, %s7834_s27   ;;  %s6440_s26 = sphi %s6613_s26, %s7833_s26   ;;  %s6436_s5 = sphi %s6611_s5, %s7832_s5  }
  0x28   : > { %7756 = sst [smem:[#allocation43_spill]] %s6444_s27  ;;  %s6633_s2 = sadd.s32 1, %s6448_s28  }
  0x29   : > { %7757 = sst [smem:[#allocation44_spill]] %s6630_s6  ;;  %s228_s29 = ssub.s32 %s6448_s28, %s6633_s2 }
  0x2a   : > { %7758 = sst [smem:[#allocation45_spill]] %s6633_s2  ;;  %s231_s0 = sadd.s32 1, %s6444_s27 }
  0x2b   : > { %p229_p0 = scmp.eq.s32.totalorder %s228_s29, 0  ;;  %p238_p1 = scmp.ne.s32.totalorder %s6444_s27, %s6440_s26 }
  0x2c   : > { %p239_p2 = scmp.eq.s32.totalorder %s6448_s28, 0  ;;  %p244_p3 = scmp.ne.s32.totalorder %s6440_s26, %s6436_s5 }
  0x2d   : > { %s6643_s7 = scalar_select %p229_p0, %s6444_s27, %s231_s0  }
  0x2e   : > { %p6645_p4 = por %p239_p2, %p238_p1  ;;  %p7699_p5 = scmp.eq.s32.totalorder %s6630_s6, 0 }
  0x2f   : > { %7759 = sst [smem:[#allocation46_spill]] %s6643_s7  ;;  %p4848_p6 = scmp.ge.s32.totalorder %s6448_s28, 1 }
  0x30   : > { %p646_p7 = scmp.lt.s32.totalorder %s6448_s28, 3  ;;  %p6654_p8 = por %p7699_p5, %p244_p3 }
  0x31   : > { %s6450_s8 = smov [#allocation6]   ;;  %p5537_p12 = scmp.lt.s32.totalorder %s6448_s28, 2 }
  0x32   : > { %s7761_s3 = scalar_select %p6654_p8, 1, 0 }
  0x33   : > { %p6659_p10 = pnand %p4848_p6, %p646_p7  ;;  %s687_s4 = sshll.u32 %s6450_s8, 4  ;;  %s688_s4 = int_to_ptr.vmem [resolvable:$true] %s687_s4 }
  0x34   : > { %7762 = sst [smem:[#allocation47_spill]] %s7761_s3  ;;  %s6451_s5 = smov [#allocation26]  }
  0x35   : > { %s7763_s25 = scalar_select %p6659_p10, 1, 0 }
  0x36   : > { %p5478_p11 = pneg %p6659_p10  ;;  %s712_s29 = sshll.u32 %s6451_s5, 4  ;;  %s6678_s29 = int_to_ptr.vmem [resolvable:$true] %s712_s29 }
  0x37   : > { %7764 = sst [smem:[#allocation48_spill]] %s7763_s25  ;;  %p6674_p0 = pnand %p5537_p12, %p6645_p4 }
  0x38   : > { %p6668_p13 = pnand %p5478_p11, %p7699_p5  ;;  %s7767_s2 = sld [smem:[#allocation55_spill]] }
  0x39   : > { %s7766_s0 = scalar_select %p6674_p0, 1, 0 }
  0x3a   : > { %s7765_s1 = scalar_select %p6668_p13, 1, 0 }
  0x3b   : > { %p6688_p2 = pneg %p6668_p13 }
  0x3d   : > { %s7768_s3 = scalar_select %p6688_p2, 1, 0 }
  0x3e   : > { %s5850_s24 = scalar_lea.hbm %s7767_s2, 16 }
  0x3f   : > { %p5851_p1 = scmp.ne.s32.totalorder %s7767_s2, %s5850_s24  ;;  %p5857_p6 = scmp.lt.u32.totalorder %s5850_s24, %s7767_s2 }
  0x41   : > { %p5853_p3 = pnand %p6688_p2, %p5851_p1 }
  0x43   : > { %p5854_p4 = pneg %p5853_p3 }
  0x45   : > { %p5859_p7 = pnand %p5857_p6, %p5854_p4 }
  0x47   : > { %5862 = shalt.err (!%p5859_p7)
}
  0x48   : > { %s5863_s7 = scalar_lea.vmem %s688_s4, 16  ;;  %s5870_s15 = scalar_lea.vmem %s688_s4, 32 }
  0x49   : > { %p5864_p11 = scmp.ne.s32.totalorder %s688_s4, %s5863_s7  ;;  %p5871_p5 = scmp.lt.s32.totalorder %s688_s4, %s688_s4 }
  0x4a   : > { %p5872_p8 = scmp.lt.s32.totalorder %s5870_s15, %s5863_s7 }
  0x4b   : > { %p5866_p12 = pnand %p5864_p11, %p6688_p2 }
  0x4c   : > { %p5873_p10 = por %p5872_p8, %p5871_p5 }
  0x4d   : > { %p5867_p9 = pneg %p5866_p12 }
  0x4f   : > { %p5874_p0 = pnand %p5873_p10, %p5867_p9 }
  0x51   : > { %5877 = shalt.err (!%p5874_p0)
}
  0x52   : > { %5484 = dma.hbm_to_vmem [thread:$0]  (!%p6668_p13), %s7767_s2, 16, %s688_s4, [#allocation7]  }
  0x53   : > { %s6452_s24 = smov [#allocation27]   ;;  %s7769_s21 = sld [smem:[#allocation67_spill]] }
  0x54   : > { %s722_s30 = sshll.u32 %s6452_s24, 4  ;;  %s723_s30 = int_to_ptr.vmem [resolvable:$true] %s722_s30 }
  0x59   : > { %s5878_s6 = scalar_lea.hbm %s7769_s21, 16 }
  0x5a   : > { %p5879_p1 = scmp.ne.s32.totalorder %s7769_s21, %s5878_s6  ;;  %p5885_p9 = scmp.lt.u32.totalorder %s5878_s6, %s7769_s21 }
  0x5c   : > { %p5881_p5 = pnand %p5879_p1, %p6688_p2 }
  0x5e   : > { %p5882_p8 = pneg %p5881_p5 }
  0x60   : > { %p5887_p10 = pnand %p5885_p9, %p5882_p8 }
  0x62   : > { %5890 = shalt.err (!%p5887_p10)
}
  0x63   : > { %s5891_s26 = scalar_lea.vmem %s6678_s29, 16  ;;  %s5898_s19 = scalar_lea.vmem %s6678_s29, 32 }
  0x64   : > { %p5892_p0 = scmp.ne.s32.totalorder %s6678_s29, %s5891_s26  ;;  %p5899_p6 = scmp.lt.s32.totalorder %s6678_s29, %s6678_s29 }
  0x65   : > { %p5900_p7 = scmp.lt.s32.totalorder %s5898_s19, %s5891_s26 }
  0x66   : > { %p5894_p3 = pnand %p5892_p0, %p6688_p2 }
  0x67   : > { %p5901_p11 = por %p5900_p7, %p5899_p6 }
  0x68   : > { %p5895_p4 = pneg %p5894_p3 }
  0x6a   : > { %p5902_p12 = pnand %p5901_p11, %p5895_p4 }
  0x6c   : > { %5905 = shalt.err (!%p5902_p12)
}
  0x6d   : > { %5490 = dma.hbm_to_vmem [thread:$0]  (!%p6668_p13), %s7769_s21, 16, %s6678_s29, [#allocation25]  }
  0x6e   : > { %s6729_s4 = sand.u32 1, %s6448_s28   ;;  %s7770_s22 = sld [smem:[#allocation68_spill]] }
  0x74   : > { %s5906_s24 = scalar_lea.hbm %s7770_s22, 2048 }
  0x75   : > { %p5907_p1 = scmp.ne.s32.totalorder %s7770_s22, %s5906_s24  ;;  %p5913_p9 = scmp.lt.u32.totalorder %s5906_s24, %s7770_s22 }
  0x77   : > { %p5909_p5 = pnand %p5907_p1, %p6688_p2 }
  0x79   : > { %p5910_p8 = pneg %p5909_p5 }
  0x7b   : > { %p5915_p10 = pnand %p5913_p9, %p5910_p8 }
  0x7d   : > { %5918 = shalt.err (!%p5915_p10)
}
  0x7e   : > { %s5919_s29 = scalar_lea.vmem %s723_s30, 2048  ;;  %p5927_p6 = scmp.lt.s32.totalorder %s723_s30, %s723_s30 }
  0x7f   : > { %p5920_p0 = scmp.ne.s32.totalorder %s723_s30, %s5919_s29  ;;  %p5928_p7 = scmp.lt.s32.totalorder %s5919_s29, %s5919_s29 }
  0x81   : > { %p5922_p3 = pnand %p5920_p0, %p6688_p2  ;;  %p5929_p11 = por %p5928_p7, %p5927_p6 }
  0x83   : > { %p5923_p4 = pneg %p5922_p3 }
  0x85   : > { %p5930_p12 = pnand %p5929_p11, %p5923_p4 }
  0x87   : > { %5933 = shalt.err (!%p5930_p12)
}
  0x88   : > { %s7715_s19 = smov 128   ;;  %s7716_s6 = smov 8  }
  0x89   : > { %5493 = dma.hbm_to_vmem [thread:$0]  (!%p6668_p13), %s7770_s22, 2048, %s723_s30, [#allocation28], %s7715_s19, %s7715_s19, %s7716_s6  }
  0x8a   : > { %s6753_s8 = sand.u32 1, %s6444_s27   ;;  %s5423_s5 = smul.u32 3072, %s6448_s28 }
  0x8b   : > { %s5422_s24 = smul.u32 192, %s6753_s8  ;;  %s7771_s26 = sld [smem:[#allocation57_spill]] }
  0x8c   : > { %s7720_s25 = scalar_lea.sflag [#allocation10], %s6729_s4  ;;  %p7773_p5 = scmp.ne.s32.totalorder %s7766_s0, 0 }
  0x8d   : > { %s751_s21 = scalar_lea.vmem [#allocation9], %s5422_s24 }
  0x8e   : > { %s758_s18 = sshll.u32 %s751_s21, 4  ;;  %p6769_p8 = pneg %p7773_p5  ;;  %s6762_s18 = int_to_ptr.vmem [resolvable:$true] %s758_s18 }
  0x90   : > { %s7774_s20 = scalar_select %p6769_p8, 1, 0 }
  0x91   : > { %s7772_s29 = smov %s7771_s26  ;;  %s6760_s2 = scalar_lea.hbm %s7771_s26, %s5423_s5 }
  0x92   : > { %s5934_s30 = scalar_lea.hbm %s6760_s2, 3072  ;;  %s5939_s15 = scalar_lea.hbm %s7772_s29, 6144 }
  0x93   : > { %p5935_p1 = scmp.ne.s32.totalorder %s6760_s2, %s5934_s30  ;;  %p5940_p0 = scmp.lt.u32.totalorder %s6760_s2, %s7772_s29 }
  0x94   : > { %p5941_p3 = scmp.lt.u32.totalorder %s5939_s15, %s5934_s30  ;;  %p5943_p6 = scmp.lt.u32.totalorder %s5934_s30, %s6760_s2 }
  0x95   : > { %p5937_p9 = pnand %p6769_p8, %p5935_p1 }
  0x96   : > { %p5942_p4 = por %p5941_p3, %p5940_p0 }
  0x97   : > { %p5938_p10 = pneg %p5937_p9 }
  0x98   : > { %p5944_p7 = por %p5943_p6, %p5942_p4 }
  0x9a   : > { %p5945_p11 = pnand %p5944_p7, %p5938_p10 }
  0x9c   : > { %5948 = shalt.err (!%p5945_p11)
}
  0x9d   : > { %s5949_s26 = scalar_lea.vmem %s6762_s18, 3072  ;;  %s6455_s5 = smov [#allocation9]  }
  0x9e   : > { %p5950_p12 = scmp.ne.s32.totalorder %s6762_s18, %s5949_s26  ;;  %s5954_s7 = sshll.u32 %s6455_s5, 4  ;;  %s5955_s7 = int_to_ptr.vmem [resolvable:$false] %s5954_s7 }
  0x9f   : > { %s5956_s24 = scalar_lea.vmem %s5955_s7, 6144  ;;  %p5957_p13 = scmp.lt.s32.totalorder %s6762_s18, %s5955_s7 }
  0xa0   : > { %p5952_p1 = pnand %p5950_p12, %p6769_p8  ;;  %p5958_p2 = scmp.lt.s32.totalorder %s5956_s24, %s5949_s26 }
  0xa2   : > { %p5953_p9 = pneg %p5952_p1  ;;  %p5959_p0 = por %p5958_p2, %p5957_p13 }
  0xa4   : > { %p5960_p3 = pnand %p5959_p0, %p5953_p9 }
  0xa6   : > { %5963 = shalt.err (!%p5960_p3)
}
  0xa7   : > { %s6456_s30 = smov 192   ;;  %s6457_s15 = smov 12  }
  0xa8   : > { %5500 = dma.hbm_to_vmem [thread:$0]  (!%p7773_p5), %s6760_s2, 3072, %s6762_s18, %s7720_s25, %s6456_s30, %s6456_s30, %s6457_s15  }
  0xa9   : > { %s4858_s21 = sshll.u32 %s6753_s8, 6  ;;  %s5110_s5 = sshll.u32 %s6448_s28, 10 }
  0xaa   : > { %s7775_s10 = sld [smem:[#allocation59_spill]]  ;;  %s791_s19 = scalar_lea.vmem [#allocation12], %s4858_s21 }
  0xab   : > { %s798_s6 = sshll.u32 %s791_s19, 4  ;;  %s6804_s22 = sshll.u32 %s6448_s28, 4  ;;  %s6801_s6 = int_to_ptr.vmem [resolvable:$true] %s798_s6 }
  0xac   : > { %s7719_s29 = scalar_lea.sflag [#allocation13], %s6729_s4 }
  0xb0   : > { %s6799_s24 = scalar_lea.hbm %s7775_s10, %s5110_s5  ;;  %s5969_s30 = scalar_lea.hbm %s7775_s10, 2048 }
  0xb1   : > { %s5964_s27 = scalar_lea.hbm %s6799_s24, 1024  ;;  %p5970_p4 = scmp.lt.u32.totalorder %s6799_s24, %s7775_s10 }
  0xb2   : > { %p5965_p13 = scmp.ne.s32.totalorder %s6799_s24, %s5964_s27  ;;  %p5971_p6 = scmp.lt.u32.totalorder %s5969_s30, %s5964_s27 }
  0xb3   : > { %p5973_p11 = scmp.lt.u32.totalorder %s5964_s27, %s6799_s24 }
  0xb4   : > { %p5967_p2 = pnand %p5965_p13, %p6769_p8  ;;  %p5972_p7 = por %p5971_p6, %p5970_p4 }
  0xb6   : > { %p5968_p10 = pneg %p5967_p2  ;;  %p5974_p12 = por %p5973_p11, %p5972_p7 }
  0xb8   : > { %p5975_p1 = pnand %p5974_p12, %p5968_p10 }
  0xba   : > { %5978 = shalt.err (!%p5975_p1)
}
  0xbb   : > { %s5979_s19 = scalar_lea.vmem %s6801_s6, 1024  ;;  %s6458_s21 = smov [#allocation12]  }
  0xbc   : > { %p5980_p9 = scmp.ne.s32.totalorder %s6801_s6, %s5979_s19  ;;  %s5984_s26 = sshll.u32 %s6458_s21, 4  ;;  %s5985_s26 = int_to_ptr.vmem [resolvable:$false] %s5984_s26 }
  0xbd   : > { %s5986_s7 = scalar_lea.vmem %s5985_s26, 2048  ;;  %p5987_p13 = scmp.lt.s32.totalorder %s6801_s6, %s5985_s26 }
  0xbe   : > { %p5982_p0 = pnand %p5980_p9, %p6769_p8  ;;  %p5988_p2 = scmp.lt.s32.totalorder %s5986_s7, %s5979_s19 }
  0xc0   : > { %p5983_p3 = pneg %p5982_p0  ;;  %p5989_p4 = por %p5988_p2, %p5987_p13 }
  0xc2   : > { %p5990_p6 = pnand %p5989_p4, %p5983_p3 }
  0xc4   : > { %5993 = shalt.err (!%p5990_p6)
}
  0xc5   : > { %s7723_s27 = smov 64   ;;  %s7725_s18 = smov 4  }
  0xc6   : > { %5506 = dma.hbm_to_vmem [thread:$0]  (!%p7773_p5), %s6799_s24, 1024, %s6801_s6, %s7719_s29, %s7723_s27, %s7723_s27, %s7725_s18  }
  0xc7   : > { %s7776_s12 = sld [smem:[#allocation60_spill]]  ;;  %s828_s5 = scalar_lea.vmem [#allocation15], %s6753_s8 }
  0xc8   : > { %s835_s19 = sshll.u32 %s828_s5, 4  ;;  %s7722_s21 = scalar_lea.sflag [#allocation16], %s6729_s4  ;;  %s836_s19 = int_to_ptr.vmem [resolvable:$true] %s835_s19 }
  0xcd   : > { %s6837_s15 = scalar_lea.hbm %s7776_s12, %s6804_s22  ;;  %s5999_s24 = scalar_lea.hbm %s7776_s12, 32 }
  0xce   : > { %s5994_s26 = scalar_lea.hbm %s6837_s15, 16  ;;  %p6000_p12 = scmp.lt.u32.totalorder %s6837_s15, %s7776_s12 }
  0xcf   : > { %p5995_p10 = scmp.ne.s32.totalorder %s6837_s15, %s5994_s26  ;;  %p6001_p1 = scmp.lt.u32.totalorder %s5999_s24, %s5994_s26 }
  0xd0   : > { %p6003_p0 = scmp.lt.u32.totalorder %s5994_s26, %s6837_s15 }
  0xd1   : > { %p5997_p7 = pnand %p5995_p10, %p6769_p8  ;;  %p6002_p9 = por %p6001_p1, %p6000_p12 }
  0xd3   : > { %p5998_p11 = pneg %p5997_p7  ;;  %p6004_p3 = por %p6003_p0, %p6002_p9 }
  0xd5   : > { %p6005_p13 = pnand %p6004_p3, %p5998_p11 }
  0xd7   : > { %6008 = shalt.err (!%p6005_p13)
}
  0xd8   : > { %s6009_s5 = scalar_lea.vmem %s836_s19, 16  ;;  %s6461_s29 = smov [#allocation15]  }
  0xd9   : > { %p6010_p2 = scmp.ne.s32.totalorder %s836_s19, %s6009_s5  ;;  %s6014_s25 = sshll.u32 %s6461_s29, 4  ;;  %s6015_s25 = int_to_ptr.vmem [resolvable:$false] %s6014_s25 }
  0xda   : > { %s6016_s7 = scalar_lea.vmem %s6015_s25, 32  ;;  %p6017_p10 = scmp.lt.s32.totalorder %s836_s19, %s6015_s25 }
  0xdb   : > { %p6012_p4 = pnand %p6010_p2, %p6769_p8  ;;  %p6018_p7 = scmp.lt.s32.totalorder %s6016_s7, %s6009_s5 }
  0xdd   : > { %p6013_p6 = pneg %p6012_p4  ;;  %p6019_p5 = por %p6018_p7, %p6017_p10 }
  0xdf   : > { %p6020_p1 = pnand %p6019_p5, %p6013_p6 }
  0xe1   : > { %6023 = shalt.err (!%p6020_p1)
}
  0xe2   : > { %p7777_p12 = scmp.ne.s32.totalorder %s7766_s0, 0  ;;  %s7727_s26 = sshll.u32 %s6753_s8, 7 }
  0xe3   : > { %s5111_s29 = sshll.u32 %s6448_s28, 11  ;;  %s7778_s14 = sld [smem:[#allocation61_spill]] }
  0xe4   : > { %5512 = dma.hbm_to_vmem [thread:$0]  (!%p7777_p12), %s6837_s15, 16, %s836_s19, %s7722_s21  }
  0xe5   : > { %s863_s2 = scalar_lea.vmem [#allocation18], %s7727_s26  ;;  %s6874_s15 = scalar_lea.hbm %s7677_s16, %s5111_s29 }
  0xe6   : > { %s870_s30 = sshll.u32 %s863_s2, 4  ;;  %s7729_s19 = scalar_lea.sflag [#allocation19], %s6729_s4  ;;  %s6869_s30 = int_to_ptr.vmem [resolvable:$true] %s870_s30 }
  0xe9   : > { %s6865_s25 = scalar_lea.hbm %s7778_s14, %s5111_s29  ;;  %s6029_s27 = scalar_lea.hbm %s7778_s14, 4096 }
  0xea   : > { %s6024_s21 = scalar_lea.hbm %s6865_s25, 2048  ;;  %p6030_p0 = scmp.lt.u32.totalorder %s6865_s25, %s7778_s14 }
  0xeb   : > { %p6025_p5 = scmp.ne.s32.totalorder %s6865_s25, %s6024_s21  ;;  %p6031_p3 = scmp.lt.u32.totalorder %s6029_s27, %s6024_s21 }
  0xec   : > { %p6033_p2 = scmp.lt.u32.totalorder %s6024_s21, %s6865_s25 }
  0xed   : > { %p6027_p11 = pnand %p6025_p5, %p6769_p8  ;;  %p6032_p13 = por %p6031_p3, %p6030_p0 }
  0xef   : > { %p6028_p9 = pneg %p6027_p11  ;;  %p6034_p4 = por %p6033_p2, %p6032_p13 }
  0xf1   : > { %p6035_p6 = pnand %p6034_p4, %p6028_p9 }
  0xf3   : > { %6038 = shalt.err (!%p6035_p6)
}
  0xf4   : > { %s6039_s29 = scalar_lea.vmem %s6869_s30, 2048  ;;  %s6462_s2 = smov [#allocation18]  }
  0xf5   : > { %p6040_p10 = scmp.ne.s32.totalorder %s6869_s30, %s6039_s29  ;;  %s6044_s5 = sshll.u32 %s6462_s2, 4  ;;  %s6045_s5 = int_to_ptr.vmem [resolvable:$false] %s6044_s5 }
  0xf6   : > { %s6046_s18 = scalar_lea.vmem %s6045_s5, 4096  ;;  %p6047_p5 = scmp.lt.s32.totalorder %s6869_s30, %s6045_s5 }
  0xf7   : > { %p6042_p7 = pnand %p6040_p10, %p6769_p8  ;;  %p6048_p11 = scmp.lt.s32.totalorder %s6046_s18, %s6039_s29 }
  0xf9   : > { %p6043_p1 = pneg %p6042_p7  ;;  %p6049_p0 = por %p6048_p11, %p6047_p5 }
  0xfb   : > { %p6050_p3 = pnand %p6049_p0, %p6043_p1 }
  0xfd   : > { %6053 = shalt.err (!%p6050_p3)
}
  0xfe   : > { %s7779_s27 = smov 8   ;;  %s7780_s21 = smov 128  }
  0xff   : > { %5518 = dma.hbm_to_vmem [thread:$0]  (!%p7777_p12), %s6865_s25, 2048, %s6869_s30, %s7729_s19, %s7780_s21, %s7780_s21, %s7779_s27  }
 0x100   : > { %s7781_s26 = sshll.u32 %s6753_s8, 7  ;;  %s7782_s17 = sld [smem:[#allocation63_spill]] }
 0x101   : > { %s891_s7 = scalar_lea.vmem [#allocation20], %s7781_s26  ;;  %s911_s5 = scalar_lea.vmem [#allocation21], %s6753_s8 }
 0x102   : > { %s898_s6 = sshll.u32 %s891_s7, 4  ;;  %s918_s18 = sshll.u32 %s911_s5, 4  ;;  %s6905_s6 = int_to_ptr.vmem [resolvable:$true] %s898_s6  ;;  %s919_s18 = int_to_ptr.vmem [resolvable:$true] %s918_s18 }
 0x103   : > { %s7730_s10 = scalar_lea.sflag [#allocation22], %s6729_s4 }
 0x106   : > { %s6911_s2 = scalar_lea.hbm %s7782_s17, %s6804_s22  ;;  %s6059_s27 = scalar_lea.hbm %s7782_s17, 32 }
 0x107   : > { %s6054_s12 = scalar_lea.hbm %s6911_s2, 16  ;;  %p6060_p4 = scmp.lt.u32.totalorder %s6911_s2, %s7782_s17 }
 0x108   : > { %p6055_p9 = scmp.ne.s32.totalorder %s6911_s2, %s6054_s12  ;;  %p6061_p6 = scmp.lt.u32.totalorder %s6059_s27, %s6054_s12 }
 0x109   : > { %p6063_p7 = scmp.lt.u32.totalorder %s6054_s12, %s6911_s2 }
 0x10a   : > { %p6057_p13 = pnand %p6055_p9, %p6769_p8  ;;  %p6062_p10 = por %p6061_p6, %p6060_p4 }
 0x10c   : > { %p6058_p2 = pneg %p6057_p13  ;;  %p6064_p1 = por %p6063_p7, %p6062_p10 }
 0x10e   : > { %p6065_p5 = pnand %p6064_p1, %p6058_p2 }
 0x110   : > { %6068 = shalt.err (!%p6065_p5)
}
 0x111   : > { %s6069_s7 = scalar_lea.vmem %s919_s18, 16  ;;  %s6463_s24 = smov [#allocation21]  }
 0x112   : > { %p6070_p11 = scmp.ne.s32.totalorder %s919_s18, %s6069_s7  ;;  %s6074_s29 = sshll.u32 %s6463_s24, 4  ;;  %s6075_s29 = int_to_ptr.vmem [resolvable:$false] %s6074_s29 }
 0x113   : > { %s6076_s5 = scalar_lea.vmem %s6075_s29, 32  ;;  %p6077_p9 = scmp.lt.s32.totalorder %s919_s18, %s6075_s29 }
 0x114   : > { %p6072_p0 = pnand %p6070_p11, %p6769_p8  ;;  %p6078_p13 = scmp.lt.s32.totalorder %s6076_s5, %s6069_s7 }
 0x116   : > { %p6073_p3 = pneg %p6072_p0  ;;  %p6079_p12 = por %p6078_p13, %p6077_p9 }
 0x118   : > { %p6080_p4 = pnand %p6079_p12, %p6073_p3 }
 0x11a   : > { %6083 = shalt.err (!%p6080_p4)
}
 0x11b   : > { %p7783_p6 = scmp.ne.s32.totalorder %s7766_s0, 0  ;;  %s6464_s12 = smov [#allocation3]  }
 0x11c   : > { %s667_s25 = sshll.u32 %s6464_s12, 4  ;;  %s6465_s30 = smov [#allocation8]   ;;  %s668_s25 = int_to_ptr.vmem [resolvable:$true] %s667_s25 }
 0x11d   : > { %5524 = dma.hbm_to_vmem [thread:$0]  (!%p7783_p6), %s6911_s2, 16, %s919_s18, %s7730_s10  }
 0x11e   : > { %s698_s27 = sshll.u32 %s6465_s30, 4  ;;  %s7784_s24 = sld [smem:[#allocation52_spill]]  ;;  %s699_s27 = int_to_ptr.vmem [resolvable:$true] %s698_s27 }
 0x11f   : > { %p7785_p2 = scmp.ne.s32.totalorder %s7768_s3, 0 }
 0x124   : > { %s6084_s29 = scalar_lea.hbm %s7784_s24, 8192 }
 0x125   : > { %p6085_p12 = scmp.ne.s32.totalorder %s7784_s24, %s6084_s29  ;;  %p6091_p1 = scmp.lt.u32.totalorder %s6084_s29, %s7784_s24 }
 0x127   : > { %p6087_p10 = pnand %p6085_p12, %p7785_p2 }
 0x129   : > { %p6088_p7 = pneg %p6087_p10 }
 0x12b   : > { %p6093_p5 = pnand %p6091_p1, %p6088_p7 }
 0x12d   : > { %6096 = shalt.err (!%p6093_p5)
}
 0x12e   : > { %s6097_s2 = scalar_lea.vmem %s668_s25, 8192  ;;  %p6105_p9 = scmp.lt.s32.totalorder %s668_s25, %s668_s25 }
 0x12f   : > { %p6098_p11 = scmp.ne.s32.totalorder %s668_s25, %s6097_s2  ;;  %p6106_p13 = scmp.lt.s32.totalorder %s6097_s2, %s6097_s2 }
 0x131   : > { %p6100_p0 = pnand %p6098_p11, %p7785_p2  ;;  %p6107_p4 = por %p6106_p13, %p6105_p9 }
 0x133   : > { %p6101_p3 = pneg %p6100_p0 }
 0x135   : > { %p6108_p6 = pnand %p6107_p4, %p6101_p3 }
 0x137   : > { %6111 = shalt.err (!%p6108_p6)
}
 0x138   : > { %p7786_p12 = scmp.ne.s32.totalorder %s7765_s1, 0  ;;  %s7787_s18 = smov 4  }
 0x139   : > { %s7788_s12 = smov 64   ;;  %s7789_s26 = sld [smem:[#allocation56_spill]] }
 0x13a   : > { %5481 = dma.hbm_to_vmem [thread:$0]  (!%p7786_p12), %s7784_s24, 8192, %s668_s25, [#allocation4], %s7788_s12, %s7788_s12, %s7787_s18  }
 0x13f   : > { %s7790_s29 = smov %s7789_s26  ;;  %s6112_s7 = scalar_lea.hbm %s7789_s26, 16 }
 0x140   : > { %p6113_p10 = scmp.ne.s32.totalorder %s7790_s29, %s6112_s7  ;;  %p6119_p1 = scmp.lt.u32.totalorder %s6112_s7, %s7790_s29 }
 0x142   : > { %p6115_p6 = pnand %p6113_p10, %p7785_p2 }
 0x144   : > { %p6116_p7 = pneg %p6115_p6 }
 0x146   : > { %p6121_p5 = pnand %p6119_p1, %p6116_p7 }
 0x148   : > { %6124 = shalt.err (!%p6121_p5)
}
 0x149   : > { %s6125_s14 = scalar_lea.vmem %s699_s27, 16  ;;  %s6132_s25 = scalar_lea.vmem %s699_s27, 32 }
 0x14a   : > { %p6126_p11 = scmp.ne.s32.totalorder %s699_s27, %s6125_s14  ;;  %p6133_p9 = scmp.lt.s32.totalorder %s699_s27, %s699_s27 }
 0x14b   : > { %p6134_p13 = scmp.lt.s32.totalorder %s6132_s25, %s6125_s14 }
 0x14c   : > { %p6128_p0 = pnand %p6126_p11, %p7785_p2 }
 0x14d   : > { %p6135_p4 = por %p6134_p13, %p6133_p9 }
 0x14e   : > { %p6129_p3 = pneg %p6128_p0 }
 0x150   : > { %p6136_p8 = pnand %p6135_p4, %p6129_p3 }
 0x152   : > { %6139 = shalt.err (!%p6136_p8)
}
 0x153   : > { %5487 = dma.hbm_to_vmem [thread:$0]  (!%p7786_p12), %s7790_s29, 16, %s699_s27, [#allocation7]  }
 0x154   : > { %s6466_s10 = smov [#allocation29]   ;;  %s5424_s21 = smul.u32 3, %s6753_s8 }
 0x155   : > { %s736_s17 = sshll.u32 %s6466_s10, 4  ;;  %s5425_s26 = smul.u32 48, %s6448_s28  ;;  %s737_s17 = int_to_ptr.vmem [resolvable:$true] %s736_s17 }
 0x156   : > { %s6140_s2 = scalar_lea.hbm %s7684_s23, 32 }
 0x157   : > { %p6141_p8 = scmp.ne.s32.totalorder %s7684_s23, %s6140_s2  ;;  %p6147_p7 = scmp.lt.u32.totalorder %s6140_s2, %s7684_s23 }
 0x159   : > { %p6143_p10 = pnand %p6141_p8, %p7785_p2 }
 0x15b   : > { %p6144_p6 = pneg %p6143_p10 }
 0x15d   : > { %p6149_p1 = pnand %p6147_p7, %p6144_p6 }
 0x15f   : > { %6152 = shalt.err (!%p6149_p1)
}
 0x160   : > { %s6153_s27 = scalar_lea.vmem %s737_s17, 32  ;;  %p6161_p3 = scmp.lt.s32.totalorder %s737_s17, %s737_s17 }
 0x161   : > { %p6154_p5 = scmp.ne.s32.totalorder %s737_s17, %s6153_s27  ;;  %p6162_p9 = scmp.lt.s32.totalorder %s6153_s27, %s6153_s27 }
 0x163   : > { %p6156_p11 = pnand %p6154_p5, %p7785_p2  ;;  %p6163_p13 = por %p6162_p9, %p6161_p3 }
 0x165   : > { %p6157_p0 = pneg %p6156_p11 }
 0x167   : > { %p6164_p4 = pnand %p6163_p13, %p6157_p0 }
 0x169   : > { %6167 = shalt.err (!%p6164_p4)
}
 0x16a   : > { %5496 = dma.hbm_to_vmem [thread:$0]  (!%p7786_p12), %s7684_s23, 32, %s737_s17, [#allocation28]  }
 0x16b   : > { %s7791_s9 = sld [smem:[#allocation58_spill]]  ;;  %s772_s3 = scalar_lea.vmem [#allocation11], %s5424_s21 }
 0x16c   : > { %s780_s14 = sshll.u32 %s772_s3, 4  ;;  %s7002_s19 = scalar_lea.hbm %s7672_s11, %s6804_s22  ;;  %s781_s14 = int_to_ptr.vmem [resolvable:$true] %s780_s14 }
 0x16d   : > { %p7792_p12 = scmp.ne.s32.totalorder %s7774_s20, 0 }
 0x171   : > { %s6996_s2 = scalar_lea.hbm %s7791_s9, %s5425_s26  ;;  %s6173_s27 = scalar_lea.hbm %s7791_s9, 96 }
 0x172   : > { %s6168_s30 = scalar_lea.hbm %s6996_s2, 48  ;;  %p6174_p6 = scmp.lt.u32.totalorder %s6996_s2, %s7791_s9 }
 0x173   : > { %p6169_p2 = scmp.ne.s32.totalorder %s6996_s2, %s6168_s30  ;;  %p6175_p7 = scmp.lt.u32.totalorder %s6173_s27, %s6168_s30 }
 0x174   : > { %p6177_p5 = scmp.lt.u32.totalorder %s6168_s30, %s6996_s2 }
 0x175   : > { %p6171_p8 = pnand %p6169_p2, %p7792_p12  ;;  %p6176_p1 = por %p6175_p7, %p6174_p6 }
 0x177   : > { %p6172_p10 = pneg %p6171_p8  ;;  %p6178_p11 = por %p6177_p5, %p6176_p1 }
 0x179   : > { %p6179_p0 = pnand %p6178_p11, %p6172_p10 }
 0x17b   : > { %6182 = shalt.err (!%p6179_p0)
}
 0x17c   : > { %s6183_s21 = scalar_lea.vmem %s781_s14, 48  ;;  %s6467_s7 = smov [#allocation11]  }
 0x17d   : > { %p6184_p3 = scmp.ne.s32.totalorder %s781_s14, %s6183_s21  ;;  %s6188_s5 = sshll.u32 %s6467_s7, 4  ;;  %s6189_s5 = int_to_ptr.vmem [resolvable:$false] %s6188_s5 }
 0x17e   : > { %s6190_s3 = scalar_lea.vmem %s6189_s5, 96  ;;  %p6191_p4 = scmp.lt.s32.totalorder %s781_s14, %s6189_s5 }
 0x17f   : > { %p6186_p9 = pnand %p6184_p3, %p7792_p12  ;;  %p6192_p2 = scmp.lt.s32.totalorder %s6190_s3, %s6183_s21 }
 0x181   : > { %p6187_p13 = pneg %p6186_p9  ;;  %p6193_p8 = por %p6192_p2, %p6191_p4 }
 0x183   : > { %p6194_p6 = pnand %p6193_p8, %p6187_p13 }
 0x185   : > { %6197 = shalt.err (!%p6194_p6)
}
 0x186   : > { %p7793_p7 = scmp.ne.s32.totalorder %s7766_s0, 0  ;;  %s7794_s25 = scalar_lea.sflag [#allocation10], %s6729_s4 }
 0x187   : > { %s811_s1 = scalar_lea.vmem [#allocation14], %s6753_s8  ;;  %s7028_s27 = scalar_lea.hbm %s7674_s13, %s6804_s22 }
 0x188   : > { %5503 = dma.hbm_to_vmem [thread:$0]  (!%p7793_p7), %s6996_s2, 48, %s781_s14, %s7794_s25  }
 0x189   : > { %s818_s30 = sshll.u32 %s811_s1, 4  ;;  %s6198_s28 = scalar_lea.hbm %s7002_s19, 16  ;;  %s819_s30 = int_to_ptr.vmem [resolvable:$true] %s818_s30 }
 0x18a   : > { %p6199_p10 = scmp.ne.s32.totalorder %s7002_s19, %s6198_s28  ;;  %s6203_s7 = scalar_lea.hbm %s7672_s11, 32 }
 0x18b   : > { %p6204_p11 = scmp.lt.u32.totalorder %s7002_s19, %s7672_s11  ;;  %p6205_p0 = scmp.lt.u32.totalorder %s6203_s7, %s6198_s28 }
 0x18c   : > { %p6201_p1 = pnand %p6199_p10, %p7792_p12  ;;  %p6207_p9 = scmp.lt.u32.totalorder %s6198_s28, %s7002_s19 }
 0x18d   : > { %p6206_p3 = por %p6205_p0, %p6204_p11 }
 0x18e   : > { %p6202_p5 = pneg %p6201_p1 }
 0x18f   : > { %p6208_p13 = por %p6207_p9, %p6206_p3 }
 0x191   : > { %p6209_p4 = pnand %p6208_p13, %p6202_p5 }
 0x193   : > { %6212 = shalt.err (!%p6209_p4)
}
 0x194   : > { %s6213_s2 = scalar_lea.vmem %s819_s30, 16  ;;  %s6468_s14 = smov [#allocation14]  }
 0x195   : > { %p6214_p2 = scmp.ne.s32.totalorder %s819_s30, %s6213_s2  ;;  %s6218_s25 = sshll.u32 %s6468_s14, 4  ;;  %s6219_s25 = int_to_ptr.vmem [resolvable:$false] %s6218_s25 }
 0x196   : > { %s6220_s1 = scalar_lea.vmem %s6219_s25, 32  ;;  %p6221_p10 = scmp.lt.s32.totalorder %s819_s30, %s6219_s25 }
 0x197   : > { %p6216_p8 = pnand %p6214_p2, %p7792_p12  ;;  %p6222_p1 = scmp.lt.s32.totalorder %s6220_s1, %s6213_s2 }
 0x199   : > { %p6217_p6 = pneg %p6216_p8  ;;  %p6223_p7 = por %p6222_p1, %p6221_p10 }
 0x19b   : > { %p6224_p0 = pnand %p6223_p7, %p6217_p6 }
 0x19d   : > { %6227 = shalt.err (!%p6224_p0)
}
 0x19e   : > { %p7795_p11 = scmp.ne.s32.totalorder %s7766_s0, 0  ;;  %s7796_s17 = scalar_lea.sflag [#allocation13], %s6729_s4 }
 0x19f   : > { %s845_s26 = scalar_lea.vmem [#allocation17], %s6753_s8  ;;  %s7797_s7 = sld [smem:[#allocation64_spill]] }
 0x1a0   : > { %5509 = dma.hbm_to_vmem [thread:$0]  (!%p7795_p11), %s7002_s19, 16, %s819_s30, %s7796_s17  }
 0x1a1   : > { %s852_s28 = sshll.u32 %s845_s26, 4  ;;  %s6228_s3 = scalar_lea.hbm %s7028_s27, 16  ;;  %s853_s28 = int_to_ptr.vmem [resolvable:$true] %s852_s28 }
 0x1a2   : > { %p6229_p7 = scmp.ne.s32.totalorder %s7028_s27, %s6228_s3  ;;  %s6233_s25 = scalar_lea.hbm %s7674_s13, 32 }
 0x1a3   : > { %p6234_p9 = scmp.lt.u32.totalorder %s7028_s27, %s7674_s13  ;;  %p6235_p13 = scmp.lt.u32.totalorder %s6233_s25, %s6228_s3 }
 0x1a4   : > { %p6231_p5 = pnand %p6229_p7, %p7792_p12  ;;  %p6237_p2 = scmp.lt.u32.totalorder %s6228_s3, %s7028_s27 }
 0x1a5   : > { %s7054_s5 = scalar_lea.hbm %s7797_s7, %s6804_s22  ;;  %p6236_p4 = por %p6235_p13, %p6234_p9 }
 0x1a6   : > { %p6232_p3 = pneg %p6231_p5 }
 0x1a7   : > { %p6238_p8 = por %p6237_p2, %p6236_p4 }
 0x1a9   : > { %p6239_p6 = pnand %p6238_p8, %p6232_p3 }
 0x1ab   : > { %6242 = shalt.err (!%p6239_p6)
}
 0x1ac   : > { %s6243_s19 = scalar_lea.vmem %s853_s28, 16  ;;  %s6469_s30 = smov [#allocation17]  }
 0x1ad   : > { %p6244_p10 = scmp.ne.s32.totalorder %s853_s28, %s6243_s19  ;;  %s6248_s17 = sshll.u32 %s6469_s30, 4  ;;  %s6249_s17 = int_to_ptr.vmem [resolvable:$false] %s6248_s17 }
 0x1ae   : > { %s6250_s26 = scalar_lea.vmem %s6249_s17, 32  ;;  %p6251_p7 = scmp.lt.s32.totalorder %s853_s28, %s6249_s17 }
 0x1af   : > { %p6246_p1 = pnand %p6244_p10, %p7792_p12  ;;  %p6252_p5 = scmp.lt.s32.totalorder %s6250_s26, %s6243_s19 }
 0x1b1   : > { %p6247_p0 = pneg %p6246_p1  ;;  %p6253_p11 = por %p6252_p5, %p6251_p7 }
 0x1b3   : > { %p6254_p9 = pnand %p6253_p11, %p6247_p0 }
 0x1b5   : > { %6257 = shalt.err (!%p6254_p9)
}
 0x1b6   : > { %p7798_p13 = scmp.ne.s32.totalorder %s7766_s0, 0  ;;  %s7799_s9 = scalar_lea.sflag [#allocation16], %s6729_s4 }
 0x1b7   : > { %s6258_s10 = scalar_lea.hbm %s6874_s15, 2048  ;;  %s6263_s2 = scalar_lea.hbm %s7677_s16, 4096 }
 0x1b8   : > { %5515 = dma.hbm_to_vmem [thread:$0]  (!%p7798_p13), %s7028_s27, 16, %s853_s28, %s7799_s9  }
 0x1b9   : > { %p6259_p3 = scmp.ne.s32.totalorder %s6874_s15, %s6258_s10  ;;  %p6264_p11 = scmp.lt.u32.totalorder %s6874_s15, %s7677_s16 }
 0x1ba   : > { %p6265_p8 = scmp.lt.u32.totalorder %s6263_s2, %s6258_s10  ;;  %p6267_p10 = scmp.lt.u32.totalorder %s6258_s10, %s6874_s15 }
 0x1bb   : > { %p6261_p4 = pnand %p6259_p3, %p7792_p12 }
 0x1bc   : > { %p6266_p6 = por %p6265_p8, %p6264_p11 }
 0x1bd   : > { %p6262_p2 = pneg %p6261_p4 }
 0x1be   : > { %p6268_p1 = por %p6267_p10, %p6266_p6 }
 0x1c0   : > { %p6269_p0 = pnand %p6268_p1, %p6262_p2 }
 0x1c2   : > { %6272 = shalt.err (!%p6269_p0)
}
 0x1c3   : > { %s6273_s27 = scalar_lea.vmem %s6905_s6, 2048  ;;  %s6470_s28 = smov [#allocation20]  }
 0x1c4   : > { %p6274_p7 = scmp.ne.s32.totalorder %s6905_s6, %s6273_s27  ;;  %s6278_s1 = sshll.u32 %s6470_s28, 4  ;;  %s6279_s1 = int_to_ptr.vmem [resolvable:$false] %s6278_s1 }
 0x1c5   : > { %s6280_s19 = scalar_lea.vmem %s6279_s1, 4096  ;;  %p6281_p3 = scmp.lt.s32.totalorder %s6905_s6, %s6279_s1 }
 0x1c6   : > { %p6276_p5 = pnand %p6274_p7, %p7792_p12  ;;  %p6282_p4 = scmp.lt.s32.totalorder %s6280_s19, %s6273_s27 }
 0x1c8   : > { %p6277_p9 = pneg %p6276_p5  ;;  %p6283_p11 = por %p6282_p4, %p6281_p3 }
 0x1ca   : > { %p6284_p8 = pnand %p6283_p11, %p6277_p9 }
 0x1cc   : > { %6287 = shalt.err (!%p6284_p8)
}
 0x1cd   : > { %s7800_s30 = scalar_lea.sflag [#allocation19], %s6729_s4  ;;  %s928_s17 = scalar_lea.vmem [#allocation23], %s6753_s8 }
 0x1ce   : > { %5521 = dma.hbm_to_vmem [thread:$0]  (!%p7798_p13), %s6874_s15, 2048, %s6905_s6, %s7800_s30, %s7788_s12, %s7788_s12, %s7787_s18  }
 0x1cf   : > { %s935_s26 = sshll.u32 %s928_s17, 4  ;;  %s6288_s9 = scalar_lea.hbm %s7054_s5, 16  ;;  %s936_s26 = int_to_ptr.vmem [resolvable:$true] %s935_s26 }
 0x1d0   : > { %p6289_p2 = scmp.ne.s32.totalorder %s7054_s5, %s6288_s9  ;;  %s6293_s3 = scalar_lea.hbm %s7797_s7, 32 }
 0x1d1   : > { %p6294_p1 = scmp.lt.u32.totalorder %s7054_s5, %s7797_s7  ;;  %p6295_p0 = scmp.lt.u32.totalorder %s6293_s3, %s6288_s9 }
 0x1d2   : > { %p6291_p6 = pnand %p6289_p2, %p7792_p12  ;;  %p6297_p5 = scmp.lt.u32.totalorder %s6288_s9, %s7054_s5 }
 0x1d3   : > { %p6296_p7 = por %p6295_p0, %p6294_p1 }
 0x1d4   : > { %p6292_p10 = pneg %p6291_p6 }
 0x1d5   : > { %p6298_p9 = por %p6297_p5, %p6296_p7 }
 0x1d7   : > { %p6299_p3 = pnand %p6298_p9, %p6292_p10 }
 0x1d9   : > { %6302 = shalt.err (!%p6299_p3)
}
 0x1da   : > { %s6303_s15 = scalar_lea.vmem %s936_s26, 16  ;;  %s6471_s6 = smov [#allocation23]  }
 0x1db   : > { %p6304_p4 = scmp.ne.s32.totalorder %s936_s26, %s6303_s15  ;;  %s6308_s18 = sshll.u32 %s6471_s6, 4  ;;  %s6309_s18 = int_to_ptr.vmem [resolvable:$false] %s6308_s18 }
 0x1dc   : > { %s6310_s12 = scalar_lea.vmem %s6309_s18, 32  ;;  %p6311_p2 = scmp.lt.s32.totalorder %s936_s26, %s6309_s18 }
 0x1dd   : > { %p6306_p11 = pnand %p6304_p4, %p7792_p12  ;;  %p6312_p6 = scmp.lt.s32.totalorder %s6310_s12, %s6303_s15 }
 0x1df   : > { %p6307_p8 = pneg %p6306_p11  ;;  %p6313_p13 = por %p6312_p6, %p6311_p2 }
 0x1e1   : > { %p6314_p0 = pnand %p6313_p13, %p6307_p8 }
 0x1e3   : > { %6317 = shalt.err (!%p6314_p0)
}
 0x1e4   : > { %p7801_p1 = scmp.ne.s32.totalorder %s7766_s0, 0  ;;  %s7802_s25 = scalar_lea.sflag [#allocation22], %s6729_s4 }
 0x1e5   : > { %s7803_s1 = sld [smem:[#allocation65_spill]]  ;;  %s945_s30 = scalar_lea.vmem [#allocation24], %s6753_s8 }
 0x1e6   : > { %5527 = dma.hbm_to_vmem [thread:$0]  (!%p7801_p1), %s7054_s5, 16, %s936_s26, %s7802_s25  }
 0x1e7   : > { %s952_s17 = sshll.u32 %s945_s30, 4  ;;  %s943_s9 = scalar_lea.sflag [#allocation25], %s6729_s4  ;;  %s953_s17 = int_to_ptr.vmem [resolvable:$true] %s952_s17 }
 0x1eb   : > { %s7125_s19 = scalar_lea.hbm %s7803_s1, %s6804_s22  ;;  %s6323_s26 = scalar_lea.hbm %s7803_s1, 32 }
 0x1ec   : > { %s6318_s10 = scalar_lea.hbm %s7125_s19, 16  ;;  %p6324_p5 = scmp.lt.u32.totalorder %s7125_s19, %s7803_s1 }
 0x1ed   : > { %p6319_p13 = scmp.ne.s32.totalorder %s7125_s19, %s6318_s10  ;;  %p6325_p9 = scmp.lt.u32.totalorder %s6323_s26, %s6318_s10 }
 0x1ee   : > { %p6327_p4 = scmp.lt.u32.totalorder %s6318_s10, %s7125_s19 }
 0x1ef   : > { %p6321_p10 = pnand %p6319_p13, %p7792_p12  ;;  %p6326_p3 = por %p6325_p9, %p6324_p5 }
 0x1f1   : > { %p6322_p7 = pneg %p6321_p10  ;;  %p6328_p11 = por %p6327_p4, %p6326_p3 }
 0x1f3   : > { %p6329_p8 = pnand %p6328_p11, %p6322_p7 }
 0x1f5   : > { %6332 = shalt.err (!%p6329_p8)
}
 0x1f6   : > { %s6333_s4 = scalar_lea.vmem %s953_s17, 16  ;;  %s6472_s8 = smov [#allocation24]  }
 0x1f7   : > { %p6334_p2 = scmp.ne.s32.totalorder %s953_s17, %s6333_s4  ;;  %s6338_s2 = sshll.u32 %s6472_s8, 4  ;;  %s6339_s2 = int_to_ptr.vmem [resolvable:$false] %s6338_s2 }
 0x1f8   : > { %s6340_s14 = scalar_lea.vmem %s6339_s2, 32  ;;  %p6341_p13 = scmp.lt.s32.totalorder %s953_s17, %s6339_s2 }
 0x1f9   : > { %p6336_p6 = pnand %p6334_p2, %p7792_p12  ;;  %p6342_p10 = scmp.lt.s32.totalorder %s6340_s14, %s6333_s4 }
 0x1fb   : > { %p6337_p0 = pneg %p6336_p6  ;;  %p6343_p1 = por %p6342_p10, %p6341_p13 }
 0x1fd   : > { %p6344_p5 = pnand %p6343_p1, %p6337_p0 }
 0x1ff   : > { %6347 = shalt.err (!%p6344_p5)
}
 0x200   : > { %p7804_p9 = scmp.ne.s32.totalorder %s7766_s0, 0  ;;  %s7805_s15 = sld [smem:[#allocation48_spill]] }
 0x202   : > { %5530 = dma.hbm_to_vmem [thread:$0]  (!%p7804_p9), %s7125_s19, 16, %s953_s17, %s943_s9  }
 0x206   : > { %p7806_p7 = scmp.ne.s32.totalorder %s7805_s15, 0 }
 0x207   : > { %s7807_s6 = sld [smem:[#allocation44_spill]] (!%p7806_p7) }
 0x208   : > { %961 = sbr.rel (%p7806_p7) target bundleno = 5897 (0x1709), region = 116 }
 0x20d   : > { %p7808_p3 = scmp.eq.s32.totalorder (!%p7806_p7), %s7807_s6, 0 }
 0x20f   : > { %6391 = dma.done.wait (%p7808_p3), [#allocation4], 8192   ;;  %p7809_p12 = pmov %p7808_p3 }
 0x210   : > { %p7810_p4 = pmov %p7808_p3 }
 0x211   : > { %6393 = vsyncadd (%p7809_p12), [#allocation4], 4294959104 }
 0x212   : > { %6395 = dma.done.wait (%p7810_p4), [#allocation7], 32   ;;  %p7811_p11 = pmov %p7808_p3 }
 0x213   : > { %s7812_s20 = sld [smem:[#allocation42_spill]]  ;;  %s7813_s0 = sld [smem:[#allocation47_spill]] }
 0x214   : > { %6397 = vsyncadd (%p7811_p11), [#allocation7], 4294967264  ;;  %s7157_s18 = sand.u32 1, %s7807_s6  }
 0x215   : > { %s976_s27 = scalar_lea.sflag [#allocation10], %s7157_s18 }
 0x219   : > { %s7160_s12 = sand.u32 1, %s7812_s20   ;;  %p7814_p1 = scmp.ne.s32.totalorder %s7813_s0, 0 }
 0x21a   : > { %s5426_s25 = smul.u32 192, %s7160_s12 }
 0x21c   : > { %s7164_s28 = scalar_lea.vmem [#allocation9], %s5426_s25 }
 0x21d   : > { %6399 = dma.done.wait (%p7814_p1), %s976_s27, 3120  }
 0x21e   : > { %6401 = vsyncadd (%p7814_p1), %s976_s27, 4294964176  ;;  %s5427_s19 = smul.u32 3, %s7160_s12  ;;  %s4877_s30 = sshll.u32 %s7160_s12, 6 }
 0x21f   : > { %s994_s9 = scalar_lea.sflag [#allocation13], %s7157_s18  ;;  %s7175_s10 = scalar_lea.vmem [#allocation12], %s4877_s30 }
 0x220   : > { %s7172_s17 = scalar_lea.vmem [#allocation11], %s5427_s19 }
 0x221   : > { %6403 = dma.done.wait (%p7814_p1), %s994_s9, 1040  }
 0x222   : > { %6405 = vsyncadd (%p7814_p1), %s994_s9, 4294966256  ;;  %s1005_s21 = scalar_lea.vmem [#allocation14], %s7160_s12  ;;  %s1011_s5 = scalar_lea.sflag [#allocation16], %s7157_s18 }
 0x223   : > { %s1013_s26 = scalar_lea.vmem [#allocation15], %s7160_s12 }
 0x224   : > { %6407 = dma.done.wait (%p7814_p1), %s1011_s5, 32  }
 0x225   : > { %6409 = vsyncadd (%p7814_p1), %s1011_s5, 4294967264  ;;  %s4878_s3 = sshll.u32 %s7160_s12, 7  ;;  %s1021_s22 = scalar_lea.vmem [#allocation17], %s7160_s12 }
 0x226   : > { %s1027_s4 = scalar_lea.sflag [#allocation19], %s7157_s18  ;;  %s7191_s8 = scalar_lea.vmem [#allocation18], %s4878_s3 }
 0x227   : > { %6411 = dma.done.wait (%p7814_p1), %s1027_s4, 4096  }
 0x228   : > { %6413 = vsyncadd (%p7814_p1), %s1027_s4, 4294963200  ;;  %s7197_s2 = scalar_lea.vmem [#allocation20], %s4878_s3  ;;  %s1045_s14 = scalar_lea.sflag [#allocation22], %s7157_s18 }
 0x229   : > { %s1047_s15 = scalar_lea.vmem [#allocation21], %s7160_s12 }
 0x22a   : > { %6415 = dma.done.wait (%p7814_p1), %s1045_s14, 32  }
 0x22b   : > { %6417 = vsyncadd (%p7814_p1), %s1045_s14, 4294967264  ;;  %s1055_s20 = scalar_lea.vmem [#allocation23], %s7160_s12  ;;  %s1061_s25 = scalar_lea.sflag [#allocation25], %s7157_s18 }
 0x22c   : > { %6419 = dma.done.wait (%p7814_p1), %s1061_s25, 16  }
 0x22d   : > { %6421 = vsyncadd (%p7814_p1), %s1061_s25, 4294967280  ;;  %p7815_p8 = pmov %p7808_p3 }
 0x22e   : > { %p7816_p2 = pmov %p7808_p3 }
 0x22f   : > { %6423 = dma.done.wait (%p7815_p8), [#allocation25], 16  }
 0x230   : > { %6425 = vsyncadd (%p7816_p2), [#allocation25], 4294967280  ;;  %p7817_p6 = pmov %p7816_p2 }
 0x231   : > { %p7818_p0 = pmov %p7816_p2 }
 0x232   : > { %6427 = dma.done.wait (%p7817_p6), [#allocation28], 2080  }
 0x233   : > { %6429 = vsyncadd (%p7818_p0), [#allocation28], 4294965216  ;;  %p1183_p13 = scmp.lt.s32.totalorder %s7807_s6, 1  ;;  %s7819_s9 = sld [smem:[#allocation62_spill]] }
 0x234   : > { %p7820_p10 = scmp.ne.s32.totalorder %s7807_s6, 0 }
 0x235   : > { %s1184_s18 = scalar_select %p1183_p13, %s7807_s6, 1 }
 0x236   : > { %1191 = sbr.rel (%p7820_p10) target bundleno = 1278 (0x4fe), region = 188  ;;  %s7821_s14 = sld [smem:[#allocation49_spill]] (!%p7820_p10)  ;;  %v6473_v1 = vmov (!%p7820_p10), 0   ;;  %v5605_v3 = vld [vmem:[#allocation3 + $0x40] sm:$0xff] (!%p7820_p10)   ;;  %v5609_v7 = vld [vmem:[#allocation3 + $0x48] sm:$0xff] (!%p7820_p10)   ;;  %v5613_v11 = vld [vmem:[#allocation3 + $0x50] sm:$0xff] (!%p7820_p10)   ;;  %v1194_v41 = vlaneseq (!%p7820_p10) }
 0x237   : > { %s4883_s19 = sshll.u32 %s1184_s18, 1  ;;  %5603 = vset.pattern.permute.xlu0 (!%p7820_p10), %v6473_v1  ;;  %5604 = vset.pattern.permute.xlu1 (!%p7820_p10), %v6473_v1  ;;  %v5606_v4 = vld [vmem:[#allocation3 + $0xc0] sm:$0xff] (!%p7820_p10)   ;;  %v5610_v8 = vld [vmem:[#allocation3 + $0xc8] sm:$0xff] (!%p7820_p10)   ;;  %v5614_v12 = vld [vmem:[#allocation3 + $0xd0] sm:$0xff] (!%p7820_p10)   ;;  %s7822_s18 = sld [smem:[#allocation50_spill]] (!%p7820_p10) }
 0x238   : > { %5113 = vmatprep.subr.bf16.mxu0 (!%p7820_p10), %v5605_v3  ;;  %v5607_v5 = vld [vmem:[#allocation3] sm:$0xff] (!%p7820_p10)   ;;  %5135 = vmatprep.subr.bf16.mxu1 (!%p7820_p10), %v5606_v4  ;;  %v5611_v9 = vld [vmem:[#allocation3 + $0x8] sm:$0xff] (!%p7820_p10)   ;;  %v5615_v13 = vld [vmem:[#allocation3 + $0x10] sm:$0xff] (!%p7820_p10)   ;;  %v7245_v42 = vand.u32 (!%p7820_p10), 127, %v1194_v41  ;;  %v6474_v51 = vmov (!%p7820_p10), 1.0|1.0  }
 0x239   : > { %s7225_s5 = scalar_lea.vmem %s7819_s9, %s4883_s19  ;;  %v5608_v6 = vld [vmem:[#allocation3 + $0x80] sm:$0xff] (!%p7820_p10)   ;;  %5114 = vmatpush3.bf16.msra.mxu0 (!%p7820_p10), %v5607_v5  ;;  %v5612_v10 = vld [vmem:[#allocation3 + $0x88] sm:$0xff] (!%p7820_p10)   ;;  %v5616_v14 = vld [vmem:[#allocation3 + $0x90] sm:$0xff] (!%p7820_p10)   ;;  %s7823_s3 = sld [smem:[#allocation53_spill]] (!%p7820_p10) }
 0x23a   : > { %5136 = vmatpush3.bf16.msra.mxu1 (!%p7820_p10), %v5608_v6  ;;  %5115 = vmatprep.subr.bf16.mxu0 (!%p7820_p10), %v5609_v7  ;;  %v5617_v15 = vld [vmem:[#allocation3 + $0x58] sm:$0xff] (!%p7820_p10)   ;;  %v5621_v19 = vld [vmem:[#allocation3 + $0x60] sm:$0xff] (!%p7820_p10)   ;;  %v5625_v23 = vld [vmem:[#allocation3 + $0x68] sm:$0xff] (!%p7820_p10)   ;;  %v1196_v44 = vadd.s32 (!%p7820_p10), 128, %v7245_v42  ;;  %v1198_v45 = vadd.s32 (!%p7820_p10), 384, %v7245_v42  ;;  %v1197_v47 = vadd.s32 (!%p7820_p10), 256, %v7245_v42 }
 0x23b   : > { %5137 = vmatprep.subr.bf16.mxu1 (!%p7820_p10), %v5610_v8  ;;  %v5618_v16 = vld [vmem:[#allocation3 + $0xd8] sm:$0xff] (!%p7820_p10)   ;;  %v5622_v20 = vld [vmem:[#allocation3 + $0xe0] sm:$0xff] (!%p7820_p10)   ;;  %v5626_v24 = vld [vmem:[#allocation3 + $0xe8] sm:$0xff] (!%p7820_p10)   ;;  %v1200_v48 = vadd.s32 (!%p7820_p10), 640, %v7245_v42  ;;  %v1202_v50 = vadd.s32 (!%p7820_p10), 896, %v7245_v42  ;;  %s7824_s6 = sld [smem:[#allocation54_spill]] (!%p7820_p10) }
 0x23c   : > { %v1192_v0 = vld [vmem:[%s7821_s14] sm:$0xff] (!%p7820_p10)  ;;  %v1193_v2 = vld [vmem:[%s7821_s14 + $0x8] sm:$0xff] (!%p7820_p10)  ;;  %v5623_v21 = vld [vmem:[#allocation3 + $0x20] sm:$0xff] (!%p7820_p10)  }
 0x23d   : > { %1204 = vperm.xlu0 %5603, %v1192_v0   ;;  %5116 = vmatpush3.bf16.msra.mxu0 %v5611_v9  ;;  %v5619_v17 = vld [vmem:[#allocation3 + $0x18] sm:$0xff]   ;;  %v5624_v22 = vld [vmem:[#allocation3 + $0xa0] sm:$0xff]   ;;  %v5627_v25 = vld [vmem:[#allocation3 + $0x28] sm:$0xff]  }
 0x23e   : > { %5138 = vmatpush3.bf16.msra.mxu1 %v5612_v10  ;;  %5117 = vmatprep.subr.bf16.mxu0 %v5613_v11  ;;  %v5620_v18 = vld [vmem:[#allocation3 + $0x98] sm:$0xff]   ;;  %v5628_v26 = vld [vmem:[#allocation3 + $0xa8] sm:$0xff]   ;;  %v5629_v27 = vld [vmem:[#allocation3 + $0x70] sm:$0xff]  }
 0x23f   : > { %5139 = vmatprep.subr.bf16.mxu1 %v5614_v12  ;;  %v5630_v28 = vld [vmem:[#allocation3 + $0xf0] sm:$0xff]   ;;  %v5633_v31 = vld [vmem:[#allocation3 + $0x78] sm:$0xff]   ;;  %v5637_v35 = vld [vmem:[#allocation3 + $0x140] sm:$0xff]  }
 0x240   : > { %v5631_v29 = vld [vmem:[#allocation3 + $0x30] sm:$0xff]   ;;  %v5634_v32 = vld [vmem:[#allocation3 + $0xf8] sm:$0xff]   ;;  %v5638_v36 = vld [vmem:[#allocation3 + $0x1c0] sm:$0xff]  }
 0x241   : > { %1207 = vperm.xlu0 %5603, %v1193_v2   ;;  %5118 = vmatpush3.bf16.msra.mxu0 %v5615_v13  ;;  %v5632_v30 = vld [vmem:[#allocation3 + $0xb0] sm:$0xff]   ;;  %v5635_v33 = vld [vmem:[#allocation3 + $0x38] sm:$0xff]   ;;  %v5639_v49 = vld [vmem:[#allocation3 + $0x100] sm:$0xff]  }
 0x242   : > { %5140 = vmatpush3.bf16.msra.mxu1 %v5616_v14  ;;  %5119 = vmatprep.subr.bf16.mxu0 %v5617_v15  ;;  %v5636_v34 = vld [vmem:[#allocation3 + $0xb8] sm:$0xff]   ;;  %v1394_v37 = vld [vmem:[%s7822_s18] sm:$0xff]  ;;  %v5640_v52 = vld [vmem:[#allocation3 + $0x180] sm:$0xff]  }
 0x243   : > { %5141 = vmatprep.subr.bf16.mxu1 %v5618_v16  ;;  %vm1396_vm0 = vcmp.eq.s32.totalorder %v1394_v37, 0  ;;  %v1395_v38 = vld [vmem:[%s7822_s18 + $0x8] sm:$0xff]  ;;  %v5641_v53 = vld [vmem:[#allocation3 + $0x148] sm:$0xff]   ;;  %v5645_v57 = vld [vmem:[#allocation3 + $0x150] sm:$0xff]  }
 0x244   : > { %v1400_v39 = vsel %vm1396_vm0, 1, %v6473_v1  ;;  %vm1397_vm1 = vcmp.eq.s32.totalorder %v1395_v38, 0  ;;  %v5642_v54 = vld [vmem:[#allocation3 + $0x1c8] sm:$0xff]   ;;  %v5646_v58 = vld [vmem:[#allocation3 + $0x1d0] sm:$0xff]   ;;  %v5649_v61 = vld [vmem:[#allocation3 + $0x158] sm:$0xff]  }
 0x245   : > { %5120 = vmatpush3.bf16.msra.mxu0 %v5619_v17  ;;  %1403 = vperm.xlu1 %5604, %v1400_v39   ;;  %v1401_v40 = vsel %vm1397_vm1, 1, %v6473_v1  ;;  %v5643_v55 = vld [vmem:[#allocation3 + $0x108] sm:$0xff]   ;;  %v5647_v59 = vld [vmem:[#allocation3 + $0x110] sm:$0xff]   ;;  %v5650_v62 = vld [vmem:[#allocation3 + $0x1d8] sm:$0xff]   ;;  %v1199_v17 = vadd.s32 512, %v7245_v42 }
 0x246   : > { %5142 = vmatpush3.bf16.msra.mxu1 %v5620_v18  ;;  %5121 = vmatprep.subr.bf16.mxu0 %v5621_v19  ;;  %v5644_v56 = vld [vmem:[#allocation3 + $0x188] sm:$0xff]   ;;  %v5648_v60 = vld [vmem:[#allocation3 + $0x190] sm:$0xff]   ;;  %v5651_v63 = vld [vmem:[#allocation3 + $0x118] sm:$0xff]   ;;  %v1201_v18 = vadd.s32 768, %v7245_v42 }
 0x247   : > { %5143 = vmatprep.subr.bf16.mxu1 %v5622_v20  ;;  %v5652_v0 = vld [vmem:[#allocation3 + $0x198] sm:$0xff]   ;;  %v5653_v1 = vld [vmem:[#allocation3 + $0x160] sm:$0xff]   ;;  %v5657_v5 = vld [vmem:[#allocation3 + $0x168] sm:$0xff]  }
 0x248   : > { %v5654_v2 = vld [vmem:[#allocation3 + $0x1e0] sm:$0xff]   ;;  %v5658_v6 = vld [vmem:[#allocation3 + $0x1e8] sm:$0xff]   ;;  %v5661_v9 = vld [vmem:[#allocation3 + $0x170] sm:$0xff]  }
 0x249   : > { %5122 = vmatpush3.bf16.msra.mxu0 %v5623_v21  ;;  %1406 = vperm.xlu1 %5604, %v1401_v40   ;;  %v5655_v3 = vld [vmem:[#allocation3 + $0x120] sm:$0xff]   ;;  %v5659_v7 = vld [vmem:[#allocation3 + $0x128] sm:$0xff]   ;;  %v5662_v10 = vld [vmem:[#allocation3 + $0x1f0] sm:$0xff]  }
 0x24a   : > { %5144 = vmatpush3.bf16.msra.mxu1 %v5624_v22  ;;  %5123 = vmatprep.subr.bf16.mxu0 %v5625_v23  ;;  %v5656_v4 = vld [vmem:[#allocation3 + $0x1a0] sm:$0xff]   ;;  %v5660_v8 = vld [vmem:[#allocation3 + $0x1a8] sm:$0xff]   ;;  %v5663_v11 = vld [vmem:[#allocation3 + $0x130] sm:$0xff]  }
 0x24b   : > { %5145 = vmatprep.subr.bf16.mxu1 %v5626_v24  ;;  %v5664_v12 = vld [vmem:[#allocation3 + $0x1b0] sm:$0xff]   ;;  %v5665_v13 = vld [vmem:[#allocation3 + $0x178] sm:$0xff]  }
 0x24c   : > { %v5666_v14 = vld [vmem:[#allocation3 + $0x1f8] sm:$0xff]   ;;  %v1393_v21 = vld [vmem:[%s7823_s3] sm:$0xff] }
 0x24d   : > { %5124 = vmatpush3.bf16.msra.mxu0 %v5627_v25  ;;  %v5667_v15 = vld [vmem:[#allocation3 + $0x138] sm:$0xff]  }
 0x24e   : > { %5146 = vmatpush3.bf16.msra.mxu1 %v5628_v26  ;;  %5125 = vmatprep.subr.bf16.mxu0 %v5629_v27  ;;  %v5668_v16 = vld [vmem:[#allocation3 + $0x1b8] sm:$0xff]  }
 0x24f   : > { %5147 = vmatprep.subr.bf16.mxu1 %v5630_v28 }
 0x251   : > { %5126 = vmatpush3.bf16.msra.mxu0 %v5631_v29 }
 0x252   : > { %5148 = vmatpush3.bf16.msra.mxu1 %v5632_v30  ;;  %5127 = vmatprep.subr.bf16.mxu0 %v5633_v31 }
 0x253   : > { %5149 = vmatprep.subr.bf16.mxu1 %v5634_v32 }
 0x255   : > { %5128 = vmatpush3.bf16.msra.mxu0 %v5635_v33 }
 0x256   : > { %5150 = vmatpush3.bf16.msra.mxu1 %v5636_v34  ;;  %5157 = vmatprep.subr.bf16.mxu0 %v5637_v35 }
 0x257   : > { %5179 = vmatprep.subr.bf16.mxu1 %v5638_v36 }
 0x2bc   : > { %v7247_v43 = vpop.permute.xlu0 %1204 }
 0x2bd   : > { %vm1210_vm2 = vcmp.eq.s32.totalorder %v7247_v43, %v1196_v44  ;;  %vm1212_vm7 = vcmp.eq.s32.totalorder %v7247_v43, %v1198_v45  ;;  %vm1209_vm10 = vcmp.eq.s32.totalorder %v7247_v43, %v7245_v42  ;;  %vm1211_vm13 = vcmp.eq.s32.totalorder %v7247_v43, %v1197_v47 }
 0x2be   : > { %vm1214_vm0 = vcmp.eq.s32.totalorder %v7247_v43, %v1200_v48 }
 0x2c0   : > { %v7251_v46 = vpop.permute.xlu0 %1207 }
 0x2c1   : > { %vm1218_vm3 = vcmp.eq.s32.totalorder %v7251_v46, %v1196_v44  ;;  %vm1220_vm4 = vcmp.eq.s32.totalorder %v7251_v46, %v1198_v45  ;;  %vm1217_vm5 = vcmp.eq.s32.totalorder %v7251_v46, %v7245_v42  ;;  %vm1219_vm8 = vcmp.eq.s32.totalorder %v7251_v46, %v1197_v47  ;;  %v4901_v44 = vld [vmem:[%s7824_s6] ss:$0 sm:$0xff]  ;;  %v4902_v45 = vld [vmem:[%s7824_s6 + $0x1] ss:$0 sm:$0xff] }
 0x2c2   : > { %vm4967_vm6 = vmpackc.low %vm1218_vm3, %vm1210_vm2  ;;  %vm1222_vm11 = vcmp.eq.s32.totalorder %v7251_v46, %v1200_v48  ;;  %vm1224_vm14 = vcmp.eq.s32.totalorder %v7251_v46, %v1202_v50  ;;  %vm1216_vm2 = vcmp.eq.s32.totalorder %v7247_v43, %v1202_v50 }
 0x2c3   : > { %4968 = vmatprep.mubr.msk.bf16.mxu0 %vm4967_vm6, %v6474_v51  ;;  %vm4971_vm9 = vmpackc.low %vm1220_vm4, %vm1212_vm7  ;;  %vm1221_vm4 = vcmp.eq.s32.totalorder %v7251_v46, %v1199_v17  ;;  %vm1213_vm6 = vcmp.eq.s32.totalorder %v7247_v43, %v1199_v17 }
 0x2c4   : > { %4972 = vmatprep.mubr.msk.bf16.mxu1 %vm4971_vm9, %v6474_v51  ;;  %vm4969_vm12 = vmpackc.low %vm1217_vm5, %vm1209_vm10  ;;  %vm1223_vm5 = vcmp.eq.s32.totalorder %v7251_v46, %v1201_v18  ;;  %v1404_v36 = vpop.permute.xlu1 %1403 }
 0x2c5   : > { %4970 = vmatmul.mubr.msk.bf16.vlgmr.msra.gmra.mrb[0].mxu0 %vm4969_vm12, %v6474_v51  ;;  %vm4973_vm15 = vmpackc.low %vm1219_vm8, %vm1211_vm13  ;;  %vm1215_vm8 = vcmp.eq.s32.totalorder %v7247_v43, %v1201_v18  ;;  %vm1408_vm10 = vcmp.eq.s32.totalorder %v1404_v36, 1 }
 0x2c6   : > { %4974 = vmatmul.mubr.msk.bf16.vlgmr.msra.gmra.mrb[0].mxu1 %vm4973_vm15, %v6474_v51  ;;  %5158 = vmatpush3.bf16.msra.mxu0 %v5639_v49  ;;  %vm4975_vm1 = vmpackc.low %vm1222_vm11, %vm1214_vm0 }
 0x2c7   : > { %5180 = vmatpush3.bf16.msra.mxu1 %v5640_v52  ;;  %4976 = vmatprep.mubr.msk.bf16.mxu0 %vm4975_vm1, %v6474_v51  ;;  %vm4979_vm3 = vmpackc.low %vm1224_vm14, %vm1216_vm2 }
 0x2c8   : > { %4980 = vmatprep.mubr.msk.bf16.mxu1 %vm4979_vm3, %v6474_v51  ;;  %5159 = vmatprep.subr.bf16.mxu0 %v5641_v53  ;;  %vm4977_vm7 = vmpackc.low %vm1221_vm4, %vm1213_vm6  ;;  %v1407_v38 = vpop.permute.xlu1 %1406  ;;  %v1418_v53 = vsel %vm1408_vm10, %v4901_v44, %v4902_v45 }
 0x2c9   : > { %5181 = vmatprep.subr.bf16.mxu1 %v5642_v54  ;;  %vm4981_vm9 = vmpackc.low %vm1223_vm5, %vm1215_vm8  ;;  %vm1409_vm11 = vcmp.eq.s32.totalorder %v1407_v38, 1 }
 0x2ca   : > { %5160 = vmatpush3.bf16.msra.mxu0 %v5643_v55 }
 0x2cb   : > { %5182 = vmatpush3.bf16.msra.mxu1 %v5644_v56  ;;  %5161 = vmatprep.subr.bf16.mxu0 %v5645_v57 }
 0x2cc   : > { %5183 = vmatprep.subr.bf16.mxu1 %v5646_v58  ;;  %v1419_v58 = vsel %vm1409_vm11, %v4901_v44, %v4902_v45 }
 0x2ce   : > { %5162 = vmatpush3.bf16.msra.mxu0 %v5647_v59 }
 0x2cf   : > { %5184 = vmatpush3.bf16.msra.mxu1 %v5648_v60  ;;  %5163 = vmatprep.subr.bf16.mxu0 %v5649_v61 }
 0x2d0   : > { %5185 = vmatprep.subr.bf16.mxu1 %v5650_v62 }
 0x2d2   : > { %5164 = vmatpush3.bf16.msra.mxu0 %v5651_v63 }
 0x2d3   : > { %5186 = vmatpush3.bf16.msra.mxu1 %v5652_v0  ;;  %5165 = vmatprep.subr.bf16.mxu0 %v5653_v1 }
 0x2d4   : > { %5187 = vmatprep.subr.bf16.mxu1 %v5654_v2 }
 0x2d6   : > { %5166 = vmatpush3.bf16.msra.mxu0 %v5655_v3 }
 0x2d7   : > { %5188 = vmatpush3.bf16.msra.mxu1 %v5656_v4  ;;  %5167 = vmatprep.subr.bf16.mxu0 %v5657_v5 }
 0x2d8   : > { %5189 = vmatprep.subr.bf16.mxu1 %v5658_v6 }
 0x2da   : > { %5168 = vmatpush3.bf16.msra.mxu0 %v5659_v7 }
 0x2db   : > { %5190 = vmatpush3.bf16.msra.mxu1 %v5660_v8  ;;  %5169 = vmatprep.subr.bf16.mxu0 %v5661_v9 }
 0x2dc   : > { %5191 = vmatprep.subr.bf16.mxu1 %v5662_v10 }
 0x2de   : > { %5170 = vmatpush3.bf16.msra.mxu0 %v5663_v11  ;;  %v4983_v11 = vld [vmem:[#allocation6] ss:$0 sm:$0xff] }
 0x2df   : > { %5192 = vmatpush3.bf16.msra.mxu1 %v5664_v12  ;;  %5171 = vmatprep.subr.bf16.mxu0 %v5665_v13  ;;  %v4984_v13 = vld [vmem:[#allocation8] ss:$0 sm:$0xff] }
 0x2e0   : > { %5193 = vmatprep.subr.bf16.mxu1 %v5666_v14 }
 0x2e2   : > { %5172 = vmatpush3.bf16.msra.mxu0 %v5667_v15 }
 0x2e3   : > { %5194 = vmatpush3.bf16.msra.mxu1 %v5668_v16 }
 0x2e5   : > { %4978 = vmatmul.mubr.msk.bf16.vlgmr.msra.gmra.mrb[4].mxu0 %vm4977_vm7, %v6474_v51 }
 0x2e6   : > { %4982 = vmatmul.mubr.msk.bf16.vlgmr.msra.gmra.mrb[4].mxu1 %vm4981_vm9, %v6474_v51 }
 0x398   : > { %v5129_v19 = vpop.f32.mrb[0].mxu0 }
 0x399   : > { %v5151_v20 = vpop.f32.mrb[0].mxu1  ;;  %v5130_v22 = vpop.f32.mrb[1].mxu0 }
 0x39a   : > { %v5131_v23 = vadd.f32 %v5130_v22, %v5129_v19  ;;  %v5152_v24 = vpop.f32.mrb[1].mxu1  ;;  %v5132_v25 = vpop.f32.mrb[2].mxu0 }
 0x39b   : > { %v5153_v26 = vadd.f32 %v5152_v24, %v5151_v20  ;;  %v5154_v27 = vpop.f32.mrb[2].mxu1  ;;  %v5133_v28 = vpop.f32.mrb[3].mxu0 }
 0x39c   : > { %v1839_v29 = vadd.f32 %v5131_v23, %v1393_v21  ;;  %v5134_v30 = vadd.f32 %v5133_v28, %v5132_v25  ;;  %v5155_v31 = vpop.f32.mrb[3].mxu1 }
 0x39d   : > { %v5156_v32 = vadd.f32 %v5155_v31, %v5154_v27 }
 0x39e   : > { %v1880_v33 = vadd.f32 %v5153_v26, %v1839_v29  ;;  %v1842_v34 = vadd.f32 %v5134_v30, %v1393_v21 }
 0x3a0   : > { %v1883_v35 = vadd.f32 %v5156_v32, %v1842_v34 }
 0x3b8   : > { %v5173_v37 = vpop.f32.mrb[4].mxu0 }
 0x3b9   : > { %v5195_v39 = vpop.f32.mrb[4].mxu1  ;;  %v5174_v40 = vpop.f32.mrb[5].mxu0 }
 0x3ba   : > { %v5175_v41 = vadd.f32 %v5174_v40, %v5173_v37  ;;  %v5196_v42 = vpop.f32.mrb[5].mxu1  ;;  %v5176_v43 = vpop.f32.mrb[6].mxu0 }
 0x3bb   : > { %v5197_v46 = vadd.f32 %v5196_v42, %v5195_v39  ;;  %v5198_v47 = vpop.f32.mrb[6].mxu1  ;;  %v5177_v48 = vpop.f32.mrb[7].mxu0 }
 0x3bc   : > { %v1921_v49 = vadd.f32 %v5175_v41, %v1880_v33  ;;  %v5178_v50 = vadd.f32 %v5177_v48, %v5176_v43  ;;  %v5199_v51 = vpop.f32.mrb[7].mxu1 }
 0x3bd   : > { %v5200_v52 = vadd.f32 %v5199_v51, %v5198_v47 }
 0x3be   : > { %v1962_v54 = vadd.f32 %v5197_v46, %v1921_v49  ;;  %v1924_v55 = vadd.f32 %v5178_v50, %v1883_v35 }
 0x3c0   : > { %v1965_v56 = vadd.f32 %v5200_v52, %v1924_v55  ;;  %v1968_v57 = vadd.f32 %v1962_v54, %v1418_v53 }
 0x3c2   : > { %1972 = vadd.xlane.f32.xlu0 %v1968_v57  ;;  %v1969_v59 = vadd.f32 %v1965_v56, %v1419_v58 }
 0x3c4   : > { %1974 = vadd.xlane.f32.xlu1 %v1969_v59 }
 0x44f   : > { %v1973_v60 = vpop.xlane.xlu0 %1972 }
 0x450   : > { %v1977_v61 = vmul.f32 0.0078125, %v1973_v60 }
 0x451   : > { %v1975_v62 = vpop.xlane.xlu1 %1974 }
 0x452   : > { %v1979_v63 = vsub.f32 %v1968_v57, %v1977_v61  ;;  %v1978_v0 = vmul.f32 0.0078125, %v1975_v62 }
 0x454   : > { %v1980_v1 = vsub.f32 %v1969_v59, %v1978_v0  ;;  %v1981_v2 = vmul.f32 %v1979_v63, %v1979_v63 }
 0x456   : > { %1983 = vadd.xlane.f32.xlu0 %v1981_v2  ;;  %v1982_v3 = vmul.f32 %v1980_v1, %v1980_v1 }
 0x45a   : > { %1985 = vadd.xlane.f32.xlu0 %v1982_v3 }
 0x4e3   : > { %v1984_v4 = vpop.xlane.xlu0 %1983 }
 0x4e4   : > { %v1987_v5 = vmul.f32 0.0078125, %v1984_v4 }
 0x4e6   : > { %v1989_v6 = vadd.f32 1e-12, %v1987_v5 }
 0x4e7   : > { %v1986_v7 = vpop.xlane.xlu0 %1985 }
 0x4e8   : > { %5669 = vrsqrt.f32 %v1989_v6  ;;  %v1988_v8 = vmul.f32 0.0078125, %v1986_v7 }
 0x4ea   : > { %v1990_v9 = vadd.f32 1e-12, %v1988_v8 }
 0x4ec   : > { %5671 = vrsqrt.f32 %v1990_v9 }
 0x4f2   : > { %v5670_v10 = vpop.eup %5669 }
 0x4f3   : > { %v1993_v12 = vmul.f32 %v5670_v10, %v1979_v63 }
 0x4f5   : > { %v2001_v14 = vmul.f32 %v4983_v11, %v1993_v12 }
 0x4f6   : > { %v5672_v15 = vpop.eup %5671 }
 0x4f7   : > { %v2009_v16 = vadd.f32 %v4984_v13, %v2001_v14  ;;  %v1994_v17 = vmul.f32 %v5672_v15, %v1980_v1 }
 0x4f9   : > { %2011 = vst [vmem:[#allocation2] sm:$0xff] %v2009_v16  ;;  %v2002_v18 = vmul.f32 %v4983_v11, %v1994_v17 }
 0x4fb   : > { %v2010_v19 = vadd.f32 %v4984_v13, %v2002_v18 }
 0x4fd   : > { %2012 = vst [vmem:[#allocation2 + $0x8] sm:$0xff] %v2010_v19 }
 0x4fe PF: > { %v5688_v20 = vld [vmem:[%s7164_s28 + $0x4] ss:$12 sps:$4 sm:$0xff]   ;;  %v5690_v21 = vld [vmem:[%s7164_s28] ss:$12 sps:$4 sm:$0xff]   ;;  %v6475_v22 = vmov 0   ;;  %v6476_v23 = vmov 0.0   ;;  %v2023_v49 = vlaneseq }
 0x4ff   : > { %2252 = vmatprep.mubr.bf16.mxu0 %v6475_v22  ;;  %5282 = vmatprep.subr.bf16.mxu1 %v6476_v23  ;;  %v5691_v24 = vld [vmem:[%s7164_s28 + $0x1c] ss:$12 sps:$4 sm:$0xff]   ;;  %vm6477_vm12 = vmmov 0   ;;  %v5693_v25 = vld [vmem:[%s7164_s28 + $0x18] ss:$12 sps:$4 sm:$0xff]   ;;  %vm2304_vm13 = vcmask 261120  }
 0x500   : > { %2220 = vmatprep.subr.bf16.mxu0 %v5688_v20  ;;  %5298 = vmatprep.mubr.msk.bf16.mxu1 %vm6477_vm12, %v6476_v23  ;;  %v5694_v26 = vld [vmem:[%s7164_s28 + $0x34] ss:$12 sps:$4 sm:$0xff]   ;;  %v5696_v27 = vld [vmem:[%s7164_s28 + $0x30] ss:$12 sps:$4 sm:$0xff]   ;;  %v5697_v28 = vld [vmem:[%s7164_s28 + $0x4c] ss:$12 sps:$4 sm:$0xff]  }
 0x501   : > { %2221 = vmatpush1.bf16.msra.mxu0 %v5690_v21  ;;  %v5699_v29 = vld [vmem:[%s7164_s28 + $0x48] ss:$12 sps:$4 sm:$0xff]   ;;  %v5700_v30 = vld [vmem:[%s7164_s28 + $0x64] ss:$12 sps:$4 sm:$0xff]   ;;  %v5713_v32 = vld [vmem:[%s7164_s28 + $0x20] ss:$12 sps:$4 sm:$0xff]  }
 0x502   : > { %2222 = vmatprep.subr.bf16.mxu0 %v5691_v24  ;;  %v5712_v31 = vld [vmem:[%s7164_s28 + $0x8] ss:$12 sps:$4 sm:$0xff]   ;;  %v5702_v33 = vld [vmem:[%s7164_s28 + $0x60] ss:$12 sps:$4 sm:$0xff]   ;;  %v5714_v35 = vld [vmem:[%s7164_s28 + $0x38] ss:$12 sps:$4 sm:$0xff]  }
 0x503   : > { %5283 = vmatpush3.bf16.msra.mxu1 %v5712_v31  ;;  %v5703_v34 = vld [vmem:[%s7164_s28 + $0x7c] ss:$12 sps:$4 sm:$0xff]   ;;  %v5705_v36 = vld [vmem:[%s7164_s28 + $0x78] ss:$12 sps:$4 sm:$0xff]   ;;  %v5706_v37 = vld [vmem:[%s7164_s28 + $0x94] ss:$12 sps:$4 sm:$0xff]  }
 0x504   : > { %5284 = vmatprep.subr.bf16.mxu1 %v6476_v23  ;;  %v5715_v38 = vld [vmem:[%s7164_s28 + $0x50] ss:$12 sps:$4 sm:$0xff]   ;;  %v5709_v40 = vld [vmem:[%s7164_s28 + $0xac] ss:$12 sps:$4 sm:$0xff]   ;;  %v5716_v41 = vld [vmem:[%s7164_s28 + $0x68] ss:$12 sps:$4 sm:$0xff]  }
 0x505   : > { %2223 = vmatpush1.bf16.msra.mxu0 %v5693_v25  ;;  %v5708_v39 = vld [vmem:[%s7164_s28 + $0x90] ss:$12 sps:$4 sm:$0xff]   ;;  %v5711_v42 = vld [vmem:[%s7164_s28 + $0xa8] ss:$12 sps:$4 sm:$0xff]   ;;  %v5717_v45 = vld [vmem:[%s7164_s28 + $0x80] ss:$12 sps:$4 sm:$0xff]  }
 0x506   : > { %2224 = vmatprep.subr.bf16.mxu0 %v5694_v26  ;;  %v7323_v43 = vld [vmem:[#allocation2] sm:$0xff]  ;;  %v7325_v44 = vld [vmem:[#allocation2 + $0x8] sm:$0xff]  ;;  %v2024_v50 = vshrl.u32 %v2023_v49, 7  ;;  %v2075_v52 = vld [vmem:[%s7172_s17] sm:$0x7]  ;;  %s7825_s0 = sld [smem:[#allocation51_spill]] }
 0x507   : > { %5285 = vmatpush3.bf16.msra.mxu1 %v5713_v32  ;;  %v2042_v46 = vpack.c.bf16 %v7325_v44, %v7323_v43  ;;  %v5718_v47 = vld [vmem:[%s7164_s28 + $0x98] ss:$12 sps:$4 sm:$0xff]   ;;  %v5719_v48 = vld [vmem:[%s7164_s28 + $0xb0] ss:$12 sps:$4 sm:$0xff]   ;;  %s6478_s28 = smov 96   ;;  %vm2471_vm14 = vcmask 64512  }
 0x508   : > { %5286 = vmatprep.subr.bf16.mxu1 %v6476_v23  ;;  %v7342_v51 = vsub.s32 0, %v2024_v50  ;;  %v7345_v53 = vsub.s32 1, %v2024_v50  ;;  %v2087_v62 = vsub.s32 2, %v2024_v50  ;;  %v6479_v10 = vmov 1966171168   ;;  %s6480_s9 = smov 64  }
 0x509   : > { %2225 = vmatpush1.bf16.msra.mxu0 %v5696_v27  ;;  %v2021_v11 = vunpack.c.l.s4 %v6479_v10  ;;  %s6481_s3 = smov 32   ;;  %vm3670_vm15 = vcmask 523264   ;;  %vm3673_vm0 = vcmask 785408  }
 0x50a   : > { %2226 = vmatprep.subr.bf16.mxu0 %v5697_v28  ;;  %v2080_v54 = vrot.slane %v2075_v52, %v7342_v51  ;;  %v2084_v55 = vrot.slane %v2075_v52, %v7345_v53  ;;  %v2088_v0 = vrot.slane %v2075_v52, %v2087_v62 }
 0x50b   : > { %5287 = vmatpush3.bf16.msra.mxu1 %v5714_v35  ;;  %v2022_v13 = vunpack.c.0.s8 %v2021_v11 }
 0x50c   : > { %5288 = vmatprep.subr.bf16.mxu1 %v6476_v23  ;;  %v2015_v8 = vld [vmem:[%s7825_s0] sm:$0x3] }
 0x50d   : > { %2227 = vmatpush1.bf16.msra.mxu0 %v5699_v29  ;;  %v2016_v9 = vcvt.s32.f32 %v2015_v8  ;;  %v2025_v15 = vsub.s32 %v2022_v13, %v2024_v50 }
 0x50e   : > { %2228 = vmatprep.subr.bf16.mxu0 %v5700_v30 }
 0x50f   : > { %5289 = vmatpush3.bf16.msra.mxu1 %v5715_v38  ;;  %v2017_v12 = vsub.f32 1.0, %v2016_v9 }
 0x510   : > { %5290 = vmatprep.subr.bf16.mxu1 %v6476_v23 }
 0x511   : > { %2229 = vmatpush1.bf16.msra.mxu0 %v5702_v33  ;;  %v2018_v14 = vmul.f32 -1e+09, %v2017_v12 }
 0x512   : > { %2230 = vmatprep.subr.bf16.mxu0 %v5703_v34 }
 0x513   : > { %5291 = vmatpush3.bf16.msra.mxu1 %v5716_v41  ;;  %v2026_v16 = vrot.slane %v2018_v14, %v2025_v15 }
 0x514   : > { %5292 = vmatprep.subr.bf16.mxu1 %v6476_v23 }
 0x515   : > { %2231 = vmatpush1.bf16.msra.mxu0 %v5705_v36  ;;  %v2034_v17 = vrot.slane %v2026_v16, %v2025_v15  ;;  %v2027_v18 = vcombine.high %v2026_v16, %v2026_v16 }
 0x516   : > { %2232 = vmatprep.subr.bf16.mxu0 %v5706_v37 }
 0x517   : > { %5293 = vmatpush3.bf16.msra.mxu1 %v5717_v45  ;;  %v7383_v19 = vrot.slane %v2034_v17, %v7342_v51  ;;  %v2041_v20 = vrot.slane %v2027_v18, %v2025_v15 }
 0x518   : > { %5294 = vmatprep.subr.bf16.mxu1 %v6476_v23 }
 0x519   : > { %2233 = vmatpush1.bf16.msra.mxu0 %v5708_v39  ;;  %v7387_v27 = vrot.slane %v2041_v20, %v7342_v51 }
 0x51a   : > { %2234 = vmatprep.subr.bf16.mxu0 %v5709_v40 }
 0x51b   : > { %5295 = vmatpush3.bf16.msra.mxu1 %v5718_v47 }
 0x51c   : > { %5296 = vmatprep.subr.bf16.mxu1 %v6476_v23 }
 0x51d   : > { %2235 = vmatpush1.bf16.msra.mxu0 %v5711_v42 }
 0x51e   : > { %5342 = vmatprep.subr.mxu0 %v6476_v23 }
 0x51f   : > { %5297 = vmatpush3.bf16.msra.mxu1 %v5719_v48 }
 0x520   : > { %2253 = vmatmul.mubr.bf16.vlgmr.msra.gmra.mrb[0].mxu0 %v2042_v46  ;;  %5302 = vmatprep.subr.mxu1 %v6476_v23 }
 0x521   : > { %5344 = vmatprep.mubr.msk.f32.mxu0 %vm6477_vm12, %v6476_v23 }
 0x522   : > { %5299 = vmatmul.mubr.bf16.vlgmr.msra.gmra.mrb[0].mxu1 %v2042_v46 }
 0x523   : > { %5304 = vmatprep.mubr.msk.f32.mxu1 %vm6477_vm12, %v6476_v23 }
 0x5f3   : > { %v2254_v56 = vpop.f32.mrb[0].mxu0 }
 0x5f4   : > { %v7349_v57 = vadd.f32 %v2254_v56, %v2080_v54  ;;  %v2256_v58 = vpop.f32.mrb[1].mxu0 }
 0x5f5   : > { %v7351_v59 = vadd.f32 %v2256_v58, %v2084_v55  ;;  %v2258_v60 = vpop.f32.mrb[2].mxu0  ;;  %v2297_v2 = vpop.f32.mrb[0].mxu1 }
 0x5f6   : > { %v2260_v61 = vpop.f32.mrb[3].mxu0  ;;  %2640 = vrot.lane.b32.xlu1 %v7349_v57, %s6478_s28  ;;  %v7366_v1 = vadd.f32 %v2258_v60, %v2080_v54  ;;  %v7371_v3 = vadd.f32 %v2297_v2, %v2088_v0  ;;  %v5300_v4 = vpop.f32.mrb[1].mxu1 }
 0x5f7   : > { %5303 = vmatpush3.xpose.msk.msra.mxu1 %vm2304_vm13, %v7351_v59  ;;  %v7358_v63 = vadd.f32 %v2260_v61, %v2084_v55  ;;  %v2300_v5 = vpop.f32.mrb[2].mxu1 }
 0x5f8   : > { %5307 = vmatprep.subr.mxu1 %v6476_v23  ;;  %v7375_v6 = vadd.f32 %v2300_v5, %v2088_v0  ;;  %v5301_v7 = vpop.f32.mrb[3].mxu1 }
 0x5fa   : > { %5305 = vmatmul.mubr.msk.f32.vlgmr.msra.gmra.mrb[4].mxu1 %vm2304_vm13, %v7349_v57 }
 0x5fb   : > { %5308 = vmatpush3.xpose.msk.msra.mxu1 %vm2304_vm13, %v7358_v63  ;;  %5309 = vmatprep.mubr.msk.f32.mxu1 %vm6477_vm12, %v6476_v23 }
 0x5fc   : > { %5312 = vmatprep.subr.mxu1 %v6476_v23 }
 0x5fe   : > { %5310 = vmatmul.mubr.msk.f32.vlgmr.msra.gmra.mrb[6].mxu1 %vm2304_vm13, %v7366_v1 }
 0x5ff   : > { %5314 = vmatprep.mubr.msk.f32.mxu1 %vm6477_vm12, %v6476_v23  ;;  %5313 = vmatpush3.msra.mxu1 %v7371_v3 }
 0x600   : > { %5317 = vmatprep.subr.mxu1 %v6476_v23 }
 0x668   : > { %v2641_v46 = vpop.permute.xlu1 %2640 }
 0x6cd   : > { %v2377_v21 = vpop.f32.mrb[4].mxu1 }
 0x6ce   : > { %v2457_v24 = vmul.f32 0.17677669, %v2377_v21  ;;  %v5306_v25 = vpop.f32.mrb[5].mxu1 }
 0x6d0   : > { %v2469_v26 = vadd.f32 %v7383_v19, %v2457_v24 }
 0x6d1   : > { %v2453_v28 = vpop.f32.mrb[6].mxu1 }
 0x6d2   : > { %v2458_v29 = vmul.f32 0.17677669, %v2453_v28  ;;  %v5311_v30 = vpop.f32.mrb[7].mxu1  ;;  %v2472_v31 = vsel %vm2471_vm14, %v2469_v26, -inf }
 0x6d3   : > { %2473 = vmax.xlane.f32.xlu0 %v2472_v31 }
 0x6d4   : > { %v2470_v32 = vadd.f32 %v7387_v27, %v2458_v29 }
 0x6d6   : > { %v2475_v33 = vsel %vm2471_vm14, %v2470_v32, -inf }
 0x6d7   : > { %2476 = vmax.xlane.f32.xlu0 %v2475_v33 }
 0x6ed   : > { %2642 = vrot.lane.b32.xlu0 %v7351_v59, %s6478_s28 }
 0x760   : > { %v2474_v34 = vpop.xlane.xlu0 %2473 }
 0x761   : > { %v2478_v35 = vsub.f32 %v2469_v26, %v2474_v34 }
 0x763   : > { %v2480_v36 = vmul.f32 1.442695, %v2478_v35 }
 0x764   : > { %v2477_v37 = vpop.xlane.xlu0 %2476 }
 0x765   : > { %5768 = vpow2.f32 %v2480_v36  ;;  %v2479_v38 = vsub.f32 %v2470_v32, %v2477_v37 }
 0x767   : > { %v2482_v39 = vmul.f32 1.442695, %v2479_v38 }
 0x768   : > { %v2643_v55 = vpop.permute.xlu0 %2642 }
 0x769   : > { %5770 = vpow2.f32 %v2482_v39 }
 0x76f   : > { %v5769_v40 = vpop.eup %5768 }
 0x770   : > { %v2484_v41 = vsel %vm2471_vm14, %v5769_v40, 0.0 }
 0x771   : > { %2485 = vadd.xlane.f32.xlu1 %v2484_v41 }
 0x773   : > { %v5771_v42 = vpop.eup %5770 }
 0x774   : > { %v2487_v45 = vsel %vm2471_vm14, %v5771_v42, 0.0 }
 0x775   : > { %2488 = vadd.xlane.f32.xlu1 %v2487_v45 }
 0x786   : > { %2720 = vrot.lane.b32.xlu1 %v7358_v63, %s6478_s28 }
 0x78a   : > { %2718 = vrot.lane.b32.xlu1 %v7366_v1, %s6478_s28 }
 0x7fe   : > { %v2486_v47 = vpop.xlane.xlu1 %2485 }
 0x7ff   : > { %5772 = vrcp.f32 %v2486_v47 }
 0x802   : > { %v2489_v48 = vpop.xlane.xlu1 %2488 }
 0x803   : > { %5774 = vrcp.f32 %v2489_v48 }
 0x806   : > { %v2721_v56 = vpop.permute.xlu1 %2720 }
 0x809   : > { %v5773_v49 = vpop.eup %5772 }
 0x80a   : > { %v2492_v50 = vmul.f32 %v5773_v49, %v5769_v40  ;;  %v2719_v58 = vpop.permute.xlu1 %2718 }
 0x80c   : > { %5315 = vmatmul.mubr.msk.f32.vlgmr.msra.gmra.mrb[8].mxu1 %vm2471_vm14, %v2492_v50 }
 0x80d   : > { %v5775_v52 = vpop.eup %5774  ;;  %5318 = vmatpush3.msra.mxu1 %v7375_v6  ;;  %5319 = vmatprep.mubr.msk.f32.mxu1 %vm6477_vm12, %v6476_v23 }
 0x80e   : > { %v2493_v54 = vmul.f32 %v5775_v52, %v5771_v42  ;;  %5322 = vmatprep.subr.mxu1 %v6476_v23 }
 0x810   : > { %5320 = vmatmul.mubr.msk.f32.vlgmr.msra.gmra.mrb[10].mxu1 %vm2471_vm14, %v2493_v54 }
 0x811   : > { %5324 = vmatprep.mubr.msk.f32.mxu1 %vm6477_vm12, %v6476_v23 }
 0x814   : > { %5323 = vmatpush3.xpose.msk.msra.mxu1 %vm2304_vm13, %v2643_v55 }
 0x815   : > { %5327 = vmatprep.subr.mxu1 %v6476_v23 }
 0x817   : > { %5325 = vmatmul.mubr.msk.f32.vlgmr.msra.gmra.mrb[12].mxu1 %vm2304_vm13, %v2641_v46 }
 0x818   : > { %5328 = vmatpush3.xpose.msk.msra.mxu1 %vm2304_vm13, %v2721_v56  ;;  %5329 = vmatprep.mubr.msk.f32.mxu1 %vm6477_vm12, %v6476_v23 }
 0x819   : > { %5332 = vmatprep.subr.mxu1 %v6476_v23 }
 0x81b   : > { %5330 = vmatmul.mubr.msk.f32.vlgmr.msra.gmra.mrb[14].mxu1 %vm2304_vm13, %v2719_v58 }
 0x81c   : > { %5334 = vmatprep.mubr.msk.f32.mxu1 %vm6477_vm12, %v6476_v23 }
 0x8df   : > { %v7418_v60 = vpop.f32.mrb[8].mxu1 }
 0x8e0   : > { %v5316_v61 = vpop.f32.mrb[9].mxu1 }
 0x8e3   : > { %v7420_v62 = vpop.f32.mrb[10].mxu1 }
 0x8e4   : > { %v5321_v0 = vpop.f32.mrb[11].mxu1 }
 0x8ea   : > { %v2714_v2 = vpop.f32.mrb[12].mxu1 }
 0x8eb   : > { %v2796_v4 = vmul.f32 0.17677669, %v2714_v2  ;;  %v5326_v5 = vpop.f32.mrb[13].mxu1 }
 0x8ed   : > { %v2798_v7 = vadd.f32 %v2796_v4, %v7383_v19 }
 0x8ee   : > { %v2792_v8 = vpop.f32.mrb[14].mxu1 }
 0x8ef   : > { %v2797_v9 = vmul.f32 0.17677669, %v2792_v8  ;;  %v5331_v10 = vpop.f32.mrb[15].mxu1  ;;  %v2800_v11 = vsel %vm2471_vm14, %v2798_v7, -inf }
 0x8f0   : > { %2801 = vmax.xlane.f32.xlu0 %v2800_v11 }
 0x8f1   : > { %v2799_v12 = vadd.f32 %v2797_v9, %v7387_v27 }
 0x8f3   : > { %v2803_v13 = vsel %vm2471_vm14, %v2799_v12, -inf }
 0x8f4   : > { %2804 = vmax.xlane.f32.xlu1 %v2803_v13 }
 0x905   : > { %2900 = vrot.lane.b32.xlu1 %v7375_v6, %s6478_s28 }
 0x909   : > { %2978 = vrot.lane.b32.xlu1 %v7351_v59, %s6480_s9 }
 0x90d   : > { %3056 = vrot.lane.b32.xlu1 %v7358_v63, %s6480_s9 }
 0x911   : > { %3054 = vrot.lane.b32.xlu1 %v7366_v1, %s6480_s9 }
 0x97d   : > { %v2802_v14 = vpop.xlane.xlu0 %2801 }
 0x97e   : > { %v2806_v15 = vsub.f32 %v2798_v7, %v2802_v14 }
 0x980   : > { %v2808_v16 = vmul.f32 1.442695, %v2806_v15 }
 0x981   : > { %v2805_v17 = vpop.xlane.xlu1 %2804 }
 0x982   : > { %5776 = vpow2.f32 %v2808_v16  ;;  %v2807_v25 = vsub.f32 %v2799_v12, %v2805_v17 }
 0x984   : > { %v2810_v26 = vmul.f32 1.442695, %v2807_v25 }
 0x985   : > { %v2901_v18 = vpop.permute.xlu1 %2900 }
 0x986   : > { %5778 = vpow2.f32 %v2810_v26 }
 0x989   : > { %v2979_v20 = vpop.permute.xlu1 %2978 }
 0x98a   : > { %5343 = vmatpush3.xpose.msk.msra.mxu0 %vm2304_vm13, %v2979_v20 }
 0x98b   : > { %5352 = vmatprep.subr.mxu0 %v6476_v23 }
 0x98c   : > { %v5777_v21 = vpop.eup %5776 }
 0x98d   : > { %v2812_v24 = vsel %vm2471_vm14, %v5777_v21, 0.0  ;;  %v3057_v37 = vpop.permute.xlu1 %3056 }
 0x98e   : > { %2813 = vadd.xlane.f32.xlu0 %v2812_v24 }
 0x990   : > { %v5779_v28 = vpop.eup %5778 }
 0x991   : > { %v2815_v29 = vsel %vm2471_vm14, %v5779_v28, 0.0  ;;  %v3055_v39 = vpop.permute.xlu1 %3054 }
 0x9a4   : > { %2823 = vrot.lane.b32.xlu0 %v7371_v3, %s6478_s28 }
 0x9c3   : > { %2816 = vadd.xlane.f32.xlu0 %v2815_v29 }
 0x9d9   : > { %2976 = vrot.lane.b32.xlu0 %v7349_v57, %s6480_s9 }
 0xa1b   : > { %v2814_v30 = vpop.xlane.xlu0 %2813 }
 0xa1c   : > { %5780 = vrcp.f32 %v2814_v30 }
 0xa1f   : > { %v2824_v31 = vpop.permute.xlu0 %2823 }
 0xa20   : > { %5333 = vmatpush3.msra.mxu1 %v2824_v31 }
 0xa21   : > { %5337 = vmatprep.subr.mxu1 %v6476_v23 }
 0xa26   : > { %v5781_v32 = vpop.eup %5780 }
 0xa27   : > { %v2820_v33 = vmul.f32 %v5781_v32, %v5777_v21 }
 0xa29   : > { %5335 = vmatmul.mubr.msk.f32.vlgmr.msra.gmra.mrb[16].mxu1 %vm2471_vm14, %v2820_v33 }
 0xa2a   : > { %5338 = vmatpush3.msra.mxu1 %v2901_v18  ;;  %5339 = vmatprep.mubr.msk.f32.mxu1 %vm6477_vm12, %v6476_v23 }
 0xa2b   : > { %5347 = vmatprep.subr.mxu1 %v6476_v23 }
 0xa50   : > { %v2817_v34 = vpop.xlane.xlu0 %2816 }
 0xa51   : > { %5782 = vrcp.f32 %v2817_v34 }
 0xa54   : > { %v2977_v35 = vpop.permute.xlu0 %2976 }
 0xa55   : > { %5345 = vmatmul.mubr.msk.f32.vlgmr.msra.gmra.mrb[4].mxu0 %vm2304_vm13, %v2977_v35 }
 0xa56   : > { %5354 = vmatprep.mubr.msk.f32.mxu0 %vm6477_vm12, %v6476_v23 }
 0xa5b   : > { %v5783_v36 = vpop.eup %5782 }
 0xa5c   : > { %v2821_v38 = vmul.f32 %v5783_v36, %v5779_v28 }
 0xa5e   : > { %5340 = vmatmul.mubr.msk.f32.vlgmr.msra.gmra.mrb[18].mxu1 %vm2471_vm14, %v2821_v38 }
 0xa5f   : > { %5348 = vmatpush3.xpose.msk.msra.mxu1 %vm2304_vm13, %v3057_v37  ;;  %5349 = vmatprep.mubr.msk.f32.mxu1 %vm6477_vm12, %v6476_v23 }
 0xa60   : > { %5357 = vmatprep.subr.mxu1 %v6476_v23 }
 0xa62   : > { %5350 = vmatmul.mubr.msk.f32.vlgmr.msra.gmra.mrb[20].mxu1 %vm2304_vm13, %v3055_v39 }
 0xa63   : > { %5359 = vmatprep.mubr.msk.f32.mxu1 %vm6477_vm12, %v6476_v23 }
 0xafc   : > { %v7458_v40 = vpop.f32.mrb[16].mxu1 }
 0xafd   : > { %v5336_v41 = vpop.f32.mrb[17].mxu1 }
 0xb28   : > { %v3050_v42 = vpop.f32.mrb[4].mxu0 }
 0xb29   : > { %v3132_v45 = vmul.f32 0.17677669, %v3050_v42  ;;  %v5346_v46 = vpop.f32.mrb[5].mxu0 }
 0xb2b   : > { %v3134_v47 = vadd.f32 %v3132_v45, %v7383_v19 }
 0xb2d   : > { %v3136_v48 = vsel %vm2471_vm14, %v3134_v47, -inf }
 0xb2e   : > { %3137 = vmax.xlane.f32.xlu0 %v3136_v48 }
 0xb31   : > { %v7462_v49 = vpop.f32.mrb[18].mxu1 }
 0xb32   : > { %v5673_v50 = vpack.i.bf16 %v7462_v49, %v7458_v40  ;;  %v5341_v52 = vpop.f32.mrb[19].mxu1 }
 0xb35   : > { %v3128_v54 = vpop.f32.mrb[20].mxu1 }
 0xb36   : > { %v3133_v55 = vmul.f32 0.17677669, %v3128_v54  ;;  %v5351_v56 = vpop.f32.mrb[21].mxu1 }
 0xb38   : > { %v3135_v58 = vadd.f32 %v3133_v55, %v7387_v27 }
 0xb3a   : > { %v3139_v61 = vsel %vm2471_vm14, %v3135_v58, -inf }
 0xb3b   : > { %3140 = vmax.xlane.f32.xlu1 %v3139_v61  ;;  %v5720_v61 = vld [vmem:[%s7175_s10] sm:$0xff]  }
 0xb4c   : > { %3234 = vrot.lane.b32.xlu1 %v7375_v6, %s6480_s9 }
 0xb50   : > { %3312 = vrot.lane.b32.xlu1 %v7351_v59, %s6481_s3 }
 0xb54   : > { %3390 = vrot.lane.b32.xlu1 %v7358_v63, %s6481_s3 }
 0xb58   : > { %3388 = vrot.lane.b32.xlu1 %v7366_v1, %s6481_s3 }
 0xbbb   : > { %v3138_v0 = vpop.xlane.xlu0 %3137 }
 0xbbc   : > { %v3142_v2 = vsub.f32 %v3134_v47, %v3138_v0  ;;  %v5721_v0 = vld [vmem:[%s7175_s10 + $0x8] sm:$0xff]  }
 0xbbe   : > { %v3144_v4 = vmul.f32 1.442695, %v3142_v2  ;;  %v5722_v2 = vld [vmem:[%s7175_s10 + $0x10] sm:$0xff]  }
 0xbc0   : > { %5784 = vpow2.f32 %v3144_v4  ;;  %v5723_v4 = vld [vmem:[%s7175_s10 + $0x18] sm:$0xff]  }
 0xbc8   : > { %v3141_v5 = vpop.xlane.xlu1 %3140 }
 0xbc9   : > { %v3143_v59 = vsub.f32 %v3135_v58, %v3141_v5  ;;  %v5724_v5 = vld [vmem:[%s7175_s10 + $0x20] sm:$0xff]  }
 0xbca   : > { %v5785_v7 = vpop.eup %5784 }
 0xbcb   : > { %v3148_v8 = vsel %vm2471_vm14, %v5785_v7, 0.0  ;;  %v3146_v63 = vmul.f32 1.442695, %v3143_v59 }
 0xbcc   : > { %3149 = vadd.xlane.f32.xlu0 %v3148_v8  ;;  %v3235_v9 = vpop.permute.xlu1 %3234  ;;  %v5727_v8 = vld [vmem:[%s7175_s10 + $0x38] sm:$0xff]  }
 0xbcd   : > { %5358 = vmatpush3.msra.mxu1 %v3235_v9  ;;  %5786 = vpow2.f32 %v3146_v63 }
 0xbce   : > { %5367 = vmatprep.subr.mxu1 %v6476_v23 }
 0xbd0   : > { %v3313_v15 = vpop.permute.xlu1 %3312 }
 0xbd4   : > { %v3391_v18 = vpop.permute.xlu1 %3390 }
 0xbd7   : > { %v5787_v1 = vpop.eup %5786 }
 0xbd8   : > { %v3151_v10 = vsel %vm2471_vm14, %v5787_v1, 0.0  ;;  %v3389_v21 = vpop.permute.xlu1 %3388 }
 0xbe2   : > { %3158 = vrot.lane.b32.xlu0 %v7371_v3, %s6480_s9 }
 0xc01   : > { %3152 = vadd.xlane.f32.xlu0 %v3151_v10 }
 0xc17   : > { %3310 = vrot.lane.b32.xlu0 %v7349_v57, %s6481_s3 }
 0xc59   : > { %v3150_v11 = vpop.xlane.xlu0 %3149 }
 0xc5a   : > { %5788 = vrcp.f32 %v3150_v11 }
 0xc5d   : > { %v3159_v12 = vpop.permute.xlu0 %3158 }
 0xc5e   : > { %5353 = vmatpush3.msra.mxu0 %v3159_v12 }
 0xc5f   : > { %5362 = vmatprep.subr.mxu0 %v6476_v23 }
 0xc64   : > { %v5789_v13 = vpop.eup %5788 }
 0xc65   : > { %v3156_v14 = vmul.f32 %v5789_v13, %v5785_v7  ;;  %v5726_v7 = vld [vmem:[%s7175_s10 + $0x30] sm:$0xff]  }
 0xc67   : > { %5355 = vmatmul.mubr.msk.f32.vlgmr.msra.gmra.mrb[6].mxu0 %vm2471_vm14, %v3156_v14 }
 0xc68   : > { %5363 = vmatpush3.xpose.msk.msra.mxu0 %vm2304_vm13, %v3313_v15  ;;  %5364 = vmatprep.mubr.msk.f32.mxu0 %vm6477_vm12, %v6476_v23 }
 0xc69   : > { %5372 = vmatprep.subr.mxu0 %v6476_v23 }
 0xc8e   : > { %v3153_v16 = vpop.xlane.xlu0 %3152 }
 0xc8f   : > { %5790 = vrcp.f32 %v3153_v16 }
 0xc92   : > { %v3311_v57 = vpop.permute.xlu0 %3310 }
 0xc93   : > { %5365 = vmatmul.mubr.msk.f32.vlgmr.msra.gmra.mrb[8].mxu0 %vm2304_vm13, %v3311_v57 }
 0xc94   : > { %5374 = vmatprep.mubr.msk.f32.mxu0 %vm6477_vm12, %v6476_v23 }
 0xc99   : > { %v5791_v17 = vpop.eup %5790 }
 0xc9a   : > { %v3157_v20 = vmul.f32 %v5791_v17, %v5787_v1 }
 0xc9c   : > { %5360 = vmatmul.mubr.msk.f32.vlgmr.msra.gmra.mrb[22].mxu1 %vm2471_vm14, %v3157_v20 }
 0xc9d   : > { %5368 = vmatpush3.xpose.msk.msra.mxu1 %vm2304_vm13, %v3391_v18  ;;  %5369 = vmatprep.mubr.msk.f32.mxu1 %vm6477_vm12, %v6476_v23 }
 0xc9e   : > { %5377 = vmatprep.subr.mxu1 %v6476_v23 }
 0xca0   : > { %5370 = vmatmul.mubr.msk.f32.vlgmr.msra.gmra.mrb[24].mxu1 %vm2304_vm13, %v3389_v21 }
 0xca1   : > { %5379 = vmatprep.mubr.msk.f32.mxu1 %vm6477_vm12, %v6476_v23 }
 0xd3a   : > { %v3230_v24 = vpop.f32.mrb[6].mxu0 }
 0xd3b   : > { %v5356_v25 = vpop.f32.mrb[7].mxu0 }
 0xd66   : > { %v3384_v26 = vpop.f32.mrb[8].mxu0 }
 0xd67   : > { %v3466_v28 = vmul.f32 0.17677669, %v3384_v26  ;;  %v5366_v29 = vpop.f32.mrb[9].mxu0 }
 0xd68   : > { %v5033_v29 = vld [vmem:[%s1005_s21] ss:$0 sm:$0xff]  ;;  %s7827_s21 = sld [smem:[#allocation44_spill]] }
 0xd69   : > { %v3468_v30 = vadd.f32 %v3466_v28, %v7383_v19 }
 0xd6b   : > { %v3470_v31 = vsel %vm2471_vm14, %v3468_v30, -inf }
 0xd6c   : > { %3471 = vmax.xlane.f32.xlu0 %v3470_v31 }
 0xd6e   : > { %p5079_p5 = scmp.ne.s32.totalorder %s7827_s21, 1 }
 0xd6f   : > { %v3306_v32 = vpop.f32.mrb[22].mxu1  ;;  %vm6483_vm1 = vmmov (!%p5079_p5), 0  }
 0xd70   : > { %v5678_v33 = vpack.i.bf16 %v3306_v32, %v3230_v24  ;;  %v5361_v34 = vpop.f32.mrb[23].mxu1 }
 0xd73   : > { %v3462_v35 = vpop.f32.mrb[24].mxu1 }
 0xd74   : > { %v3467_v36 = vmul.f32 0.17677669, %v3462_v35  ;;  %v5371_v37 = vpop.f32.mrb[25].mxu1 }
 0xd75   : > { %v5730_v37 = vld [vmem:[%s7191_s8 + $0x4] ss:$8 sps:$4 sm:$0xff]  }
 0xd76   : > { %v3469_v38 = vadd.f32 %v3467_v36, %v7387_v27  ;;  %v5728_v36 = vld [vmem:[%s7191_s8] ss:$8 sps:$4 sm:$0xff]  }
 0xd78   : > { %v3473_v39 = vsel %vm2471_vm14, %v3469_v38, -inf }
 0xd79   : > { %3474 = vmax.xlane.f32.xlu1 %v3473_v39  ;;  %v5731_v39 = vld [vmem:[%s7191_s8 + $0x10] ss:$8 sps:$4 sm:$0xff]  }
 0xd8a   : > { %3568 = vrot.lane.b32.xlu1 %v7375_v6, %s6481_s3 }
 0xd8e   : > { %5674 = vrot.lane.b32.xlu1 %v5673_v50, %s6481_s3 }
 0xd92   : > { %5679 = vrot.lane.b32.xlu1 %v5678_v33, %s6480_s9 }
 0xdf9   : > { %v3472_v19 = vpop.xlane.xlu0 %3471 }
 0xdfa   : > { %v3476_v41 = vsub.f32 %v3468_v30, %v3472_v19 }
 0xdfc   : > { %v3478_v42 = vmul.f32 1.442695, %v3476_v41 }
 0xdfe   : > { %5792 = vpow2.f32 %v3478_v42 }
 0xe06   : > { %v3475_v45 = vpop.xlane.xlu1 %3474 }
 0xe07   : > { %v3477_v46 = vsub.f32 %v3469_v38, %v3475_v45  ;;  %v5733_v38 = vld [vmem:[%s7191_s8 + $0x14] ss:$8 sps:$4 sm:$0xff]  }
 0xe08   : > { %v5793_v27 = vpop.eup %5792 }
 0xe09   : > { %v3480_v47 = vmul.f32 1.442695, %v3477_v46  ;;  %v3482_v48 = vsel %vm2471_vm14, %v5793_v27, 0.0 }
 0xe0a   : > { %3483 = vadd.xlane.f32.xlu0 %v3482_v48  ;;  %v3569_v52 = vpop.permute.xlu1 %3568  ;;  %v5734_v48 = vld [vmem:[%s7191_s8 + $0x20] ss:$8 sps:$4 sm:$0xff]  }
 0xe0b   : > { %5794 = vpow2.f32 %v3480_v47  ;;  %5378 = vmatpush3.msra.mxu1 %v3569_v52  ;;  %v5736_v47 = vld [vmem:[%s7191_s8 + $0x24] ss:$8 sps:$4 sm:$0xff]   ;;  %v5739_v52 = vld [vmem:[%s7191_s8 + $0x34] ss:$8 sps:$4 sm:$0xff]  }
 0xe0c   : > { %3941 = vmatprep.subr.bf16.mxu1 %v5730_v37 }
 0xe0e   : > { %v5675_v11 = vpop.permute.xlu1 %5674 }
 0xe0f   : > { %v5677_v13 = vunpack.i.h.bf16 %v5675_v11  ;;  %v5676_v14 = vunpack.i.l.bf16 %v5675_v11 }
 0xe11   : > { %v3668_v17 = vsel %vm2304_vm13, %v7418_v60, %v5676_v14 }
 0xe12   : > { %v5680_v12 = vpop.permute.xlu1 %5679 }
 0xe13   : > { %v5682_v15 = vunpack.i.h.bf16 %v5680_v12  ;;  %v5681_v16 = vunpack.i.l.bf16 %v5680_v12 }
 0xe15   : > { %v5795_v6 = vpop.eup %5794  ;;  %v3671_v21 = vsel %vm3670_vm15, %v3668_v17, %v5681_v16  ;;  %v5753_v16 = vld [vmem:[%s7197_s2] sm:$0xff]   ;;  %v5756_v17 = vld [vmem:[%s7197_s2 + $0x50] sm:$0xff]  }
 0xe16   : > { %v3485_v40 = vsel %vm2471_vm14, %v5795_v6, 0.0 }
 0xe17   : > { %3486 = vadd.xlane.f32.xlu0 %v3485_v40  ;;  %v5742_v40 = vld [vmem:[%s7191_s8 + $0x44] ss:$8 sps:$4 sm:$0xff]  }
 0xe2d   : > { %3492 = vrot.lane.b32.xlu0 %v7371_v3, %s6481_s3 }
 0xe97   : > { %v3484_v49 = vpop.xlane.xlu0 %3483 }
 0xe98   : > { %5796 = vrcp.f32 %v3484_v49  ;;  %v5740_v49 = vld [vmem:[%s7191_s8 + $0x40] ss:$8 sps:$4 sm:$0xff]  }
 0xea2   : > { %v5797_v54 = vpop.eup %5796 }
 0xea3   : > { %v3490_v55 = vmul.f32 %v5797_v54, %v5793_v27  ;;  %v5743_v54 = vld [vmem:[%s7191_s8 + $0x50] ss:$8 sps:$4 sm:$0xff]  }
 0xea4   : > { %v3487_v50 = vpop.xlane.xlu0 %3486 }
 0xea5   : > { %5798 = vrcp.f32 %v3487_v50  ;;  %v5745_v50 = vld [vmem:[%s7191_s8 + $0x54] ss:$8 sps:$4 sm:$0xff]  }
 0xea8   : > { %v3493_v56 = vpop.permute.xlu0 %3492 }
 0xea9   : > { %5373 = vmatpush3.msra.mxu0 %v3493_v56  ;;  %v5746_v56 = vld [vmem:[%s7191_s8 + $0x60] ss:$8 sps:$4 sm:$0xff]  }
 0xeaa   : > { %5375 = vmatmul.mubr.msk.f32.vlgmr.msra.gmra.mrb[10].mxu0 %vm2471_vm14, %v3490_v55  ;;  %5382 = vmatprep.subr.bf16.mxu0 %v6476_v23  ;;  %v5748_v55 = vld [vmem:[%s7191_s8 + $0x64] ss:$8 sps:$4 sm:$0xff]  }
 0xeab   : > { %5398 = vmatprep.mubr.msk.bf16.mxu0 %vm6477_vm12, %v6476_v23  ;;  %5383 = vmatpush3.bf16.msra.mxu0 %v5720_v61 }
 0xeac   : > { %5384 = vmatprep.subr.bf16.mxu0 %v6476_v23 }
 0xeaf   : > { %v5799_v3 = vpop.eup %5798  ;;  %5385 = vmatpush3.bf16.msra.mxu0 %v5721_v0 }
 0xeb0   : > { %v3491_v58 = vmul.f32 %v5799_v3, %v5795_v6  ;;  %5386 = vmatprep.subr.bf16.mxu0 %v6476_v23  ;;  %v5737_v6 = vld [vmem:[%s7191_s8 + $0x30] ss:$8 sps:$4 sm:$0xff]   ;;  %v5751_v3 = vld [vmem:[%s7191_s8 + $0x74] ss:$8 sps:$4 sm:$0xff]  }
 0xeb2   : > { %5380 = vmatmul.mubr.msk.f32.vlgmr.msra.gmra.mrb[26].mxu1 %vm2471_vm14, %v3491_v58  ;;  %v5749_v58 = vld [vmem:[%s7191_s8 + $0x70] ss:$8 sps:$4 sm:$0xff]   ;;  %s7828_s8 = sld [smem:[#allocation66_spill]] (!%p5079_p5) }
 0xeb3   : > { %3973 = vmatprep.mubr.bf16.mxu1 %v6475_v22  ;;  %5387 = vmatpush3.bf16.msra.mxu0 %v5722_v2  ;;  %v5725_v22 = vld [vmem:[%s7175_s10 + $0x28] sm:$0xff]   ;;  %s7826_s10 = scalar_lea.vmem [#allocation24], %s7160_s12 }
 0xeb4   : > { %5388 = vmatprep.subr.bf16.mxu0 %v6476_v23  ;;  %3942 = vmatpush1.bf16.msra.mxu1 %v5728_v36 }
 0xeb5   : > { %3943 = vmatprep.subr.bf16.mxu1 %v5733_v38 }
 0xeb7   : > { %5389 = vmatpush3.bf16.msra.mxu0 %v5723_v4 }
 0xeb8   : > { %5390 = vmatprep.subr.bf16.mxu0 %v6476_v23  ;;  %3944 = vmatpush1.bf16.msra.mxu1 %v5731_v39 }
 0xeb9   : > { %3945 = vmatprep.subr.bf16.mxu1 %v5736_v47 }
 0xebb   : > { %5391 = vmatpush3.bf16.msra.mxu0 %v5724_v5 }
 0xebc   : > { %5392 = vmatprep.subr.bf16.mxu0 %v6476_v23  ;;  %3946 = vmatpush1.bf16.msra.mxu1 %v5734_v48 }
 0xebd   : > { %3947 = vmatprep.subr.bf16.mxu1 %v5739_v52 }
 0xebf   : > { %5393 = vmatpush3.bf16.msra.mxu0 %v5725_v22 }
 0xec0   : > { %5394 = vmatprep.subr.bf16.mxu0 %v6476_v23  ;;  %3948 = vmatpush1.bf16.msra.mxu1 %v5737_v6 }
 0xec1   : > { %3949 = vmatprep.subr.bf16.mxu1 %v5742_v40 }
 0xec3   : > { %5395 = vmatpush3.bf16.msra.mxu0 %v5726_v7 }
 0xec4   : > { %5396 = vmatprep.subr.bf16.mxu0 %v6476_v23  ;;  %v3669_v23 = vsel %vm2304_vm13, %v7420_v62, %v5677_v13  ;;  %3950 = vmatpush1.bf16.msra.mxu1 %v5740_v49 }
 0xec5   : > { %v3672_v24 = vsel %vm3670_vm15, %v3669_v23, %v5682_v15  ;;  %3951 = vmatprep.subr.bf16.mxu1 %v5745_v50  ;;  %v5752_v15 = vld [vmem:[%s7197_s2 + $0x40] sm:$0xff]   ;;  %v5755_v23 = vld [vmem:[%s7197_s2 + $0x8] sm:$0xff]  }
 0xec7   : > { %5397 = vmatpush3.bf16.msra.mxu0 %v5727_v8 }
 0xec8   : > { %3952 = vmatpush1.bf16.msra.mxu1 %v5743_v54  ;;  %5251 = vmatprep.subr.bf16.mxu0 %v5752_v15 }
 0xec9   : > { %3953 = vmatprep.subr.bf16.mxu1 %v5748_v55 }
 0xecc   : > { %3954 = vmatpush1.bf16.msra.mxu1 %v5746_v56 }
 0xecd   : > { %3955 = vmatprep.subr.bf16.mxu1 %v5751_v3 }
 0xed0   : > { %3956 = vmatpush1.bf16.msra.mxu1 %v5749_v58 }
 0xf7d   : > { %v3564_v9 = vpop.f32.mrb[10].mxu0 }
 0xf7e   : > { %v5376_v59 = vpop.f32.mrb[11].mxu0 }
 0xf85   : > { %v3640_v63 = vpop.f32.mrb[26].mxu1 }
 0xf86   : > { %v5683_v1 = vpack.i.bf16 %v3640_v63, %v3564_v9  ;;  %v5381_v10 = vpop.f32.mrb[27].mxu1  ;;  %v5042_v9 = vld [vmem:[%s1013_s26] ss:$0 sm:$0xff] }
 0xf87   : > { %v5043_v10 = vld [vmem:[%s1021_s22] ss:$0 sm:$0xff] }
 0xf88   : > { %5684 = vrot.lane.b32.xlu0 %v5683_v1, %s6478_s28 }
 0xffa   : > { %v5685_v57 = vpop.permute.xlu0 %5684 }
 0xffb   : > { %v5687_v18 = vunpack.i.h.bf16 %v5685_v57  ;;  %v5686_v20 = vunpack.i.l.bf16 %v5685_v57  ;;  %v5754_v57 = vld [vmem:[%s7197_s2 + $0x48] sm:$0xff]  }
 0xffd   : > { %v3675_v25 = vsel %vm3673_vm0, %v3672_v24, %v5687_v18  ;;  %v3674_v26 = vsel %vm3673_vm0, %v3671_v21, %v5686_v20  ;;  %v5757_v18 = vld [vmem:[%s7197_s2 + $0x10] sm:$0xff]   ;;  %v5758_v20 = vld [vmem:[%s7197_s2 + $0x58] sm:$0xff]   ;;  %v5760_v24 = vld [vmem:[%s7197_s2 + $0x60] sm:$0xff]  }
 0xffe   : > { %v3676_v28 = vpack.c.bf16 %v3675_v25, %v3674_v26  ;;  %v5759_v21 = vld [vmem:[%s7197_s2 + $0x18] sm:$0xff]   ;;  %v5761_v25 = vld [vmem:[%s7197_s2 + $0x20] sm:$0xff]   ;;  %v5762_v26 = vld [vmem:[%s7197_s2 + $0x68] sm:$0xff]  }
0x1000   : > { %5399 = vmatmul.mubr.bf16.vlgmr.msra.gmra.mrb[12].mxu0 %v3676_v28  ;;  %v5763_v28 = vld [vmem:[%s7197_s2 + $0x28] sm:$0xff]  }
0x1001   : > { %5252 = vmatpush3.bf16.msra.mxu0 %v5753_v16 }
0x1002   : > { %5253 = vmatprep.subr.bf16.mxu0 %v5754_v57 }
0x1005   : > { %5254 = vmatpush3.bf16.msra.mxu0 %v5755_v23 }
0x1006   : > { %5255 = vmatprep.subr.bf16.mxu0 %v5756_v17 }
0x1009   : > { %5256 = vmatpush3.bf16.msra.mxu0 %v5757_v18 }
0x100a   : > { %5257 = vmatprep.subr.bf16.mxu0 %v5758_v20  ;;  %v5060_v20 = vld [vmem:[%s1047_s15] ss:$0 sm:$0xff] }
0x100d   : > { %5258 = vmatpush3.bf16.msra.mxu0 %v5759_v21 }
0x100e   : > { %5259 = vmatprep.subr.bf16.mxu0 %v5760_v24 }
0x1011   : > { %5260 = vmatpush3.bf16.msra.mxu0 %v5761_v25 }
0x1012   : > { %5261 = vmatprep.subr.bf16.mxu0 %v5762_v26 }
0x1015   : > { %5262 = vmatpush3.bf16.msra.mxu0 %v5763_v28 }
0x10d3   : > { %v3782_v30 = vpop.f32.mrb[12].mxu0 }
0x10d4   : > { %v3783_v31 = vadd.f32 %v5033_v29, %v3782_v30  ;;  %v5400_v62 = vpop.f32.mrb[13].mxu0  ;;  %v5765_v30 = vld [vmem:[%s7197_s2 + $0x30] sm:$0xff]  }
0x10d5   : > { %v3785_v32 = vpop.f32.mrb[14].mxu0  ;;  %v5767_v62 = vld [vmem:[%s7197_s2 + $0x38] sm:$0xff]  }
0x10d6   : > { %v3786_v33 = vadd.f32 %v5033_v29, %v3785_v32  ;;  %v5401_v60 = vpop.f32.mrb[15].mxu0  ;;  %v3789_v34 = vadd.f32 %v3783_v31, %v7323_v43  ;;  %v5764_v29 = vld [vmem:[%s7197_s2 + $0x70] sm:$0xff]   ;;  %v5766_v31 = vld [vmem:[%s7197_s2 + $0x78] sm:$0xff]   ;;  %v3849_v32 = vld [vmem:[%s7225_s5] sm:$0x3] }
0x10d7   : > { %5263 = vmatprep.subr.bf16.mxu0 %v5764_v29  ;;  %v3858_v60 = vrot.slane %v3849_v32, %v7345_v53 }
0x10d8   : > { %3793 = vadd.xlane.f32.xlu1 %v3789_v34  ;;  %v3790_v35 = vadd.f32 %v3786_v33, %v7325_v44  ;;  %5264 = vmatpush3.bf16.msra.mxu0 %v5765_v30  ;;  %v3854_v33 = vrot.slane %v3849_v32, %v7342_v51 }
0x10d9   : > { %5265 = vmatprep.subr.bf16.mxu0 %v5766_v31 }
0x10da   : > { %3795 = vadd.xlane.f32.xlu0 %v3790_v35 }
0x10dc   : > { %5266 = vmatpush3.bf16.msra.mxu0 %v5767_v62 }
0x1165   : > { %v3794_v19 = vpop.xlane.xlu1 %3793 }
0x1166   : > { %v3798_v41 = vmul.f32 0.0078125, %v3794_v19 }
0x1167   : > { %v3796_v42 = vpop.xlane.xlu0 %3795 }
0x1168   : > { %v3800_v43 = vsub.f32 %v3789_v34, %v3798_v41  ;;  %v3799_v44 = vmul.f32 0.0078125, %v3796_v42 }
0x116a   : > { %v3801_v45 = vsub.f32 %v3790_v35, %v3799_v44  ;;  %v3802_v46 = vmul.f32 %v3800_v43, %v3800_v43 }
0x116c   : > { %3804 = vadd.xlane.f32.xlu0 %v3802_v46  ;;  %v3803_v27 = vmul.f32 %v3801_v45, %v3801_v45 }
0x1170   : > { %3806 = vadd.xlane.f32.xlu0 %v3803_v27 }
0x11f9   : > { %v3805_v61 = vpop.xlane.xlu0 %3804 }
0x11fa   : > { %v3808_v0 = vmul.f32 0.0078125, %v3805_v61 }
0x11fc   : > { %v3810_v2 = vadd.f32 1e-12, %v3808_v0 }
0x11fd   : > { %v3807_v4 = vpop.xlane.xlu0 %3806 }
0x11fe   : > { %5800 = vrsqrt.f32 %v3810_v2  ;;  %v3809_v5 = vmul.f32 0.0078125, %v3807_v4 }
0x1200   : > { %v3811_v22 = vadd.f32 1e-12, %v3809_v5 }
0x1202   : > { %5802 = vrsqrt.f32 %v3811_v22 }
0x1208   : > { %v5801_v7 = vpop.eup %5800 }
0x1209   : > { %v3814_v8 = vmul.f32 %v5801_v7, %v3800_v43 }
0x120b   : > { %v3822_v1 = vmul.f32 %v5042_v9, %v3814_v8 }
0x120c   : > { %v5803_v59 = vpop.eup %5802 }
0x120d   : > { %v3815_v63 = vmul.f32 %v5803_v59, %v3801_v45  ;;  %v7565_v12 = vadd.f32 %v5043_v10, %v3822_v1 }
0x120f   : > { %v3823_v11 = vmul.f32 %v5042_v9, %v3815_v63 }
0x1211   : > { %v7567_v13 = vadd.f32 %v5043_v10, %v3823_v11 }
0x1213   : > { %v3832_v14 = vpack.c.bf16 %v7567_v13, %v7565_v12 }
0x1215   : > { %3974 = vmatmul.mubr.bf16.vlgmr.msra.gmra.mrb[28].mxu1 %v3832_v14 }
0x12e8   : > { %v3975_v34 = vpop.f32.mrb[28].mxu1 }
0x12e9   : > { %v3976_v35 = vadd.f32 %v3975_v34, %v3854_v33  ;;  %v3977_v36 = vpop.f32.mrb[29].mxu1 }
0x12ea   : > { %v3978_v37 = vadd.f32 %v3977_v36, %v3858_v60  ;;  %v3979_v38 = vpop.f32.mrb[30].mxu1 }
0x12eb   : > { %v3984_v39 = vmul.f32 %v3976_v35, %v3976_v35  ;;  %v3980_v19 = vadd.f32 %v3979_v38, %v3854_v33  ;;  %v3981_v41 = vpop.f32.mrb[31].mxu1 }
0x12ec   : > { %v3985_v42 = vmul.f32 %v3978_v37, %v3978_v37  ;;  %v3982_v43 = vadd.f32 %v3981_v41, %v3858_v60 }
0x12ed   : > { %v3988_v44 = vmul.f32 %v3984_v39, %v3976_v35  ;;  %v3986_v45 = vmul.f32 %v3980_v19, %v3980_v19 }
0x12ee   : > { %v3989_v46 = vmul.f32 %v3985_v42, %v3978_v37  ;;  %v3987_v27 = vmul.f32 %v3982_v43, %v3982_v43 }
0x12ef   : > { %v3992_v47 = vmul.f32 0.044715, %v3988_v44  ;;  %v3990_v48 = vmul.f32 %v3986_v45, %v3980_v19  ;;  %v5077_v44 = vld [vmem:[%s1055_s20] ss:$0 sm:$0xff] }
0x12f0   : > { %v3993_v52 = vmul.f32 0.044715, %v3989_v46  ;;  %v3991_v6 = vmul.f32 %v3987_v27, %v3982_v43  ;;  %v5078_v27 = vld [vmem:[%s7826_s10] ss:$0 sm:$0xff] }
0x12f1   : > { %v3996_v40 = vadd.f32 %v3992_v47, %v3976_v35  ;;  %v3994_v49 = vmul.f32 0.044715, %v3990_v48 }
0x12f2   : > { %v3997_v50 = vadd.f32 %v3993_v52, %v3978_v37  ;;  %v3995_v54 = vmul.f32 0.044715, %v3991_v6 }
0x12f3   : > { %v4000_v55 = vmul.f32 0.7978846, %v3996_v40  ;;  %v3998_v56 = vadd.f32 %v3994_v49, %v3980_v19  ;;  %v5816_v49 = vld [vmem:[%s7828_s8] sm:$0xff] (!%p5079_p5)  }
0x12f4   : > { %v4001_v3 = vmul.f32 0.7978846, %v3997_v50  ;;  %v3999_v58 = vadd.f32 %v3995_v54, %v3982_v43  ;;  %v6482_v50 = vmov (!%p5079_p5), 0.0   ;;  %v5817_v54 = vld [vmem:[%s7828_s8 + $0x8] sm:$0xff] (!%p5079_p5)  }
0x12f5   : > { %5804 = vtanh.f32 %v4000_v55  ;;  %v4002_v61 = vmul.f32 0.7978846, %v3998_v56  ;;  %5402 = vmatprep.subr.bf16.mxu0 (!%p5079_p5), %v6482_v50  ;;  %v5818_v55 = vld [vmem:[%s7828_s8 + $0x10] sm:$0xff] (!%p5079_p5)  }
0x12f6   : > { %5806 = vtanh.f32 %v4001_v3  ;;  %v4003_v0 = vmul.f32 0.7978846, %v3999_v58  ;;  %v5824_v56 = vld [vmem:[#allocation27 + $0x4] ss:$8 sps:$4 sm:$0xff] (!%p5079_p5)   ;;  %v5826_v3 = vld [vmem:[#allocation27] ss:$8 sps:$4 sm:$0xff] (!%p5079_p5)  }
0x12f7   : > { %5808 = vtanh.f32 %v4002_v61  ;;  %v5819_v58 = vld [vmem:[%s7828_s8 + $0x18] sm:$0xff] (!%p5079_p5)   ;;  %4469 = vmatprep.subr.bf16.mxu1 (!%p5079_p5), %v5824_v56 }
0x12f8   : > { %5810 = vtanh.f32 %v4003_v0  ;;  %v5827_v61 = vld [vmem:[#allocation27 + $0x14] ss:$8 sps:$4 sm:$0xff] (!%p5079_p5)   ;;  %4470 = vmatpush1.bf16.msra.mxu1 (!%p5079_p5), %v5826_v3  ;;  %v5829_v0 = vld [vmem:[#allocation27 + $0x10] ss:$8 sps:$4 sm:$0xff] (!%p5079_p5)  }
0x12f9   : > { %4471 = vmatprep.subr.bf16.mxu1 (!%p5079_p5), %v5827_v61 }
0x12fc   : > { %4472 = vmatpush1.bf16.msra.mxu1 (!%p5079_p5), %v5829_v0 }
0x12ff   : > { %v5805_v2 = vpop.eup %5804 }
0x1300   : > { %v5807_v4 = vpop.eup %5806  ;;  %v4008_v5 = vadd.f32 1.0, %v5805_v2  ;;  %v5820_v2 = vld [vmem:[%s7828_s8 + $0x20] sm:$0xff] (!%p5079_p5)  }
0x1301   : > { %v5809_v22 = vpop.eup %5808  ;;  %v4009_v7 = vadd.f32 1.0, %v5807_v4  ;;  %v5830_v4 = vld [vmem:[#allocation27 + $0x24] ss:$8 sps:$4 sm:$0xff] (!%p5079_p5)  }
0x1302   : > { %v5811_v8 = vpop.eup %5810  ;;  %v4012_v9 = vmul.f32 0.5, %v4008_v5  ;;  %v4010_v59 = vadd.f32 1.0, %v5809_v22  ;;  %v5832_v5 = vld [vmem:[#allocation27 + $0x20] ss:$8 sps:$4 sm:$0xff] (!%p5079_p5)   ;;  %4473 = vmatprep.subr.bf16.mxu1 (!%p5079_p5), %v5830_v4  ;;  %v5833_v22 = vld [vmem:[#allocation27 + $0x34] ss:$8 sps:$4 sm:$0xff] (!%p5079_p5)  }
0x1303   : > { %v4011_v63 = vadd.f32 1.0, %v5811_v8  ;;  %v4013_v1 = vmul.f32 0.5, %v4009_v7  ;;  %v5821_v7 = vld [vmem:[%s7828_s8 + $0x28] sm:$0xff] (!%p5079_p5)   ;;  %4474 = vmatpush1.bf16.msra.mxu1 (!%p5079_p5), %v5832_v5  ;;  %v5835_v8 = vld [vmem:[#allocation27 + $0x30] ss:$8 sps:$4 sm:$0xff] (!%p5079_p5)  }
0x1304   : > { %v4014_v10 = vmul.f32 0.5, %v4010_v59  ;;  %v4016_v14 = vmul.f32 %v4012_v9, %v3976_v35  ;;  %4475 = vmatprep.subr.bf16.mxu1 (!%p5079_p5), %v5833_v22  ;;  %v5822_v9 = vld [vmem:[%s7828_s8 + $0x30] sm:$0xff] (!%p5079_p5)   ;;  %v5823_v59 = vld [vmem:[%s7828_s8 + $0x38] sm:$0xff] (!%p5079_p5)  }
0x1305   : > { %v4015_v11 = vmul.f32 0.5, %v4011_v63  ;;  %v4017_v16 = vmul.f32 %v4013_v1, %v3978_v37 }
0x1306   : > { %v4018_v15 = vmul.f32 %v4014_v10, %v3980_v19  ;;  %v5836_v10 = vld [vmem:[#allocation27 + $0x44] ss:$8 sps:$4 sm:$0xff] (!%p5079_p5)  }
0x1307   : > { %v4019_v57 = vmul.f32 %v4015_v11, %v3982_v43  ;;  %4476 = vmatpush1.bf16.msra.mxu1 (!%p5079_p5), %v5835_v8  ;;  %v5838_v11 = vld [vmem:[#allocation27 + $0x40] ss:$8 sps:$4 sm:$0xff] (!%p5079_p5)  }
0x1308   : > { %v4020_v23 = vpack.c.bf16 %v4018_v15, %v4016_v14  ;;  %4477 = vmatprep.subr.bf16.mxu1 (!%p5079_p5), %v5836_v10  ;;  %v5839_v14 = vld [vmem:[#allocation27 + $0x54] ss:$8 sps:$4 sm:$0xff] (!%p5079_p5)   ;;  %v5841_v15 = vld [vmem:[#allocation27 + $0x50] ss:$8 sps:$4 sm:$0xff] (!%p5079_p5)  }
0x1309   : > { %v4021_v17 = vpack.c.bf16 %v4019_v57, %v4017_v16  ;;  %v5842_v16 = vld [vmem:[#allocation27 + $0x64] ss:$8 sps:$4 sm:$0xff] (!%p5079_p5)   ;;  %v5844_v57 = vld [vmem:[#allocation27 + $0x60] ss:$8 sps:$4 sm:$0xff] (!%p5079_p5)  }
0x130b   : > { %4189 = vmatprep.mubr.bf16.mxu0 %v4021_v17  ;;  %4478 = vmatpush1.bf16.msra.mxu1 (!%p5079_p5), %v5838_v11  ;;  %v5847_v17 = vld [vmem:[#allocation27 + $0x70] ss:$8 sps:$4 sm:$0xff] (!%p5079_p5)  }
0x130c   : > { %4190 = vmatmul.mubr.bf16.vlgmr.msra.gmra.mrb[16].mxu0 %v4020_v23  ;;  %4479 = vmatprep.subr.bf16.mxu1 (!%p5079_p5), %v5839_v14  ;;  %v5845_v23 = vld [vmem:[#allocation27 + $0x74] ss:$8 sps:$4 sm:$0xff] (!%p5079_p5)  }
0x130d   : > { %5403 = vmatpush3.bf16.msra.mxu0 (!%p5079_p5), %v5816_v49  ;;  %5418 = vmatprep.mubr.msk.bf16.mxu0 (!%p5079_p5), %vm6483_vm1, %v6482_v50 }
0x130e   : > { %5404 = vmatprep.subr.bf16.mxu0 (!%p5079_p5), %v6482_v50 }
0x130f   : > { %4480 = vmatpush1.bf16.msra.mxu1 (!%p5079_p5), %v5841_v15 }
0x1310   : > { %4481 = vmatprep.subr.bf16.mxu1 (!%p5079_p5), %v5842_v16 }
0x1311   : > { %5405 = vmatpush3.bf16.msra.mxu0 (!%p5079_p5), %v5817_v54 }
0x1312   : > { %5406 = vmatprep.subr.bf16.mxu0 (!%p5079_p5), %v6482_v50 }
0x1313   : > { %4482 = vmatpush1.bf16.msra.mxu1 (!%p5079_p5), %v5844_v57 }
0x1314   : > { %4483 = vmatprep.subr.bf16.mxu1 (!%p5079_p5), %v5845_v23 }
0x1315   : > { %5407 = vmatpush3.bf16.msra.mxu0 (!%p5079_p5), %v5818_v55 }
0x1316   : > { %5408 = vmatprep.subr.bf16.mxu0 (!%p5079_p5), %v6482_v50 }
0x1317   : > { %4484 = vmatpush1.bf16.msra.mxu1 (!%p5079_p5), %v5847_v17 }
0x1319   : > { %5409 = vmatpush3.bf16.msra.mxu0 (!%p5079_p5), %v5819_v58 }
0x131a   : > { %5410 = vmatprep.subr.bf16.mxu0 (!%p5079_p5), %v6482_v50 }
0x131d   : > { %5411 = vmatpush3.bf16.msra.mxu0 (!%p5079_p5), %v5820_v2 }
0x131e   : > { %5412 = vmatprep.subr.bf16.mxu0 (!%p5079_p5), %v6482_v50 }
0x1321   : > { %5413 = vmatpush3.bf16.msra.mxu0 (!%p5079_p5), %v5821_v7 }
0x1322   : > { %5414 = vmatprep.subr.bf16.mxu0 (!%p5079_p5), %v6482_v50 }
0x1325   : > { %5415 = vmatpush3.bf16.msra.mxu0 (!%p5079_p5), %v5822_v9 }
0x1326   : > { %5416 = vmatprep.subr.bf16.mxu0 (!%p5079_p5), %v6482_v50 }
0x1329   : > { %5417 = vmatpush3.bf16.msra.mxu0 (!%p5079_p5), %v5823_v59 }
0x13df   : > { %v5267_v18 = vpop.f32.mrb[16].mxu0 }
0x13e0   : > { %v5268_v21 = vpop.f32.mrb[17].mxu0 }
0x13e1   : > { %v5269_v24 = vadd.f32 %v5268_v21, %v5267_v18  ;;  %v5270_v25 = vpop.f32.mrb[18].mxu0  ;;  %v6484_v18 = vmov (!%p5079_p5), 0  }
0x13e2   : > { %v5271_v26 = vpop.f32.mrb[19].mxu0  ;;  %4501 = vmatprep.mubr.bf16.mxu1 (!%p5079_p5), %v6484_v18 }
0x13e3   : > { %v4192_v28 = vadd.f32 %v5269_v24, %v5060_v20  ;;  %v5272_v29 = vadd.f32 %v5271_v26, %v5270_v25 }
0x13e5   : > { %v4195_v30 = vadd.f32 %v5272_v29, %v5060_v20  ;;  %v4198_v31 = vadd.f32 %v4192_v28, %v7565_v12  ;;  %v5080_v20 = vld [vmem:[#allocation26] ss:$0 sm:$0xff] (!%p5079_p5) }
0x13e7   : > { %4202 = vadd.xlane.f32.xlu1 %v4198_v31  ;;  %v4199_v62 = vadd.f32 %v4195_v30, %v7567_v13 }
0x13e9   : > { %4204 = vadd.xlane.f32.xlu0 %v4199_v62 }
0x1474   : > { %v4203_v32 = vpop.xlane.xlu1 %4202 }
0x1475   : > { %v4206_v33 = vmul.f32 0.0078125, %v4203_v32 }
0x1476   : > { %v4205_v60 = vpop.xlane.xlu0 %4204 }
0x1477   : > { %v4208_v34 = vsub.f32 %v4198_v31, %v4206_v33  ;;  %v4207_v35 = vmul.f32 0.0078125, %v4205_v60  ;;  %v4377_v31 = vld [vmem:[#allocation29] sm:$0x3] (!%p5079_p5) }
0x1478   : > { %v4386_v32 = vrot.slane (!%p5079_p5), %v4377_v31, %v7345_v53 }
0x1479   : > { %v4209_v36 = vsub.f32 %v4199_v62, %v4207_v35  ;;  %v4210_v37 = vmul.f32 %v4208_v34, %v4208_v34  ;;  %v4382_v62 = vrot.slane (!%p5079_p5), %v4377_v31, %v7342_v51 }
0x147b   : > { %4212 = vadd.xlane.f32.xlu1 %v4210_v37  ;;  %v4211_v38 = vmul.f32 %v4209_v36, %v4209_v36 }
0x147d   : > { %4214 = vadd.xlane.f32.xlu0 %v4211_v38 }
0x1508   : > { %v4213_v39 = vpop.xlane.xlu1 %4212 }
0x1509   : > { %v4216_v19 = vmul.f32 0.0078125, %v4213_v39 }
0x150a   : > { %v4215_v41 = vpop.xlane.xlu0 %4214 }
0x150b   : > { %v4218_v12 = vadd.f32 1e-12, %v4216_v19  ;;  %v4217_v42 = vmul.f32 0.0078125, %v4215_v41 }
0x150d   : > { %5812 = vrsqrt.f32 %v4218_v12  ;;  %v4219_v13 = vadd.f32 1e-12, %v4217_v42 }
0x150f   : > { %5814 = vrsqrt.f32 %v4219_v13 }
0x1517   : > { %v5813_v43 = vpop.eup %5812 }
0x1518   : > { %v4222_v45 = vmul.f32 %v5813_v43, %v4208_v34 }
0x1519   : > { %v5815_v46 = vpop.eup %5814 }
0x151a   : > { %v4230_v47 = vmul.f32 %v5077_v44, %v4222_v45  ;;  %v4223_v48 = vmul.f32 %v5815_v46, %v4209_v36  ;;  %4245 = sbr.rel (%p5079_p5) target bundleno = 5863 (0x16e7), region = 192 }
0x151c   : > { %v4238_v52 = vadd.f32 %v5078_v27, %v4230_v47  ;;  %v4231_v6 = vmul.f32 %v5077_v44, %v4223_v48 }
0x151e   : > { %4240 = vst [vmem:[#allocation2] sm:$0xff] %v4238_v52  ;;  %v4239_v40 = vadd.f32 %v5078_v27, %v4231_v6 }
0x1520   : > { %4241 = vst [vmem:[#allocation2 + $0x8] sm:$0xff] %v4239_v40 }
0x1527   : > { %v4246_v63 = vld [vmem:[#allocation2] ss:$8 sm:$0x3] }
0x1528   : > { %v4247_v1 = vpack.c.bf16 %v4246_v63, %v4246_v63 }
0x152a   : > { %5419 = vmatmul.mubr.bf16.vlgmr.msra.gmra.mrb[0].mxu0 %v4247_v1 }
0x15fd   : > { %v4353_v21 = vpop.f32.mrb[0].mxu0 }
0x15fe   : > { %v4354_v24 = vadd.f32 %v5080_v20, %v4353_v21  ;;  %v5420_v25 = vpop.f32.mrb[1].mxu0 }
0x15ff   : > { %v4356_v26 = vpop.f32.mrb[2].mxu0 }
0x1600   : > { %5848 = vtanh.f32 %v4354_v24  ;;  %v5421_v28 = vpop.f32.mrb[3].mxu0 }
0x160a   : > { %v5849_v29 = vpop.eup %5848 }
0x160b   : > { %v4360_v30 = vpack.c.bf16 %v5849_v29, %v5849_v29 }
0x160d   : > { %4502 = vmatmul.mubr.bf16.vlgmr.msra.gmra.mrb[0].mxu1 %v4360_v30 }
0x16e0   : > { %v4503_v33 = vpop.f32.mrb[0].mxu1 }
0x16e1   : > { %v4504_v60 = vadd.f32 %v4503_v33, %v4382_v62  ;;  %v4505_v34 = vpop.f32.mrb[1].mxu1 }
0x16e2   : > { %v4506_v35 = vadd.f32 %v4505_v34, %v4386_v32  ;;  %v4507_v36 = vpop.f32.mrb[2].mxu1 }
0x16e3   : > { %v4508_v37 = vpop.f32.mrb[3].mxu1 }
0x16e4   : > { %v4512_v38 = vcombine.low %v4504_v60, %v4506_v35 }
0x16e6   : > { %5105 = vst.sshfl [vmem:[#allocation30] sm:$0x33 pattern:$0x76325410] %v4512_v38 }
0x16e7 PF: > { %s7829_s3 = sld [smem:[#allocation44_spill]]  ;;  %s6485_s10 = smov [#allocation30]  }
0x16e8   : > { %s4529_s21 = sshll.u32 %s6485_s10, 4  ;;  %s4530_s21 = int_to_ptr.vmem [resolvable:$true] %s4529_s21 }
0x16e9   : > { %s6348_s26 = scalar_lea.vmem %s4530_s21, 64  ;;  %p6355_p4 = scmp.lt.s32.totalorder %s4530_s21, %s4530_s21 }
0x16ea   : > { %p6349_p7 = scmp.ne.s32.totalorder %s4530_s21, %s6348_s26  ;;  %p6356_p11 = scmp.lt.s32.totalorder %s6348_s26, %s6348_s26 }
0x16ec   : > { %p6357_p1 = por %p6356_p11, %p6355_p4 }
0x16ed   : > { %p5544_p9 = scmp.eq.s32.totalorder %s7829_s3, 1 }
0x16ef   : > { %p6350_p3 = pnand %p6349_p7, %p5544_p9 }
0x16f1   : > { %p6351_p12 = pneg %p6350_p3 }
0x16f3   : > { %p6358_p8 = pnand %p6357_p1, %p6351_p12 }
0x16f5   : > { %6361 = shalt.err (!%p6358_p8)
}
0x16f6   : > { %s7830_s12 = sld [smem:[#allocation69_spill]] }
0x16fc   : > { %s6362_s15 = scalar_lea.hbm %s7830_s12, 64 }
0x16fd   : > { %p6363_p2 = scmp.ne.s32.totalorder %s7830_s12, %s6362_s15  ;;  %p6368_p13 = scmp.lt.u32.totalorder %s6362_s15, %s7830_s12 }
0x16ff   : > { %p6364_p6 = pnand %p6363_p2, %p5544_p9 }
0x1701   : > { %p6365_p0 = pneg %p6364_p6 }
0x1703   : > { %p6370_p10 = pnand %p6368_p13, %p6365_p0 }
0x1705   : > { %6373 = shalt.err (!%p6370_p10)
}
0x1706   : > { %5475 = dma.vmem_to_hbm [thread:$0]  (%p5544_p9), %s4530_s21, 64, %s7830_s12, [#allocation5]  }
0x1707   : > { %6431 = dma.done.wait (%p5544_p9), [#allocation5], 64  }
0x1708   : > { %6433 = vsyncadd (%p5544_p9), [#allocation5], 4294967232 }
0x1709 PF: > { %s7831_s28 = sld [smem:[#allocation45_spill]]  ;;  %s7832_s5 = sld [smem:[#allocation42_spill]] }
0x170a   : > { %s7833_s26 = sld [smem:[#allocation43_spill]]  ;;  %s7834_s27 = sld [smem:[#allocation46_spill]] }
0x170f   : > { %p53_p5 = scmp.ge.s32.totalorder %s7831_s28, 4  }
0x1711   :  { %55 = sbr.rel (!%p53_p5) target bundleno = 39 (0x27), region = 309 }
0x1718   :  { %4542 = vsyncpa [#allocation4], 1 }
0x1719   :  { %4544 = vsyncpa [#allocation4 + $0x1], 1 }
0x171a   :  { %4545 = vsyncpa [#allocation7], 1 }
0x171b   :  { %4546 = vsyncpa [#allocation10], 1 }
0x171c   :  { %4548 = vsyncpa [#allocation10 + $0x1], 1 }
0x171d   :  { %4549 = vsyncpa [#allocation13], 1 }
0x171e   :  { %4551 = vsyncpa [#allocation13 + $0x1], 1 }
0x171f   :  { %4552 = vsyncpa [#allocation16], 1 }
0x1720   :  { %4554 = vsyncpa [#allocation16 + $0x1], 1 }
0x1721   :  { %4555 = vsyncpa [#allocation19], 1 }
0x1722   :  { %4557 = vsyncpa [#allocation19 + $0x1], 1 }
0x1723   :  { %4558 = vsyncpa [#allocation22], 1 }
0x1724   :  { %4560 = vsyncpa [#allocation22 + $0x1], 1 }
0x1725   :  { %4561 = vsyncpa [#allocation25], 1 }
0x1726   :  { %4563 = vsyncpa [#allocation25 + $0x1], 1 }
0x1727   :  { %4564 = vsyncpa [#allocation28], 1 }
0x1728   :  { %4565 = vsyncpa [#allocation5], 1 }
0x1729   :  { %4567 = vsyncpa [#allocation5 + $0x1], 1 }

</bundles_post_ra>
